<compile_context>
chip_gen: v7x
topology: tpu7x:2x2x1
jax: 0.10.0
libtpu: 0.0.40
codegen_flags: <defaults>
</compile_context>

<pallas_src>
import functools

import numpy as np
import jax
import jax.numpy as jnp
from jax import lax
from jax.experimental import pallas as pl
from jax.experimental.pallas import tpu as pltpu


# ----------------------------------------------------------------------------
# Selection ("gather-as-GEMM") matrices, built once on the host.
#   S[t, ih*W+iw, oh*Wo+ow] = 1  iff input pixel (ih,iw) feeds output pixel
#   (oh,ow) through kernel tap t = di*3+dj.  Out-of-range / padded taps are 0.
# ----------------------------------------------------------------------------
def _conv_selection(h, w, k, stride, pad):
    ho = (h + 2 * pad - k) // stride + 1
    wo = (w + 2 * pad - k) // stride + 1
    s = np.zeros((k * k, h * w, ho * wo), np.float32)
    for di in range(k):
        for dj in range(k):
            t = di * k + dj
            for oh in range(ho):
                ih = oh * stride - pad + di
                if not (0 <= ih < h):
                    continue
                for ow in range(wo):
                    iw = ow * stride - pad + dj
                    if 0 <= iw < w:
                        s[t, ih * w + iw, oh * wo + ow] = 1.0
    return s, (ho, wo)


def _deconv_selection(h, w, k, stride, pad, out_pad):
    """ConvTranspose2d(k=3, s=2, p=1, op=1) as an equivalent stride-1 conv over
    the zero-dilated input; dilation/padding/output_padding (and the pixel
    interleave) are encoded in the 0/1 matrix, so no zero MACs or pixel
    shuffle are materialized outside the MXU."""
    assert (k, stride, pad, out_pad) == (3, 2, 1, 1)
    ho, wo = stride * h, stride * w
    pad_eq = k - 1 - pad  # = 1
    s = np.zeros((k * k, h * w, ho * wo), np.float32)
    for di in range(k):
        for dj in range(k):
            t = di * k + dj
            for oh in range(ho):
                ihd = oh - pad_eq + di
                if ihd < 0 or ihd % stride:
                    continue
                ih = ihd // stride
                if ih >= h:
                    continue
                for ow in range(wo):
                    iwd = ow - pad_eq + dj
                    if iwd < 0 or iwd % stride:
                        continue
                    iw = iwd // stride
                    if iw < w:
                        s[t, ih * w + iw, oh * wo + ow] = 1.0
    return s, (ho, wo)


# ----------------------------------------------------------------------------
# Parameter preparation (host-side, outside the jitted step):
#   per layer -> (W3 (taps, Cout, Cin) bf16, S (taps, Min, Mout) bf16, b (Cout,1) f32)
# ----------------------------------------------------------------------------
def prepare_params(params, h, w):
    layers = []
    # encoder: Conv2d(k=3, stride=2, pad=1); tap t = di*3+dj, W3[t] = w[:, :, di, dj]
    for name in ("e0", "e1", "e2"):
        wt, b = params[name + "_w"], params[name + "_b"]
        cout, cin, k, _ = wt.shape
        w3 = jnp.transpose(wt, (2, 3, 0, 1)).reshape(k * k, cout, cin)
        s, (h, w) = _conv_selection(h, w, k, 2, 1)
        layers.append((w3.astype(jnp.bfloat16),
                       jnp.asarray(s, jnp.bfloat16),
                       b.reshape(cout, 1).astype(jnp.float32)))
    # decoder: ConvTranspose2d(k=3, stride=2, pad=1, out_pad=1)
    #   equivalent forward-conv weight (flipped kernel): W3[t][co,ci] = w[ci,co,2-di,2-dj]
    for name in ("d0", "d1", "d2"):
        wt, b = params[name + "_w"], params[name + "_b"]
        cin, cout, k, _ = wt.shape
        w3 = jnp.transpose(wt[:, :, ::-1, ::-1], (2, 3, 1, 0)).reshape(k * k, cout, cin)
        s, (h, w) = _deconv_selection(h, w, k, 2, 1, 1)
        layers.append((w3.astype(jnp.bfloat16),
                       jnp.asarray(s, jnp.bfloat16),
                       b.reshape(cout, 1).astype(jnp.float32)))
    return tuple(layers), (h, w)


# ----------------------------------------------------------------------------
# The fused Pallas kernel: full forward pass for one image per grid step.
# ----------------------------------------------------------------------------
def _autoencoder_kernel(*refs, acts):
    x_ref, o_ref = refs[0], refs[-1]
    layer_refs = refs[1:-1]

    x = x_ref[0]  # (Cin, H*W) f32 -- one image; stays in VMEM for all layers
    for li, act in enumerate(acts):
        w3_ref = layer_refs[3 * li]      # (taps, Cout, Cin)    bf16
        s_ref = layer_refs[3 * li + 1]   # (taps, M_in, M_out)  bf16
        b_ref = layer_refs[3 * li + 2]   # (Cout, 1)            f32
        taps, cout, _ = w3_ref.shape
        m_out = s_ref.shape[2]

        xb = x.astype(jnp.bfloat16)
        acc = jnp.zeros((cout, m_out), jnp.float32)
        for t in range(taps):
            # gather-as-GEMM patch block for tap t: (Cin, M_out), then MAC it.
            p = jnp.dot(xb, s_ref[t], preferred_element_type=jnp.float32)
            acc = acc + jnp.dot(w3_ref[t], p.astype(jnp.bfloat16),
                                preferred_element_type=jnp.float32)
        acc = acc + b_ref[...]  # (Cout,1) broadcasts over lanes

        if act == "relu":
            x = jnp.maximum(acc, 0.0)
        else:  # sigmoid via tanh: single EUP op + VPU mul/add, no overflow
            x = 0.5 * jnp.tanh(0.5 * acc) + 0.5

    o_ref[0] = x.astype(o_ref.dtype)


def conv_autoencoder_forward(x_nchw, layers):
    """x_nchw: (N, C, H, W) f32 -> (N, C, H, W) f32 (PyTorch semantics)."""
    n, c, h, w = x_nchw.shape
    x2 = x_nchw.reshape(n, c, h * w)  # (C, M) inter-layer layout; no transpose

    cout_f = layers[-1][0].shape[1]
    m_out_f = layers[-1][1].shape[2]
    assert m_out_f == h * w  # autoencoder reconstructs the input resolution

    acts = ("relu",) * (len(layers) - 1) + ("sigmoid",)

    in_specs = [pl.BlockSpec((1, c, h * w), lambda i: (i, 0, 0))]  # per-image
    flat_inputs = [x2]
    for (w3, s, b) in layers:
        flat_inputs += [w3, s, b]
        in_specs += [
            pl.BlockSpec(w3.shape, lambda i: (0, 0, 0)),  # VMEM-resident weights
            pl.BlockSpec(s.shape, lambda i: (0, 0, 0)),   # VMEM-resident selections
            pl.BlockSpec(b.shape, lambda i: (0, 0)),      # VMEM-resident bias
        ]

    out = pl.pallas_call(
        functools.partial(_autoencoder_kernel, acts=acts),
        out_shape=jax.ShapeDtypeStruct((n, cout_f, m_out_f), jnp.float32),
        grid_spec=pltpu.PrefetchScalarGridSpec(
            num_scalar_prefetch=0,
            grid=(n,),  # >=2 steps -> both v7x TensorCores get work
            in_specs=in_specs,
            out_specs=pl.BlockSpec((1, cout_f, m_out_f), lambda i: (i, 0, 0)),
        ),
        compiler_params=pltpu.CompilerParams(
            dimension_semantics=("parallel",),
        ),
    )(*flat_inputs)
    return out.reshape(n, cout_f, h, w)


# ----------------------------------------------------------------------------
# Pure-JAX reference (lax convs, f32) for a correctness cross-check
# ----------------------------------------------------------------------------
def reference_forward(x, p):
    def conv(x, w, b, stride, pad):
        y = lax.conv_general_dilated(
            x, w, (stride, stride), ((pad, pad), (pad, pad)),
            dimension_numbers=("NCHW", "OIHW", "NCHW"))
        return y + b[None, :, None, None]

    def convT(x, w, b, stride, pad, op):
        k = w.shape[2]
        w2 = jnp.transpose(w[:, :, ::-1, ::-1], (1, 0, 2, 3))  # -> (Cout, Cin, k, k)
        y = lax.conv_general_dilated(
            x, w2, (1, 1),
            ((k - 1 - pad, k - 1 - pad + op), (k - 1 - pad, k - 1 - pad + op)),
            lhs_dilation=(stride, stride),
            dimension_numbers=("NCHW", "OIHW", "NCHW"))
        return y + b[None, :, None, None]

    relu = lambda v: jnp.maximum(v, 0.0)
    x = relu(conv(x, p["e0_w"], p["e0_b"], 2, 1))
    x = relu(conv(x, p["e1_w"], p["e1_b"], 2, 1))
    x = relu(conv(x, p["e2_w"], p["e2_b"], 2, 1))
    x = relu(convT(x, p["d0_w"], p["d0_b"], 2, 1, 1))
    x = relu(convT(x, p["d1_w"], p["d1_b"], 2, 1, 1))
    x = jax.nn.sigmoid(convT(x, p["d2_w"], p["d2_b"], 2, 1, 1))
    return x


def init_params(key):
    ks = jax.random.split(key, 12)
    f = lambda k, shape: (0.1 * jax.random.normal(k, shape, jnp.float32))
    return {
        # encoder Conv2d weights: (Cout, Cin, k, k)
        "e0_w": f(ks[0], (16, 3, 3, 3)),  "e0_b": f(ks[1], (16,)),
        "e1_w": f(ks[2], (32, 16, 3, 3)), "e1_b": f(ks[3], (32,)),
        "e2_w": f(ks[4], (64, 32, 3, 3)), "e2_b": f(ks[5], (64,)),
        # decoder ConvTranspose2d weights: (Cin, Cout, k, k)
        "d0_w": f(ks[6], (64, 32, 3, 3)), "d0_b": f(ks[7], (32,)),
        "d1_w": f(ks[8], (32, 16, 3, 3)), "d1_b": f(ks[9], (16,)),
        "d2_w": f(ks[10], (16, 3, 3, 3)), "d2_b": f(ks[11], (3,)),
    }


if __name__ == "__main__":
    key = jax.random.PRNGKey(0)
    kx, kp = jax.random.split(key)
    x = jax.random.normal(kx, (2, 3, 16, 16), jnp.float32)   # NCHW like PyTorch
    params = init_params(kp)

    # one-time host-side preparation (weights -> tap matrices, selection mats)
    layers, out_hw = prepare_params(params, 16, 16)
    assert out_hw == (16, 16)

    fwd = jax.jit(conv_autoencoder_forward)
    out = jax.block_until_ready(fwd(x, layers))
    assert out.shape == (2, 3, 16, 16), out.shape

    ref = jax.block_until_ready(jax.jit(reference_forward)(x, params))
    err = float(jnp.max(jnp.abs(out - ref)))
    # bf16 matmul operands vs f32 lax reference -> loosened tolerance.
    assert err < 3e-2, f"mismatch vs lax reference: max|diff|={err}"

    print("KERNEL_OK")
</pallas_src>

<mosaic_0001>
module attributes {stable_mosaic.version = 11 : i64} {
  func.func @_autoencoder_kernel(%arg0: i32, %arg1: memref<1x3x256xf32, #tpu.memory_space<vmem>>, %arg2: memref<9x16x3xbf16, #tpu.memory_space<vmem>>, %arg3: memref<9x256x64xbf16, #tpu.memory_space<vmem>>, %arg4: memref<16x1xf32, #tpu.memory_space<vmem>>, %arg5: memref<9x32x16xbf16, #tpu.memory_space<vmem>>, %arg6: memref<9x64x16xbf16, #tpu.memory_space<vmem>>, %arg7: memref<32x1xf32, #tpu.memory_space<vmem>>, %arg8: memref<9x64x32xbf16, #tpu.memory_space<vmem>>, %arg9: memref<9x16x4xbf16, #tpu.memory_space<vmem>>, %arg10: memref<64x1xf32, #tpu.memory_space<vmem>>, %arg11: memref<9x32x64xbf16, #tpu.memory_space<vmem>>, %arg12: memref<9x4x16xbf16, #tpu.memory_space<vmem>>, %arg13: memref<32x1xf32, #tpu.memory_space<vmem>>, %arg14: memref<9x16x32xbf16, #tpu.memory_space<vmem>>, %arg15: memref<9x16x64xbf16, #tpu.memory_space<vmem>>, %arg16: memref<16x1xf32, #tpu.memory_space<vmem>>, %arg17: memref<9x3x16xbf16, #tpu.memory_space<vmem>>, %arg18: memref<9x64x256xbf16, #tpu.memory_space<vmem>>, %arg19: memref<3x1xf32, #tpu.memory_space<vmem>>, %arg20: memref<1x3x256xf32, #tpu.memory_space<vmem>>) attributes {dimension_semantics = [#tpu.dimension_semantics<parallel>], iteration_bounds = array<i64: 2>, scalar_prefetch = 0 : i64, scratch_operands = 0 : i64, tpu.core_type = #tpu.core_type<tc>, window_params = [{transform_indices = @transform_0, window_bounds = array<i64: 1, 3, 256>}, {pipeline_mode = #tpu.pipeline_mode<synchronous>, transform_indices = @transform_1, window_bounds = array<i64: 9, 16, 3>}, {pipeline_mode = #tpu.pipeline_mode<synchronous>, transform_indices = @transform_2, window_bounds = array<i64: 9, 256, 64>}, {pipeline_mode = #tpu.pipeline_mode<synchronous>, transform_indices = @transform_3, window_bounds = array<i64: 16, 1>}, {pipeline_mode = #tpu.pipeline_mode<synchronous>, transform_indices = @transform_4, window_bounds = array<i64: 9, 32, 16>}, {pipeline_mode = #tpu.pipeline_mode<synchronous>, transform_indices = @transform_5, window_bounds = array<i64: 9, 64, 16>}, {pipeline_mode = #tpu.pipeline_mode<synchronous>, transform_indices = @transform_6, window_bounds = array<i64: 32, 1>}, {pipeline_mode = #tpu.pipeline_mode<synchronous>, transform_indices = @transform_7, window_bounds = array<i64: 9, 64, 32>}, {pipeline_mode = #tpu.pipeline_mode<synchronous>, transform_indices = @transform_8, window_bounds = array<i64: 9, 16, 4>}, {pipeline_mode = #tpu.pipeline_mode<synchronous>, transform_indices = @transform_9, window_bounds = array<i64: 64, 1>}, {pipeline_mode = #tpu.pipeline_mode<synchronous>, transform_indices = @transform_10, window_bounds = array<i64: 9, 32, 64>}, {pipeline_mode = #tpu.pipeline_mode<synchronous>, transform_indices = @transform_11, window_bounds = array<i64: 9, 4, 16>}, {pipeline_mode = #tpu.pipeline_mode<synchronous>, transform_indices = @transform_12, window_bounds = array<i64: 32, 1>}, {pipeline_mode = #tpu.pipeline_mode<synchronous>, transform_indices = @transform_13, window_bounds = array<i64: 9, 16, 32>}, {pipeline_mode = #tpu.pipeline_mode<synchronous>, transform_indices = @transform_14, window_bounds = array<i64: 9, 16, 64>}, {pipeline_mode = #tpu.pipeline_mode<synchronous>, transform_indices = @transform_15, window_bounds = array<i64: 16, 1>}, {pipeline_mode = #tpu.pipeline_mode<synchronous>, transform_indices = @transform_16, window_bounds = array<i64: 9, 3, 16>}, {pipeline_mode = #tpu.pipeline_mode<synchronous>, transform_indices = @transform_17, window_bounds = array<i64: 9, 64, 256>}, {pipeline_mode = #tpu.pipeline_mode<synchronous>, transform_indices = @transform_18, window_bounds = array<i64: 3, 1>}, {transform_indices = @transform_19, window_bounds = array<i64: 1, 3, 256>}]} {
    %c0 = arith.constant 0 : index
    %c0_0 = arith.constant 0 : index
    %c0_1 = arith.constant 0 : index
    %0 = vector.load %arg1[%c0, %c0_0, %c0_1] : memref<1x3x256xf32, #tpu.memory_space<vmem>>, vector<1x3x256xf32>
    %1 = vector.shape_cast %0 : vector<1x3x256xf32> to vector<3x256xf32>
    %2 = arith.truncf %1 : vector<3x256xf32> to vector<3x256xbf16>
    %cst = arith.constant 0.000000e+00 : f32
    %3 = vector.broadcast %cst : f32 to vector<16x64xf32>
    %c0_2 = arith.constant 0 : index
    %c0_3 = arith.constant 0 : index
    %c0_4 = arith.constant 0 : index
    %4 = vector.load %arg3[%c0_2, %c0_3, %c0_4] : memref<9x256x64xbf16, #tpu.memory_space<vmem>>, vector<1x256x64xbf16>
    %5 = vector.shape_cast %4 : vector<1x256x64xbf16> to vector<256x64xbf16>
    %cst_5 = arith.constant dense<0.000000e+00> : vector<3x64xf32>
    %6 = tpu.matmul %2, %5, %cst_5 {dimension_numbers = #tpu.dot_dimension_numbers<[1], [0], [0], [1], [0, 0, 1, 1], [], []>} : vector<3x256xbf16>, vector<256x64xbf16>, vector<3x64xf32> -> vector<3x64xf32>
    %c0_6 = arith.constant 0 : index
    %c0_7 = arith.constant 0 : index
    %c0_8 = arith.constant 0 : index
    %7 = vector.load %arg2[%c0_6, %c0_7, %c0_8] : memref<9x16x3xbf16, #tpu.memory_space<vmem>>, vector<1x16x3xbf16>
    %8 = vector.shape_cast %7 : vector<1x16x3xbf16> to vector<16x3xbf16>
    %9 = arith.truncf %6 : vector<3x64xf32> to vector<3x64xbf16>
    %cst_9 = arith.constant dense<0.000000e+00> : vector<16x64xf32>
    %10 = tpu.matmul %8, %9, %cst_9 {dimension_numbers = #tpu.dot_dimension_numbers<[1], [0], [0], [1], [0, 0, 1, 1], [], []>} : vector<16x3xbf16>, vector<3x64xbf16>, vector<16x64xf32> -> vector<16x64xf32>
    %11 = arith.addf %3, %10 : vector<16x64xf32>
    %c1 = arith.constant 1 : index
    %c0_10 = arith.constant 0 : index
    %c0_11 = arith.constant 0 : index
    %12 = vector.load %arg3[%c1, %c0_10, %c0_11] : memref<9x256x64xbf16, #tpu.memory_space<vmem>>, vector<1x256x64xbf16>
    %13 = vector.shape_cast %12 : vector<1x256x64xbf16> to vector<256x64xbf16>
    %cst_12 = arith.constant dense<0.000000e+00> : vector<3x64xf32>
    %14 = tpu.matmul %2, %13, %cst_12 {dimension_numbers = #tpu.dot_dimension_numbers<[1], [0], [0], [1], [0, 0, 1, 1], [], []>} : vector<3x256xbf16>, vector<256x64xbf16>, vector<3x64xf32> -> vector<3x64xf32>
    %c1_13 = arith.constant 1 : index
    %c0_14 = arith.constant 0 : index
    %c0_15 = arith.constant 0 : index
    %15 = vector.load %arg2[%c1_13, %c0_14, %c0_15] : memref<9x16x3xbf16, #tpu.memory_space<vmem>>, vector<1x16x3xbf16>
    %16 = vector.shape_cast %15 : vector<1x16x3xbf16> to vector<16x3xbf16>
    %17 = arith.truncf %14 : vector<3x64xf32> to vector<3x64xbf16>
    %cst_16 = arith.constant dense<0.000000e+00> : vector<16x64xf32>
    %18 = tpu.matmul %16, %17, %cst_16 {dimension_numbers = #tpu.dot_dimension_numbers<[1], [0], [0], [1], [0, 0, 1, 1], [], []>} : vector<16x3xbf16>, vector<3x64xbf16>, vector<16x64xf32> -> vector<16x64xf32>
    %19 = arith.addf %11, %18 : vector<16x64xf32>
    %c2 = arith.constant 2 : index
    %c0_17 = arith.constant 0 : index
    %c0_18 = arith.constant 0 : index
    %20 = vector.load %arg3[%c2, %c0_17, %c0_18] : memref<9x256x64xbf16, #tpu.memory_space<vmem>>, vector<1x256x64xbf16>
    %21 = vector.shape_cast %20 : vector<1x256x64xbf16> to vector<256x64xbf16>
    %cst_19 = arith.constant dense<0.000000e+00> : vector<3x64xf32>
    %22 = tpu.matmul %2, %21, %cst_19 {dimension_numbers = #tpu.dot_dimension_numbers<[1], [0], [0], [1], [0, 0, 1, 1], [], []>} : vector<3x256xbf16>, vector<256x64xbf16>, vector<3x64xf32> -> vector<3x64xf32>
    %c2_20 = arith.constant 2 : index
    %c0_21 = arith.constant 0 : index
    %c0_22 = arith.constant 0 : index
    %23 = vector.load %arg2[%c2_20, %c0_21, %c0_22] : memref<9x16x3xbf16, #tpu.memory_space<vmem>>, vector<1x16x3xbf16>
    %24 = vector.shape_cast %23 : vector<1x16x3xbf16> to vector<16x3xbf16>
    %25 = arith.truncf %22 : vector<3x64xf32> to vector<3x64xbf16>
    %cst_23 = arith.constant dense<0.000000e+00> : vector<16x64xf32>
    %26 = tpu.matmul %24, %25, %cst_23 {dimension_numbers = #tpu.dot_dimension_numbers<[1], [0], [0], [1], [0, 0, 1, 1], [], []>} : vector<16x3xbf16>, vector<3x64xbf16>, vector<16x64xf32> -> vector<16x64xf32>
    %27 = arith.addf %19, %26 : vector<16x64xf32>
    %c3 = arith.constant 3 : index
    %c0_24 = arith.constant 0 : index
    %c0_25 = arith.constant 0 : index
    %28 = vector.load %arg3[%c3, %c0_24, %c0_25] : memref<9x256x64xbf16, #tpu.memory_space<vmem>>, vector<1x256x64xbf16>
    %29 = vector.shape_cast %28 : vector<1x256x64xbf16> to vector<256x64xbf16>
    %cst_26 = arith.constant dense<0.000000e+00> : vector<3x64xf32>
    %30 = tpu.matmul %2, %29, %cst_26 {dimension_numbers = #tpu.dot_dimension_numbers<[1], [0], [0], [1], [0, 0, 1, 1], [], []>} : vector<3x256xbf16>, vector<256x64xbf16>, vector<3x64xf32> -> vector<3x64xf32>
    %c3_27 = arith.constant 3 : index
    %c0_28 = arith.constant 0 : index
    %c0_29 = arith.constant 0 : index
    %31 = vector.load %arg2[%c3_27, %c0_28, %c0_29] : memref<9x16x3xbf16, #tpu.memory_space<vmem>>, vector<1x16x3xbf16>
    %32 = vector.shape_cast %31 : vector<1x16x3xbf16> to vector<16x3xbf16>
    %33 = arith.truncf %30 : vector<3x64xf32> to vector<3x64xbf16>
    %cst_30 = arith.constant dense<0.000000e+00> : vector<16x64xf32>
    %34 = tpu.matmul %32, %33, %cst_30 {dimension_numbers = #tpu.dot_dimension_numbers<[1], [0], [0], [1], [0, 0, 1, 1], [], []>} : vector<16x3xbf16>, vector<3x64xbf16>, vector<16x64xf32> -> vector<16x64xf32>
    %35 = arith.addf %27, %34 : vector<16x64xf32>
    %c4 = arith.constant 4 : index
    %c0_31 = arith.constant 0 : index
    %c0_32 = arith.constant 0 : index
    %36 = vector.load %arg3[%c4, %c0_31, %c0_32] : memref<9x256x64xbf16, #tpu.memory_space<vmem>>, vector<1x256x64xbf16>
    %37 = vector.shape_cast %36 : vector<1x256x64xbf16> to vector<256x64xbf16>
    %cst_33 = arith.constant dense<0.000000e+00> : vector<3x64xf32>
    %38 = tpu.matmul %2, %37, %cst_33 {dimension_numbers = #tpu.dot_dimension_numbers<[1], [0], [0], [1], [0, 0, 1, 1], [], []>} : vector<3x256xbf16>, vector<256x64xbf16>, vector<3x64xf32> -> vector<3x64xf32>
    %c4_34 = arith.constant 4 : index
    %c0_35 = arith.constant 0 : index
    %c0_36 = arith.constant 0 : index
    %39 = vector.load %arg2[%c4_34, %c0_35, %c0_36] : memref<9x16x3xbf16, #tpu.memory_space<vmem>>, vector<1x16x3xbf16>
    %40 = vector.shape_cast %39 : vector<1x16x3xbf16> to vector<16x3xbf16>
    %41 = arith.truncf %38 : vector<3x64xf32> to vector<3x64xbf16>
    %cst_37 = arith.constant dense<0.000000e+00> : vector<16x64xf32>
    %42 = tpu.matmul %40, %41, %cst_37 {dimension_numbers = #tpu.dot_dimension_numbers<[1], [0], [0], [1], [0, 0, 1, 1], [], []>} : vector<16x3xbf16>, vector<3x64xbf16>, vector<16x64xf32> -> vector<16x64xf32>
    %43 = arith.addf %35, %42 : vector<16x64xf32>
    %c5 = arith.constant 5 : index
    %c0_38 = arith.constant 0 : index
    %c0_39 = arith.constant 0 : index
    %44 = vector.load %arg3[%c5, %c0_38, %c0_39] : memref<9x256x64xbf16, #tpu.memory_space<vmem>>, vector<1x256x64xbf16>
    %45 = vector.shape_cast %44 : vector<1x256x64xbf16> to vector<256x64xbf16>
    %cst_40 = arith.constant dense<0.000000e+00> : vector<3x64xf32>
    %46 = tpu.matmul %2, %45, %cst_40 {dimension_numbers = #tpu.dot_dimension_numbers<[1], [0], [0], [1], [0, 0, 1, 1], [], []>} : vector<3x256xbf16>, vector<256x64xbf16>, vector<3x64xf32> -> vector<3x64xf32>
    %c5_41 = arith.constant 5 : index
    %c0_42 = arith.constant 0 : index
    %c0_43 = arith.constant 0 : index
    %47 = vector.load %arg2[%c5_41, %c0_42, %c0_43] : memref<9x16x3xbf16, #tpu.memory_space<vmem>>, vector<1x16x3xbf16>
    %48 = vector.shape_cast %47 : vector<1x16x3xbf16> to vector<16x3xbf16>
    %49 = arith.truncf %46 : vector<3x64xf32> to vector<3x64xbf16>
    %cst_44 = arith.constant dense<0.000000e+00> : vector<16x64xf32>
    %50 = tpu.matmul %48, %49, %cst_44 {dimension_numbers = #tpu.dot_dimension_numbers<[1], [0], [0], [1], [0, 0, 1, 1], [], []>} : vector<16x3xbf16>, vector<3x64xbf16>, vector<16x64xf32> -> vector<16x64xf32>
    %51 = arith.addf %43, %50 : vector<16x64xf32>
    %c6 = arith.constant 6 : index
    %c0_45 = arith.constant 0 : index
    %c0_46 = arith.constant 0 : index
    %52 = vector.load %arg3[%c6, %c0_45, %c0_46] : memref<9x256x64xbf16, #tpu.memory_space<vmem>>, vector<1x256x64xbf16>
    %53 = vector.shape_cast %52 : vector<1x256x64xbf16> to vector<256x64xbf16>
    %cst_47 = arith.constant dense<0.000000e+00> : vector<3x64xf32>
    %54 = tpu.matmul %2, %53, %cst_47 {dimension_numbers = #tpu.dot_dimension_numbers<[1], [0], [0], [1], [0, 0, 1, 1], [], []>} : vector<3x256xbf16>, vector<256x64xbf16>, vector<3x64xf32> -> vector<3x64xf32>
    %c6_48 = arith.constant 6 : index
    %c0_49 = arith.constant 0 : index
    %c0_50 = arith.constant 0 : index
    %55 = vector.load %arg2[%c6_48, %c0_49, %c0_50] : memref<9x16x3xbf16, #tpu.memory_space<vmem>>, vector<1x16x3xbf16>
    %56 = vector.shape_cast %55 : vector<1x16x3xbf16> to vector<16x3xbf16>
    %57 = arith.truncf %54 : vector<3x64xf32> to vector<3x64xbf16>
    %cst_51 = arith.constant dense<0.000000e+00> : vector<16x64xf32>
    %58 = tpu.matmul %56, %57, %cst_51 {dimension_numbers = #tpu.dot_dimension_numbers<[1], [0], [0], [1], [0, 0, 1, 1], [], []>} : vector<16x3xbf16>, vector<3x64xbf16>, vector<16x64xf32> -> vector<16x64xf32>
    %59 = arith.addf %51, %58 : vector<16x64xf32>
    %c7 = arith.constant 7 : index
    %c0_52 = arith.constant 0 : index
    %c0_53 = arith.constant 0 : index
    %60 = vector.load %arg3[%c7, %c0_52, %c0_53] : memref<9x256x64xbf16, #tpu.memory_space<vmem>>, vector<1x256x64xbf16>
    %61 = vector.shape_cast %60 : vector<1x256x64xbf16> to vector<256x64xbf16>
    %cst_54 = arith.constant dense<0.000000e+00> : vector<3x64xf32>
    %62 = tpu.matmul %2, %61, %cst_54 {dimension_numbers = #tpu.dot_dimension_numbers<[1], [0], [0], [1], [0, 0, 1, 1], [], []>} : vector<3x256xbf16>, vector<256x64xbf16>, vector<3x64xf32> -> vector<3x64xf32>
    %c7_55 = arith.constant 7 : index
    %c0_56 = arith.constant 0 : index
    %c0_57 = arith.constant 0 : index
    %63 = vector.load %arg2[%c7_55, %c0_56, %c0_57] : memref<9x16x3xbf16, #tpu.memory_space<vmem>>, vector<1x16x3xbf16>
    %64 = vector.shape_cast %63 : vector<1x16x3xbf16> to vector<16x3xbf16>
    %65 = arith.truncf %62 : vector<3x64xf32> to vector<3x64xbf16>
    %cst_58 = arith.constant dense<0.000000e+00> : vector<16x64xf32>
    %66 = tpu.matmul %64, %65, %cst_58 {dimension_numbers = #tpu.dot_dimension_numbers<[1], [0], [0], [1], [0, 0, 1, 1], [], []>} : vector<16x3xbf16>, vector<3x64xbf16>, vector<16x64xf32> -> vector<16x64xf32>
    %67 = arith.addf %59, %66 : vector<16x64xf32>
    %c8 = arith.constant 8 : index
    %c0_59 = arith.constant 0 : index
    %c0_60 = arith.constant 0 : index
    %68 = vector.load %arg3[%c8, %c0_59, %c0_60] : memref<9x256x64xbf16, #tpu.memory_space<vmem>>, vector<1x256x64xbf16>
    %69 = vector.shape_cast %68 : vector<1x256x64xbf16> to vector<256x64xbf16>
    %cst_61 = arith.constant dense<0.000000e+00> : vector<3x64xf32>
    %70 = tpu.matmul %2, %69, %cst_61 {dimension_numbers = #tpu.dot_dimension_numbers<[1], [0], [0], [1], [0, 0, 1, 1], [], []>} : vector<3x256xbf16>, vector<256x64xbf16>, vector<3x64xf32> -> vector<3x64xf32>
    %c8_62 = arith.constant 8 : index
    %c0_63 = arith.constant 0 : index
    %c0_64 = arith.constant 0 : index
    %71 = vector.load %arg2[%c8_62, %c0_63, %c0_64] : memref<9x16x3xbf16, #tpu.memory_space<vmem>>, vector<1x16x3xbf16>
    %72 = vector.shape_cast %71 : vector<1x16x3xbf16> to vector<16x3xbf16>
    %73 = arith.truncf %70 : vector<3x64xf32> to vector<3x64xbf16>
    %cst_65 = arith.constant dense<0.000000e+00> : vector<16x64xf32>
    %74 = tpu.matmul %72, %73, %cst_65 {dimension_numbers = #tpu.dot_dimension_numbers<[1], [0], [0], [1], [0, 0, 1, 1], [], []>} : vector<16x3xbf16>, vector<3x64xbf16>, vector<16x64xf32> -> vector<16x64xf32>
    %75 = arith.addf %67, %74 : vector<16x64xf32>
    %c0_66 = arith.constant 0 : index
    %c0_67 = arith.constant 0 : index
    %76 = vector.load %arg4[%c0_66, %c0_67] : memref<16x1xf32, #tpu.memory_space<vmem>>, vector<16x1xf32>
    %77 = vector.broadcast %76 : vector<16x1xf32> to vector<16x64xf32>
    %78 = arith.addf %75, %77 : vector<16x64xf32>
    %cst_68 = arith.constant 0.000000e+00 : f32
    %79 = vector.broadcast %cst_68 : f32 to vector<16x64xf32>
    %80 = arith.maximumf %78, %79 : vector<16x64xf32>
    %81 = arith.truncf %80 : vector<16x64xf32> to vector<16x64xbf16>
    %cst_69 = arith.constant 0.000000e+00 : f32
    %82 = vector.broadcast %cst_69 : f32 to vector<32x16xf32>
    %c0_70 = arith.constant 0 : index
    %c0_71 = arith.constant 0 : index
    %c0_72 = arith.constant 0 : index
    %83 = vector.load %arg6[%c0_70, %c0_71, %c0_72] : memref<9x64x16xbf16, #tpu.memory_space<vmem>>, vector<1x64x16xbf16>
    %84 = vector.shape_cast %83 : vector<1x64x16xbf16> to vector<64x16xbf16>
    %cst_73 = arith.constant dense<0.000000e+00> : vector<16x16xf32>
    %85 = tpu.matmul %81, %84, %cst_73 {dimension_numbers = #tpu.dot_dimension_numbers<[1], [0], [0], [1], [0, 0, 1, 1], [], []>} : vector<16x64xbf16>, vector<64x16xbf16>, vector<16x16xf32> -> vector<16x16xf32>
    %c0_74 = arith.constant 0 : index
    %c0_75 = arith.constant 0 : index
    %c0_76 = arith.constant 0 : index
    %86 = vector.load %arg5[%c0_74, %c0_75, %c0_76] : memref<9x32x16xbf16, #tpu.memory_space<vmem>>, vector<1x32x16xbf16>
    %87 = vector.shape_cast %86 : vector<1x32x16xbf16> to vector<32x16xbf16>
    %88 = arith.truncf %85 : vector<16x16xf32> to vector<16x16xbf16>
    %cst_77 = arith.constant dense<0.000000e+00> : vector<32x16xf32>
    %89 = tpu.matmul %87, %88, %cst_77 {dimension_numbers = #tpu.dot_dimension_numbers<[1], [0], [0], [1], [0, 0, 1, 1], [], []>} : vector<32x16xbf16>, vector<16x16xbf16>, vector<32x16xf32> -> vector<32x16xf32>
    %90 = arith.addf %82, %89 : vector<32x16xf32>
    %c1_78 = arith.constant 1 : index
    %c0_79 = arith.constant 0 : index
    %c0_80 = arith.constant 0 : index
    %91 = vector.load %arg6[%c1_78, %c0_79, %c0_80] : memref<9x64x16xbf16, #tpu.memory_space<vmem>>, vector<1x64x16xbf16>
    %92 = vector.shape_cast %91 : vector<1x64x16xbf16> to vector<64x16xbf16>
    %cst_81 = arith.constant dense<0.000000e+00> : vector<16x16xf32>
    %93 = tpu.matmul %81, %92, %cst_81 {dimension_numbers = #tpu.dot_dimension_numbers<[1], [0], [0], [1], [0, 0, 1, 1], [], []>} : vector<16x64xbf16>, vector<64x16xbf16>, vector<16x16xf32> -> vector<16x16xf32>
    %c1_82 = arith.constant 1 : index
    %c0_83 = arith.constant 0 : index
    %c0_84 = arith.constant 0 : index
    %94 = vector.load %arg5[%c1_82, %c0_83, %c0_84] : memref<9x32x16xbf16, #tpu.memory_space<vmem>>, vector<1x32x16xbf16>
    %95 = vector.shape_cast %94 : vector<1x32x16xbf16> to vector<32x16xbf16>
    %96 = arith.truncf %93 : vector<16x16xf32> to vector<16x16xbf16>
    %cst_85 = arith.constant dense<0.000000e+00> : vector<32x16xf32>
    %97 = tpu.matmul %95, %96, %cst_85 {dimension_numbers = #tpu.dot_dimension_numbers<[1], [0], [0], [1], [0, 0, 1, 1], [], []>} : vector<32x16xbf16>, vector<16x16xbf16>, vector<32x16xf32> -> vector<32x16xf32>
    %98 = arith.addf %90, %97 : vector<32x16xf32>
    %c2_86 = arith.constant 2 : index
    %c0_87 = arith.constant 0 : index
    %c0_88 = arith.constant 0 : index
    %99 = vector.load %arg6[%c2_86, %c0_87, %c0_88] : memref<9x64x16xbf16, #tpu.memory_space<vmem>>, vector<1x64x16xbf16>
    %100 = vector.shape_cast %99 : vector<1x64x16xbf16> to vector<64x16xbf16>
    %cst_89 = arith.constant dense<0.000000e+00> : vector<16x16xf32>
    %101 = tpu.matmul %81, %100, %cst_89 {dimension_numbers = #tpu.dot_dimension_numbers<[1], [0], [0], [1], [0, 0, 1, 1], [], []>} : vector<16x64xbf16>, vector<64x16xbf16>, vector<16x16xf32> -> vector<16x16xf32>
    %c2_90 = arith.constant 2 : index
    %c0_91 = arith.constant 0 : index
    %c0_92 = arith.constant 0 : index
    %102 = vector.load %arg5[%c2_90, %c0_91, %c0_92] : memref<9x32x16xbf16, #tpu.memory_space<vmem>>, vector<1x32x16xbf16>
    %103 = vector.shape_cast %102 : vector<1x32x16xbf16> to vector<32x16xbf16>
    %104 = arith.truncf %101 : vector<16x16xf32> to vector<16x16xbf16>
    %cst_93 = arith.constant dense<0.000000e+00> : vector<32x16xf32>
    %105 = tpu.matmul %103, %104, %cst_93 {dimension_numbers = #tpu.dot_dimension_numbers<[1], [0], [0], [1], [0, 0, 1, 1], [], []>} : vector<32x16xbf16>, vector<16x16xbf16>, vector<32x16xf32> -> vector<32x16xf32>
    %106 = arith.addf %98, %105 : vector<32x16xf32>
    %c3_94 = arith.constant 3 : index
    %c0_95 = arith.constant 0 : index
    %c0_96 = arith.constant 0 : index
    %107 = vector.load %arg6[%c3_94, %c0_95, %c0_96] : memref<9x64x16xbf16, #tpu.memory_space<vmem>>, vector<1x64x16xbf16>
    %108 = vector.shape_cast %107 : vector<1x64x16xbf16> to vector<64x16xbf16>
    %cst_97 = arith.constant dense<0.000000e+00> : vector<16x16xf32>
    %109 = tpu.matmul %81, %108, %cst_97 {dimension_numbers = #tpu.dot_dimension_numbers<[1], [0], [0], [1], [0, 0, 1, 1], [], []>} : vector<16x64xbf16>, vector<64x16xbf16>, vector<16x16xf32> -> vector<16x16xf32>
    %c3_98 = arith.constant 3 : index
    %c0_99 = arith.constant 0 : index
    %c0_100 = arith.constant 0 : index
    %110 = vector.load %arg5[%c3_98, %c0_99, %c0_100] : memref<9x32x16xbf16, #tpu.memory_space<vmem>>, vector<1x32x16xbf16>
    %111 = vector.shape_cast %110 : vector<1x32x16xbf16> to vector<32x16xbf16>
    %112 = arith.truncf %109 : vector<16x16xf32> to vector<16x16xbf16>
    %cst_101 = arith.constant dense<0.000000e+00> : vector<32x16xf32>
    %113 = tpu.matmul %111, %112, %cst_101 {dimension_numbers = #tpu.dot_dimension_numbers<[1], [0], [0], [1], [0, 0, 1, 1], [], []>} : vector<32x16xbf16>, vector<16x16xbf16>, vector<32x16xf32> -> vector<32x16xf32>
    %114 = arith.addf %106, %113 : vector<32x16xf32>
    %c4_102 = arith.constant 4 : index
    %c0_103 = arith.constant 0 : index
    %c0_104 = arith.constant 0 : index
    %115 = vector.load %arg6[%c4_102, %c0_103, %c0_104] : memref<9x64x16xbf16, #tpu.memory_space<vmem>>, vector<1x64x16xbf16>
    %116 = vector.shape_cast %115 : vector<1x64x16xbf16> to vector<64x16xbf16>
    %cst_105 = arith.constant dense<0.000000e+00> : vector<16x16xf32>
    %117 = tpu.matmul %81, %116, %cst_105 {dimension_numbers = #tpu.dot_dimension_numbers<[1], [0], [0], [1], [0, 0, 1, 1], [], []>} : vector<16x64xbf16>, vector<64x16xbf16>, vector<16x16xf32> -> vector<16x16xf32>
    %c4_106 = arith.constant 4 : index
    %c0_107 = arith.constant 0 : index
    %c0_108 = arith.constant 0 : index
    %118 = vector.load %arg5[%c4_106, %c0_107, %c0_108] : memref<9x32x16xbf16, #tpu.memory_space<vmem>>, vector<1x32x16xbf16>
    %119 = vector.shape_cast %118 : vector<1x32x16xbf16> to vector<32x16xbf16>
    %120 = arith.truncf %117 : vector<16x16xf32> to vector<16x16xbf16>
    %cst_109 = arith.constant dense<0.000000e+00> : vector<32x16xf32>
    %121 = tpu.matmul %119, %120, %cst_109 {dimension_numbers = #tpu.dot_dimension_numbers<[1], [0], [0], [1], [0, 0, 1, 1], [], []>} : vector<32x16xbf16>, vector<16x16xbf16>, vector<32x16xf32> -> vector<32x16xf32>
    %122 = arith.addf %114, %121 : vector<32x16xf32>
    %c5_110 = arith.constant 5 : index
    %c0_111 = arith.constant 0 : index
    %c0_112 = arith.constant 0 : index
    %123 = vector.load %arg6[%c5_110, %c0_111, %c0_112] : memref<9x64x16xbf16, #tpu.memory_space<vmem>>, vector<1x64x16xbf16>
    %124 = vector.shape_cast %123 : vector<1x64x16xbf16> to vector<64x16xbf16>
    %cst_113 = arith.constant dense<0.000000e+00> : vector<16x16xf32>
    %125 = tpu.matmul %81, %124, %cst_113 {dimension_numbers = #tpu.dot_dimension_numbers<[1], [0], [0], [1], [0, 0, 1, 1], [], []>} : vector<16x64xbf16>, vector<64x16xbf16>, vector<16x16xf32> -> vector<16x16xf32>
    %c5_114 = arith.constant 5 : index
    %c0_115 = arith.constant 0 : index
    %c0_116 = arith.constant 0 : index
    %126 = vector.load %arg5[%c5_114, %c0_115, %c0_116] : memref<9x32x16xbf16, #tpu.memory_space<vmem>>, vector<1x32x16xbf16>
    %127 = vector.shape_cast %126 : vector<1x32x16xbf16> to vector<32x16xbf16>
    %128 = arith.truncf %125 : vector<16x16xf32> to vector<16x16xbf16>
    %cst_117 = arith.constant dense<0.000000e+00> : vector<32x16xf32>
    %129 = tpu.matmul %127, %128, %cst_117 {dimension_numbers = #tpu.dot_dimension_numbers<[1], [0], [0], [1], [0, 0, 1, 1], [], []>} : vector<32x16xbf16>, vector<16x16xbf16>, vector<32x16xf32> -> vector<32x16xf32>
    %130 = arith.addf %122, %129 : vector<32x16xf32>
    %c6_118 = arith.constant 6 : index
    %c0_119 = arith.constant 0 : index
    %c0_120 = arith.constant 0 : index
    %131 = vector.load %arg6[%c6_118, %c0_119, %c0_120] : memref<9x64x16xbf16, #tpu.memory_space<vmem>>, vector<1x64x16xbf16>
    %132 = vector.shape_cast %131 : vector<1x64x16xbf16> to vector<64x16xbf16>
    %cst_121 = arith.constant dense<0.000000e+00> : vector<16x16xf32>
    %133 = tpu.matmul %81, %132, %cst_121 {dimension_numbers = #tpu.dot_dimension_numbers<[1], [0], [0], [1], [0, 0, 1, 1], [], []>} : vector<16x64xbf16>, vector<64x16xbf16>, vector<16x16xf32> -> vector<16x16xf32>
    %c6_122 = arith.constant 6 : index
    %c0_123 = arith.constant 0 : index
    %c0_124 = arith.constant 0 : index
    %134 = vector.load %arg5[%c6_122, %c0_123, %c0_124] : memref<9x32x16xbf16, #tpu.memory_space<vmem>>, vector<1x32x16xbf16>
    %135 = vector.shape_cast %134 : vector<1x32x16xbf16> to vector<32x16xbf16>
    %136 = arith.truncf %133 : vector<16x16xf32> to vector<16x16xbf16>
    %cst_125 = arith.constant dense<0.000000e+00> : vector<32x16xf32>
    %137 = tpu.matmul %135, %136, %cst_125 {dimension_numbers = #tpu.dot_dimension_numbers<[1], [0], [0], [1], [0, 0, 1, 1], [], []>} : vector<32x16xbf16>, vector<16x16xbf16>, vector<32x16xf32> -> vector<32x16xf32>
    %138 = arith.addf %130, %137 : vector<32x16xf32>
    %c7_126 = arith.constant 7 : index
    %c0_127 = arith.constant 0 : index
    %c0_128 = arith.constant 0 : index
    %139 = vector.load %arg6[%c7_126, %c0_127, %c0_128] : memref<9x64x16xbf16, #tpu.memory_space<vmem>>, vector<1x64x16xbf16>
    %140 = vector.shape_cast %139 : vector<1x64x16xbf16> to vector<64x16xbf16>
    %cst_129 = arith.constant dense<0.000000e+00> : vector<16x16xf32>
    %141 = tpu.matmul %81, %140, %cst_129 {dimension_numbers = #tpu.dot_dimension_numbers<[1], [0], [0], [1], [0, 0, 1, 1], [], []>} : vector<16x64xbf16>, vector<64x16xbf16>, vector<16x16xf32> -> vector<16x16xf32>
    %c7_130 = arith.constant 7 : index
    %c0_131 = arith.constant 0 : index
    %c0_132 = arith.constant 0 : index
    %142 = vector.load %arg5[%c7_130, %c0_131, %c0_132] : memref<9x32x16xbf16, #tpu.memory_space<vmem>>, vector<1x32x16xbf16>
    %143 = vector.shape_cast %142 : vector<1x32x16xbf16> to vector<32x16xbf16>
    %144 = arith.truncf %141 : vector<16x16xf32> to vector<16x16xbf16>
    %cst_133 = arith.constant dense<0.000000e+00> : vector<32x16xf32>
    %145 = tpu.matmul %143, %144, %cst_133 {dimension_numbers = #tpu.dot_dimension_numbers<[1], [0], [0], [1], [0, 0, 1, 1], [], []>} : vector<32x16xbf16>, vector<16x16xbf16>, vector<32x16xf32> -> vector<32x16xf32>
    %146 = arith.addf %138, %145 : vector<32x16xf32>
    %c8_134 = arith.constant 8 : index
    %c0_135 = arith.constant 0 : index
    %c0_136 = arith.constant 0 : index
    %147 = vector.load %arg6[%c8_134, %c0_135, %c0_136] : memref<9x64x16xbf16, #tpu.memory_space<vmem>>, vector<1x64x16xbf16>
    %148 = vector.shape_cast %147 : vector<1x64x16xbf16> to vector<64x16xbf16>
    %cst_137 = arith.constant dense<0.000000e+00> : vector<16x16xf32>
    %149 = tpu.matmul %81, %148, %cst_137 {dimension_numbers = #tpu.dot_dimension_numbers<[1], [0], [0], [1], [0, 0, 1, 1], [], []>} : vector<16x64xbf16>, vector<64x16xbf16>, vector<16x16xf32> -> vector<16x16xf32>
    %c8_138 = arith.constant 8 : index
    %c0_139 = arith.constant 0 : index
    %c0_140 = arith.constant 0 : index
    %150 = vector.load %arg5[%c8_138, %c0_139, %c0_140] : memref<9x32x16xbf16, #tpu.memory_space<vmem>>, vector<1x32x16xbf16>
    %151 = vector.shape_cast %150 : vector<1x32x16xbf16> to vector<32x16xbf16>
    %152 = arith.truncf %149 : vector<16x16xf32> to vector<16x16xbf16>
    %cst_141 = arith.constant dense<0.000000e+00> : vector<32x16xf32>
    %153 = tpu.matmul %151, %152, %cst_141 {dimension_numbers = #tpu.dot_dimension_numbers<[1], [0], [0], [1], [0, 0, 1, 1], [], []>} : vector<32x16xbf16>, vector<16x16xbf16>, vector<32x16xf32> -> vector<32x16xf32>
    %154 = arith.addf %146, %153 : vector<32x16xf32>
    %c0_142 = arith.constant 0 : index
    %c0_143 = arith.constant 0 : index
    %155 = vector.load %arg7[%c0_142, %c0_143] : memref<32x1xf32, #tpu.memory_space<vmem>>, vector<32x1xf32>
    %156 = vector.broadcast %155 : vector<32x1xf32> to vector<32x16xf32>
    %157 = arith.addf %154, %156 : vector<32x16xf32>
    %cst_144 = arith.constant 0.000000e+00 : f32
    %158 = vector.broadcast %cst_144 : f32 to vector<32x16xf32>
    %159 = arith.maximumf %157, %158 : vector<32x16xf32>
    %160 = arith.truncf %159 : vector<32x16xf32> to vector<32x16xbf16>
    %cst_145 = arith.constant 0.000000e+00 : f32
    %161 = vector.broadcast %cst_145 : f32 to vector<64x4xf32>
    %c0_146 = arith.constant 0 : index
    %c0_147 = arith.constant 0 : index
    %c0_148 = arith.constant 0 : index
    %162 = vector.load %arg9[%c0_146, %c0_147, %c0_148] : memref<9x16x4xbf16, #tpu.memory_space<vmem>>, vector<1x16x4xbf16>
    %163 = vector.shape_cast %162 : vector<1x16x4xbf16> to vector<16x4xbf16>
    %cst_149 = arith.constant dense<0.000000e+00> : vector<32x4xf32>
    %164 = tpu.matmul %160, %163, %cst_149 {dimension_numbers = #tpu.dot_dimension_numbers<[1], [0], [0], [1], [0, 0, 1, 1], [], []>} : vector<32x16xbf16>, vector<16x4xbf16>, vector<32x4xf32> -> vector<32x4xf32>
    %c0_150 = arith.constant 0 : index
    %c0_151 = arith.constant 0 : index
    %c0_152 = arith.constant 0 : index
    %165 = vector.load %arg8[%c0_150, %c0_151, %c0_152] : memref<9x64x32xbf16, #tpu.memory_space<vmem>>, vector<1x64x32xbf16>
    %166 = vector.shape_cast %165 : vector<1x64x32xbf16> to vector<64x32xbf16>
    %167 = arith.truncf %164 : vector<32x4xf32> to vector<32x4xbf16>
    %cst_153 = arith.constant dense<0.000000e+00> : vector<64x4xf32>
    %168 = tpu.matmul %166, %167, %cst_153 {dimension_numbers = #tpu.dot_dimension_numbers<[1], [0], [0], [1], [0, 0, 1, 1], [], []>} : vector<64x32xbf16>, vector<32x4xbf16>, vector<64x4xf32> -> vector<64x4xf32>
    %169 = arith.addf %161, %168 : vector<64x4xf32>
    %c1_154 = arith.constant 1 : index
    %c0_155 = arith.constant 0 : index
    %c0_156 = arith.constant 0 : index
    %170 = vector.load %arg9[%c1_154, %c0_155, %c0_156] : memref<9x16x4xbf16, #tpu.memory_space<vmem>>, vector<1x16x4xbf16>
    %171 = vector.shape_cast %170 : vector<1x16x4xbf16> to vector<16x4xbf16>
    %cst_157 = arith.constant dense<0.000000e+00> : vector<32x4xf32>
    %172 = tpu.matmul %160, %171, %cst_157 {dimension_numbers = #tpu.dot_dimension_numbers<[1], [0], [0], [1], [0, 0, 1, 1], [], []>} : vector<32x16xbf16>, vector<16x4xbf16>, vector<32x4xf32> -> vector<32x4xf32>
    %c1_158 = arith.constant 1 : index
    %c0_159 = arith.constant 0 : index
    %c0_160 = arith.constant 0 : index
    %173 = vector.load %arg8[%c1_158, %c0_159, %c0_160] : memref<9x64x32xbf16, #tpu.memory_space<vmem>>, vector<1x64x32xbf16>
    %174 = vector.shape_cast %173 : vector<1x64x32xbf16> to vector<64x32xbf16>
    %175 = arith.truncf %172 : vector<32x4xf32> to vector<32x4xbf16>
    %cst_161 = arith.constant dense<0.000000e+00> : vector<64x4xf32>
    %176 = tpu.matmul %174, %175, %cst_161 {dimension_numbers = #tpu.dot_dimension_numbers<[1], [0], [0], [1], [0, 0, 1, 1], [], []>} : vector<64x32xbf16>, vector<32x4xbf16>, vector<64x4xf32> -> vector<64x4xf32>
    %177 = arith.addf %169, %176 : vector<64x4xf32>
    %c2_162 = arith.constant 2 : index
    %c0_163 = arith.constant 0 : index
    %c0_164 = arith.constant 0 : index
    %178 = vector.load %arg9[%c2_162, %c0_163, %c0_164] : memref<9x16x4xbf16, #tpu.memory_space<vmem>>, vector<1x16x4xbf16>
    %179 = vector.shape_cast %178 : vector<1x16x4xbf16> to vector<16x4xbf16>
    %cst_165 = arith.constant dense<0.000000e+00> : vector<32x4xf32>
    %180 = tpu.matmul %160, %179, %cst_165 {dimension_numbers = #tpu.dot_dimension_numbers<[1], [0], [0], [1], [0, 0, 1, 1], [], []>} : vector<32x16xbf16>, vector<16x4xbf16>, vector<32x4xf32> -> vector<32x4xf32>
    %c2_166 = arith.constant 2 : index
    %c0_167 = arith.constant 0 : index
    %c0_168 = arith.constant 0 : index
    %181 = vector.load %arg8[%c2_166, %c0_167, %c0_168] : memref<9x64x32xbf16, #tpu.memory_space<vmem>>, vector<1x64x32xbf16>
    %182 = vector.shape_cast %181 : vector<1x64x32xbf16> to vector<64x32xbf16>
    %183 = arith.truncf %180 : vector<32x4xf32> to vector<32x4xbf16>
    %cst_169 = arith.constant dense<0.000000e+00> : vector<64x4xf32>
    %184 = tpu.matmul %182, %183, %cst_169 {dimension_numbers = #tpu.dot_dimension_numbers<[1], [0], [0], [1], [0, 0, 1, 1], [], []>} : vector<64x32xbf16>, vector<32x4xbf16>, vector<64x4xf32> -> vector<64x4xf32>
    %185 = arith.addf %177, %184 : vector<64x4xf32>
    %c3_170 = arith.constant 3 : index
    %c0_171 = arith.constant 0 : index
    %c0_172 = arith.constant 0 : index
    %186 = vector.load %arg9[%c3_170, %c0_171, %c0_172] : memref<9x16x4xbf16, #tpu.memory_space<vmem>>, vector<1x16x4xbf16>
    %187 = vector.shape_cast %186 : vector<1x16x4xbf16> to vector<16x4xbf16>
    %cst_173 = arith.constant dense<0.000000e+00> : vector<32x4xf32>
    %188 = tpu.matmul %160, %187, %cst_173 {dimension_numbers = #tpu.dot_dimension_numbers<[1], [0], [0], [1], [0, 0, 1, 1], [], []>} : vector<32x16xbf16>, vector<16x4xbf16>, vector<32x4xf32> -> vector<32x4xf32>
    %c3_174 = arith.constant 3 : index
    %c0_175 = arith.constant 0 : index
    %c0_176 = arith.constant 0 : index
    %189 = vector.load %arg8[%c3_174, %c0_175, %c0_176] : memref<9x64x32xbf16, #tpu.memory_space<vmem>>, vector<1x64x32xbf16>
    %190 = vector.shape_cast %189 : vector<1x64x32xbf16> to vector<64x32xbf16>
    %191 = arith.truncf %188 : vector<32x4xf32> to vector<32x4xbf16>
    %cst_177 = arith.constant dense<0.000000e+00> : vector<64x4xf32>
    %192 = tpu.matmul %190, %191, %cst_177 {dimension_numbers = #tpu.dot_dimension_numbers<[1], [0], [0], [1], [0, 0, 1, 1], [], []>} : vector<64x32xbf16>, vector<32x4xbf16>, vector<64x4xf32> -> vector<64x4xf32>
    %193 = arith.addf %185, %192 : vector<64x4xf32>
    %c4_178 = arith.constant 4 : index
    %c0_179 = arith.constant 0 : index
    %c0_180 = arith.constant 0 : index
    %194 = vector.load %arg9[%c4_178, %c0_179, %c0_180] : memref<9x16x4xbf16, #tpu.memory_space<vmem>>, vector<1x16x4xbf16>
    %195 = vector.shape_cast %194 : vector<1x16x4xbf16> to vector<16x4xbf16>
    %cst_181 = arith.constant dense<0.000000e+00> : vector<32x4xf32>
    %196 = tpu.matmul %160, %195, %cst_181 {dimension_numbers = #tpu.dot_dimension_numbers<[1], [0], [0], [1], [0, 0, 1, 1], [], []>} : vector<32x16xbf16>, vector<16x4xbf16>, vector<32x4xf32> -> vector<32x4xf32>
    %c4_182 = arith.constant 4 : index
    %c0_183 = arith.constant 0 : index
    %c0_184 = arith.constant 0 : index
    %197 = vector.load %arg8[%c4_182, %c0_183, %c0_184] : memref<9x64x32xbf16, #tpu.memory_space<vmem>>, vector<1x64x32xbf16>
    %198 = vector.shape_cast %197 : vector<1x64x32xbf16> to vector<64x32xbf16>
    %199 = arith.truncf %196 : vector<32x4xf32> to vector<32x4xbf16>
    %cst_185 = arith.constant dense<0.000000e+00> : vector<64x4xf32>
    %200 = tpu.matmul %198, %199, %cst_185 {dimension_numbers = #tpu.dot_dimension_numbers<[1], [0], [0], [1], [0, 0, 1, 1], [], []>} : vector<64x32xbf16>, vector<32x4xbf16>, vector<64x4xf32> -> vector<64x4xf32>
    %201 = arith.addf %193, %200 : vector<64x4xf32>
    %c5_186 = arith.constant 5 : index
    %c0_187 = arith.constant 0 : index
    %c0_188 = arith.constant 0 : index
    %202 = vector.load %arg9[%c5_186, %c0_187, %c0_188] : memref<9x16x4xbf16, #tpu.memory_space<vmem>>, vector<1x16x4xbf16>
    %203 = vector.shape_cast %202 : vector<1x16x4xbf16> to vector<16x4xbf16>
    %cst_189 = arith.constant dense<0.000000e+00> : vector<32x4xf32>
    %204 = tpu.matmul %160, %203, %cst_189 {dimension_numbers = #tpu.dot_dimension_numbers<[1], [0], [0], [1], [0, 0, 1, 1], [], []>} : vector<32x16xbf16>, vector<16x4xbf16>, vector<32x4xf32> -> vector<32x4xf32>
    %c5_190 = arith.constant 5 : index
    %c0_191 = arith.constant 0 : index
    %c0_192 = arith.constant 0 : index
    %205 = vector.load %arg8[%c5_190, %c0_191, %c0_192] : memref<9x64x32xbf16, #tpu.memory_space<vmem>>, vector<1x64x32xbf16>
    %206 = vector.shape_cast %205 : vector<1x64x32xbf16> to vector<64x32xbf16>
    %207 = arith.truncf %204 : vector<32x4xf32> to vector<32x4xbf16>
    %cst_193 = arith.constant dense<0.000000e+00> : vector<64x4xf32>
    %208 = tpu.matmul %206, %207, %cst_193 {dimension_numbers = #tpu.dot_dimension_numbers<[1], [0], [0], [1], [0, 0, 1, 1], [], []>} : vector<64x32xbf16>, vector<32x4xbf16>, vector<64x4xf32> -> vector<64x4xf32>
    %209 = arith.addf %201, %208 : vector<64x4xf32>
    %c6_194 = arith.constant 6 : index
    %c0_195 = arith.constant 0 : index
    %c0_196 = arith.constant 0 : index
    %210 = vector.load %arg9[%c6_194, %c0_195, %c0_196] : memref<9x16x4xbf16, #tpu.memory_space<vmem>>, vector<1x16x4xbf16>
    %211 = vector.shape_cast %210 : vector<1x16x4xbf16> to vector<16x4xbf16>
    %cst_197 = arith.constant dense<0.000000e+00> : vector<32x4xf32>
    %212 = tpu.matmul %160, %211, %cst_197 {dimension_numbers = #tpu.dot_dimension_numbers<[1], [0], [0], [1], [0, 0, 1, 1], [], []>} : vector<32x16xbf16>, vector<16x4xbf16>, vector<32x4xf32> -> vector<32x4xf32>
    %c6_198 = arith.constant 6 : index
    %c0_199 = arith.constant 0 : index
    %c0_200 = arith.constant 0 : index
    %213 = vector.load %arg8[%c6_198, %c0_199, %c0_200] : memref<9x64x32xbf16, #tpu.memory_space<vmem>>, vector<1x64x32xbf16>
    %214 = vector.shape_cast %213 : vector<1x64x32xbf16> to vector<64x32xbf16>
    %215 = arith.truncf %212 : vector<32x4xf32> to vector<32x4xbf16>
    %cst_201 = arith.constant dense<0.000000e+00> : vector<64x4xf32>
    %216 = tpu.matmul %214, %215, %cst_201 {dimension_numbers = #tpu.dot_dimension_numbers<[1], [0], [0], [1], [0, 0, 1, 1], [], []>} : vector<64x32xbf16>, vector<32x4xbf16>, vector<64x4xf32> -> vector<64x4xf32>
    %217 = arith.addf %209, %216 : vector<64x4xf32>
    %c7_202 = arith.constant 7 : index
    %c0_203 = arith.constant 0 : index
    %c0_204 = arith.constant 0 : index
    %218 = vector.load %arg9[%c7_202, %c0_203, %c0_204] : memref<9x16x4xbf16, #tpu.memory_space<vmem>>, vector<1x16x4xbf16>
    %219 = vector.shape_cast %218 : vector<1x16x4xbf16> to vector<16x4xbf16>
    %cst_205 = arith.constant dense<0.000000e+00> : vector<32x4xf32>
    %220 = tpu.matmul %160, %219, %cst_205 {dimension_numbers = #tpu.dot_dimension_numbers<[1], [0], [0], [1], [0, 0, 1, 1], [], []>} : vector<32x16xbf16>, vector<16x4xbf16>, vector<32x4xf32> -> vector<32x4xf32>
    %c7_206 = arith.constant 7 : index
    %c0_207 = arith.constant 0 : index
    %c0_208 = arith.constant 0 : index
    %221 = vector.load %arg8[%c7_206, %c0_207, %c0_208] : memref<9x64x32xbf16, #tpu.memory_space<vmem>>, vector<1x64x32xbf16>
    %222 = vector.shape_cast %221 : vector<1x64x32xbf16> to vector<64x32xbf16>
    %223 = arith.truncf %220 : vector<32x4xf32> to vector<32x4xbf16>
    %cst_209 = arith.constant dense<0.000000e+00> : vector<64x4xf32>
    %224 = tpu.matmul %222, %223, %cst_209 {dimension_numbers = #tpu.dot_dimension_numbers<[1], [0], [0], [1], [0, 0, 1, 1], [], []>} : vector<64x32xbf16>, vector<32x4xbf16>, vector<64x4xf32> -> vector<64x4xf32>
    %225 = arith.addf %217, %224 : vector<64x4xf32>
    %c8_210 = arith.constant 8 : index
    %c0_211 = arith.constant 0 : index
    %c0_212 = arith.constant 0 : index
    %226 = vector.load %arg9[%c8_210, %c0_211, %c0_212] : memref<9x16x4xbf16, #tpu.memory_space<vmem>>, vector<1x16x4xbf16>
    %227 = vector.shape_cast %226 : vector<1x16x4xbf16> to vector<16x4xbf16>
    %cst_213 = arith.constant dense<0.000000e+00> : vector<32x4xf32>
    %228 = tpu.matmul %160, %227, %cst_213 {dimension_numbers = #tpu.dot_dimension_numbers<[1], [0], [0], [1], [0, 0, 1, 1], [], []>} : vector<32x16xbf16>, vector<16x4xbf16>, vector<32x4xf32> -> vector<32x4xf32>
    %c8_214 = arith.constant 8 : index
    %c0_215 = arith.constant 0 : index
    %c0_216 = arith.constant 0 : index
    %229 = vector.load %arg8[%c8_214, %c0_215, %c0_216] : memref<9x64x32xbf16, #tpu.memory_space<vmem>>, vector<1x64x32xbf16>
    %230 = vector.shape_cast %229 : vector<1x64x32xbf16> to vector<64x32xbf16>
    %231 = arith.truncf %228 : vector<32x4xf32> to vector<32x4xbf16>
    %cst_217 = arith.constant dense<0.000000e+00> : vector<64x4xf32>
    %232 = tpu.matmul %230, %231, %cst_217 {dimension_numbers = #tpu.dot_dimension_numbers<[1], [0], [0], [1], [0, 0, 1, 1], [], []>} : vector<64x32xbf16>, vector<32x4xbf16>, vector<64x4xf32> -> vector<64x4xf32>
    %233 = arith.addf %225, %232 : vector<64x4xf32>
    %c0_218 = arith.constant 0 : index
    %c0_219 = arith.constant 0 : index
    %234 = vector.load %arg10[%c0_218, %c0_219] : memref<64x1xf32, #tpu.memory_space<vmem>>, vector<64x1xf32>
    %235 = vector.broadcast %234 : vector<64x1xf32> to vector<64x4xf32>
    %236 = arith.addf %233, %235 : vector<64x4xf32>
    %cst_220 = arith.constant 0.000000e+00 : f32
    %237 = vector.broadcast %cst_220 : f32 to vector<64x4xf32>
    %238 = arith.maximumf %236, %237 : vector<64x4xf32>
    %239 = arith.truncf %238 : vector<64x4xf32> to vector<64x4xbf16>
    %cst_221 = arith.constant 0.000000e+00 : f32
    %240 = vector.broadcast %cst_221 : f32 to vector<32x16xf32>
    %c0_222 = arith.constant 0 : index
    %c0_223 = arith.constant 0 : index
    %c0_224 = arith.constant 0 : index
    %241 = vector.load %arg12[%c0_222, %c0_223, %c0_224] : memref<9x4x16xbf16, #tpu.memory_space<vmem>>, vector<1x4x16xbf16>
    %242 = vector.shape_cast %241 : vector<1x4x16xbf16> to vector<4x16xbf16>
    %cst_225 = arith.constant dense<0.000000e+00> : vector<64x16xf32>
    %243 = tpu.matmul %239, %242, %cst_225 {dimension_numbers = #tpu.dot_dimension_numbers<[1], [0], [0], [1], [0, 0, 1, 1], [], []>} : vector<64x4xbf16>, vector<4x16xbf16>, vector<64x16xf32> -> vector<64x16xf32>
    %c0_226 = arith.constant 0 : index
    %c0_227 = arith.constant 0 : index
    %c0_228 = arith.constant 0 : index
    %244 = vector.load %arg11[%c0_226, %c0_227, %c0_228] : memref<9x32x64xbf16, #tpu.memory_space<vmem>>, vector<1x32x64xbf16>
    %245 = vector.shape_cast %244 : vector<1x32x64xbf16> to vector<32x64xbf16>
    %246 = arith.truncf %243 : vector<64x16xf32> to vector<64x16xbf16>
    %cst_229 = arith.constant dense<0.000000e+00> : vector<32x16xf32>
    %247 = tpu.matmul %245, %246, %cst_229 {dimension_numbers = #tpu.dot_dimension_numbers<[1], [0], [0], [1], [0, 0, 1, 1], [], []>} : vector<32x64xbf16>, vector<64x16xbf16>, vector<32x16xf32> -> vector<32x16xf32>
    %248 = arith.addf %240, %247 : vector<32x16xf32>
    %c1_230 = arith.constant 1 : index
    %c0_231 = arith.constant 0 : index
    %c0_232 = arith.constant 0 : index
    %249 = vector.load %arg12[%c1_230, %c0_231, %c0_232] : memref<9x4x16xbf16, #tpu.memory_space<vmem>>, vector<1x4x16xbf16>
    %250 = vector.shape_cast %249 : vector<1x4x16xbf16> to vector<4x16xbf16>
    %cst_233 = arith.constant dense<0.000000e+00> : vector<64x16xf32>
    %251 = tpu.matmul %239, %250, %cst_233 {dimension_numbers = #tpu.dot_dimension_numbers<[1], [0], [0], [1], [0, 0, 1, 1], [], []>} : vector<64x4xbf16>, vector<4x16xbf16>, vector<64x16xf32> -> vector<64x16xf32>
    %c1_234 = arith.constant 1 : index
    %c0_235 = arith.constant 0 : index
    %c0_236 = arith.constant 0 : index
    %252 = vector.load %arg11[%c1_234, %c0_235, %c0_236] : memref<9x32x64xbf16, #tpu.memory_space<vmem>>, vector<1x32x64xbf16>
    %253 = vector.shape_cast %252 : vector<1x32x64xbf16> to vector<32x64xbf16>
    %254 = arith.truncf %251 : vector<64x16xf32> to vector<64x16xbf16>
    %cst_237 = arith.constant dense<0.000000e+00> : vector<32x16xf32>
    %255 = tpu.matmul %253, %254, %cst_237 {dimension_numbers = #tpu.dot_dimension_numbers<[1], [0], [0], [1], [0, 0, 1, 1], [], []>} : vector<32x64xbf16>, vector<64x16xbf16>, vector<32x16xf32> -> vector<32x16xf32>
    %256 = arith.addf %248, %255 : vector<32x16xf32>
    %c2_238 = arith.constant 2 : index
    %c0_239 = arith.constant 0 : index
    %c0_240 = arith.constant 0 : index
    %257 = vector.load %arg12[%c2_238, %c0_239, %c0_240] : memref<9x4x16xbf16, #tpu.memory_space<vmem>>, vector<1x4x16xbf16>
    %258 = vector.shape_cast %257 : vector<1x4x16xbf16> to vector<4x16xbf16>
    %cst_241 = arith.constant dense<0.000000e+00> : vector<64x16xf32>
    %259 = tpu.matmul %239, %258, %cst_241 {dimension_numbers = #tpu.dot_dimension_numbers<[1], [0], [0], [1], [0, 0, 1, 1], [], []>} : vector<64x4xbf16>, vector<4x16xbf16>, vector<64x16xf32> -> vector<64x16xf32>
    %c2_242 = arith.constant 2 : index
    %c0_243 = arith.constant 0 : index
    %c0_244 = arith.constant 0 : index
    %260 = vector.load %arg11[%c2_242, %c0_243, %c0_244] : memref<9x32x64xbf16, #tpu.memory_space<vmem>>, vector<1x32x64xbf16>
    %261 = vector.shape_cast %260 : vector<1x32x64xbf16> to vector<32x64xbf16>
    %262 = arith.truncf %259 : vector<64x16xf32> to vector<64x16xbf16>
    %cst_245 = arith.constant dense<0.000000e+00> : vector<32x16xf32>
    %263 = tpu.matmul %261, %262, %cst_245 {dimension_numbers = #tpu.dot_dimension_numbers<[1], [0], [0], [1], [0, 0, 1, 1], [], []>} : vector<32x64xbf16>, vector<64x16xbf16>, vector<32x16xf32> -> vector<32x16xf32>
    %264 = arith.addf %256, %263 : vector<32x16xf32>
    %c3_246 = arith.constant 3 : index
    %c0_247 = arith.constant 0 : index
    %c0_248 = arith.constant 0 : index
    %265 = vector.load %arg12[%c3_246, %c0_247, %c0_248] : memref<9x4x16xbf16, #tpu.memory_space<vmem>>, vector<1x4x16xbf16>
    %266 = vector.shape_cast %265 : vector<1x4x16xbf16> to vector<4x16xbf16>
    %cst_249 = arith.constant dense<0.000000e+00> : vector<64x16xf32>
    %267 = tpu.matmul %239, %266, %cst_249 {dimension_numbers = #tpu.dot_dimension_numbers<[1], [0], [0], [1], [0, 0, 1, 1], [], []>} : vector<64x4xbf16>, vector<4x16xbf16>, vector<64x16xf32> -> vector<64x16xf32>
    %c3_250 = arith.constant 3 : index
    %c0_251 = arith.constant 0 : index
    %c0_252 = arith.constant 0 : index
    %268 = vector.load %arg11[%c3_250, %c0_251, %c0_252] : memref<9x32x64xbf16, #tpu.memory_space<vmem>>, vector<1x32x64xbf16>
    %269 = vector.shape_cast %268 : vector<1x32x64xbf16> to vector<32x64xbf16>
    %270 = arith.truncf %267 : vector<64x16xf32> to vector<64x16xbf16>
    %cst_253 = arith.constant dense<0.000000e+00> : vector<32x16xf32>
    %271 = tpu.matmul %269, %270, %cst_253 {dimension_numbers = #tpu.dot_dimension_numbers<[1], [0], [0], [1], [0, 0, 1, 1], [], []>} : vector<32x64xbf16>, vector<64x16xbf16>, vector<32x16xf32> -> vector<32x16xf32>
    %272 = arith.addf %264, %271 : vector<32x16xf32>
    %c4_254 = arith.constant 4 : index
    %c0_255 = arith.constant 0 : index
    %c0_256 = arith.constant 0 : index
    %273 = vector.load %arg12[%c4_254, %c0_255, %c0_256] : memref<9x4x16xbf16, #tpu.memory_space<vmem>>, vector<1x4x16xbf16>
    %274 = vector.shape_cast %273 : vector<1x4x16xbf16> to vector<4x16xbf16>
    %cst_257 = arith.constant dense<0.000000e+00> : vector<64x16xf32>
    %275 = tpu.matmul %239, %274, %cst_257 {dimension_numbers = #tpu.dot_dimension_numbers<[1], [0], [0], [1], [0, 0, 1, 1], [], []>} : vector<64x4xbf16>, vector<4x16xbf16>, vector<64x16xf32> -> vector<64x16xf32>
    %c4_258 = arith.constant 4 : index
    %c0_259 = arith.constant 0 : index
    %c0_260 = arith.constant 0 : index
    %276 = vector.load %arg11[%c4_258, %c0_259, %c0_260] : memref<9x32x64xbf16, #tpu.memory_space<vmem>>, vector<1x32x64xbf16>
    %277 = vector.shape_cast %276 : vector<1x32x64xbf16> to vector<32x64xbf16>
    %278 = arith.truncf %275 : vector<64x16xf32> to vector<64x16xbf16>
    %cst_261 = arith.constant dense<0.000000e+00> : vector<32x16xf32>
    %279 = tpu.matmul %277, %278, %cst_261 {dimension_numbers = #tpu.dot_dimension_numbers<[1], [0], [0], [1], [0, 0, 1, 1], [], []>} : vector<32x64xbf16>, vector<64x16xbf16>, vector<32x16xf32> -> vector<32x16xf32>
    %280 = arith.addf %272, %279 : vector<32x16xf32>
    %c5_262 = arith.constant 5 : index
    %c0_263 = arith.constant 0 : index
    %c0_264 = arith.constant 0 : index
    %281 = vector.load %arg12[%c5_262, %c0_263, %c0_264] : memref<9x4x16xbf16, #tpu.memory_space<vmem>>, vector<1x4x16xbf16>
    %282 = vector.shape_cast %281 : vector<1x4x16xbf16> to vector<4x16xbf16>
    %cst_265 = arith.constant dense<0.000000e+00> : vector<64x16xf32>
    %283 = tpu.matmul %239, %282, %cst_265 {dimension_numbers = #tpu.dot_dimension_numbers<[1], [0], [0], [1], [0, 0, 1, 1], [], []>} : vector<64x4xbf16>, vector<4x16xbf16>, vector<64x16xf32> -> vector<64x16xf32>
    %c5_266 = arith.constant 5 : index
    %c0_267 = arith.constant 0 : index
    %c0_268 = arith.constant 0 : index
    %284 = vector.load %arg11[%c5_266, %c0_267, %c0_268] : memref<9x32x64xbf16, #tpu.memory_space<vmem>>, vector<1x32x64xbf16>
    %285 = vector.shape_cast %284 : vector<1x32x64xbf16> to vector<32x64xbf16>
    %286 = arith.truncf %283 : vector<64x16xf32> to vector<64x16xbf16>
    %cst_269 = arith.constant dense<0.000000e+00> : vector<32x16xf32>
    %287 = tpu.matmul %285, %286, %cst_269 {dimension_numbers = #tpu.dot_dimension_numbers<[1], [0], [0], [1], [0, 0, 1, 1], [], []>} : vector<32x64xbf16>, vector<64x16xbf16>, vector<32x16xf32> -> vector<32x16xf32>
    %288 = arith.addf %280, %287 : vector<32x16xf32>
    %c6_270 = arith.constant 6 : index
    %c0_271 = arith.constant 0 : index
    %c0_272 = arith.constant 0 : index
    %289 = vector.load %arg12[%c6_270, %c0_271, %c0_272] : memref<9x4x16xbf16, #tpu.memory_space<vmem>>, vector<1x4x16xbf16>
    %290 = vector.shape_cast %289 : vector<1x4x16xbf16> to vector<4x16xbf16>
    %cst_273 = arith.constant dense<0.000000e+00> : vector<64x16xf32>
    %291 = tpu.matmul %239, %290, %cst_273 {dimension_numbers = #tpu.dot_dimension_numbers<[1], [0], [0], [1], [0, 0, 1, 1], [], []>} : vector<64x4xbf16>, vector<4x16xbf16>, vector<64x16xf32> -> vector<64x16xf32>
    %c6_274 = arith.constant 6 : index
    %c0_275 = arith.constant 0 : index
    %c0_276 = arith.constant 0 : index
    %292 = vector.load %arg11[%c6_274, %c0_275, %c0_276] : memref<9x32x64xbf16, #tpu.memory_space<vmem>>, vector<1x32x64xbf16>
    %293 = vector.shape_cast %292 : vector<1x32x64xbf16> to vector<32x64xbf16>
    %294 = arith.truncf %291 : vector<64x16xf32> to vector<64x16xbf16>
    %cst_277 = arith.constant dense<0.000000e+00> : vector<32x16xf32>
    %295 = tpu.matmul %293, %294, %cst_277 {dimension_numbers = #tpu.dot_dimension_numbers<[1], [0], [0], [1], [0, 0, 1, 1], [], []>} : vector<32x64xbf16>, vector<64x16xbf16>, vector<32x16xf32> -> vector<32x16xf32>
    %296 = arith.addf %288, %295 : vector<32x16xf32>
    %c7_278 = arith.constant 7 : index
    %c0_279 = arith.constant 0 : index
    %c0_280 = arith.constant 0 : index
    %297 = vector.load %arg12[%c7_278, %c0_279, %c0_280] : memref<9x4x16xbf16, #tpu.memory_space<vmem>>, vector<1x4x16xbf16>
    %298 = vector.shape_cast %297 : vector<1x4x16xbf16> to vector<4x16xbf16>
    %cst_281 = arith.constant dense<0.000000e+00> : vector<64x16xf32>
    %299 = tpu.matmul %239, %298, %cst_281 {dimension_numbers = #tpu.dot_dimension_numbers<[1], [0], [0], [1], [0, 0, 1, 1], [], []>} : vector<64x4xbf16>, vector<4x16xbf16>, vector<64x16xf32> -> vector<64x16xf32>
    %c7_282 = arith.constant 7 : index
    %c0_283 = arith.constant 0 : index
    %c0_284 = arith.constant 0 : index
    %300 = vector.load %arg11[%c7_282, %c0_283, %c0_284] : memref<9x32x64xbf16, #tpu.memory_space<vmem>>, vector<1x32x64xbf16>
    %301 = vector.shape_cast %300 : vector<1x32x64xbf16> to vector<32x64xbf16>
    %302 = arith.truncf %299 : vector<64x16xf32> to vector<64x16xbf16>
    %cst_285 = arith.constant dense<0.000000e+00> : vector<32x16xf32>
    %303 = tpu.matmul %301, %302, %cst_285 {dimension_numbers = #tpu.dot_dimension_numbers<[1], [0], [0], [1], [0, 0, 1, 1], [], []>} : vector<32x64xbf16>, vector<64x16xbf16>, vector<32x16xf32> -> vector<32x16xf32>
    %304 = arith.addf %296, %303 : vector<32x16xf32>
    %c8_286 = arith.constant 8 : index
    %c0_287 = arith.constant 0 : index
    %c0_288 = arith.constant 0 : index
    %305 = vector.load %arg12[%c8_286, %c0_287, %c0_288] : memref<9x4x16xbf16, #tpu.memory_space<vmem>>, vector<1x4x16xbf16>
    %306 = vector.shape_cast %305 : vector<1x4x16xbf16> to vector<4x16xbf16>
    %cst_289 = arith.constant dense<0.000000e+00> : vector<64x16xf32>
    %307 = tpu.matmul %239, %306, %cst_289 {dimension_numbers = #tpu.dot_dimension_numbers<[1], [0], [0], [1], [0, 0, 1, 1], [], []>} : vector<64x4xbf16>, vector<4x16xbf16>, vector<64x16xf32> -> vector<64x16xf32>
    %c8_290 = arith.constant 8 : index
    %c0_291 = arith.constant 0 : index
    %c0_292 = arith.constant 0 : index
    %308 = vector.load %arg11[%c8_290, %c0_291, %c0_292] : memref<9x32x64xbf16, #tpu.memory_space<vmem>>, vector<1x32x64xbf16>
    %309 = vector.shape_cast %308 : vector<1x32x64xbf16> to vector<32x64xbf16>
    %310 = arith.truncf %307 : vector<64x16xf32> to vector<64x16xbf16>
    %cst_293 = arith.constant dense<0.000000e+00> : vector<32x16xf32>
    %311 = tpu.matmul %309, %310, %cst_293 {dimension_numbers = #tpu.dot_dimension_numbers<[1], [0], [0], [1], [0, 0, 1, 1], [], []>} : vector<32x64xbf16>, vector<64x16xbf16>, vector<32x16xf32> -> vector<32x16xf32>
    %312 = arith.addf %304, %311 : vector<32x16xf32>
    %c0_294 = arith.constant 0 : index
    %c0_295 = arith.constant 0 : index
    %313 = vector.load %arg13[%c0_294, %c0_295] : memref<32x1xf32, #tpu.memory_space<vmem>>, vector<32x1xf32>
    %314 = vector.broadcast %313 : vector<32x1xf32> to vector<32x16xf32>
    %315 = arith.addf %312, %314 : vector<32x16xf32>
    %cst_296 = arith.constant 0.000000e+00 : f32
    %316 = vector.broadcast %cst_296 : f32 to vector<32x16xf32>
    %317 = arith.maximumf %315, %316 : vector<32x16xf32>
    %318 = arith.truncf %317 : vector<32x16xf32> to vector<32x16xbf16>
    %cst_297 = arith.constant 0.000000e+00 : f32
    %319 = vector.broadcast %cst_297 : f32 to vector<16x64xf32>
    %c0_298 = arith.constant 0 : index
    %c0_299 = arith.constant 0 : index
    %c0_300 = arith.constant 0 : index
    %320 = vector.load %arg15[%c0_298, %c0_299, %c0_300] : memref<9x16x64xbf16, #tpu.memory_space<vmem>>, vector<1x16x64xbf16>
    %321 = vector.shape_cast %320 : vector<1x16x64xbf16> to vector<16x64xbf16>
    %cst_301 = arith.constant dense<0.000000e+00> : vector<32x64xf32>
    %322 = tpu.matmul %318, %321, %cst_301 {dimension_numbers = #tpu.dot_dimension_numbers<[1], [0], [0], [1], [0, 0, 1, 1], [], []>} : vector<32x16xbf16>, vector<16x64xbf16>, vector<32x64xf32> -> vector<32x64xf32>
    %c0_302 = arith.constant 0 : index
    %c0_303 = arith.constant 0 : index
    %c0_304 = arith.constant 0 : index
    %323 = vector.load %arg14[%c0_302, %c0_303, %c0_304] : memref<9x16x32xbf16, #tpu.memory_space<vmem>>, vector<1x16x32xbf16>
    %324 = vector.shape_cast %323 : vector<1x16x32xbf16> to vector<16x32xbf16>
    %325 = arith.truncf %322 : vector<32x64xf32> to vector<32x64xbf16>
    %cst_305 = arith.constant dense<0.000000e+00> : vector<16x64xf32>
    %326 = tpu.matmul %324, %325, %cst_305 {dimension_numbers = #tpu.dot_dimension_numbers<[1], [0], [0], [1], [0, 0, 1, 1], [], []>} : vector<16x32xbf16>, vector<32x64xbf16>, vector<16x64xf32> -> vector<16x64xf32>
    %327 = arith.addf %319, %326 : vector<16x64xf32>
    %c1_306 = arith.constant 1 : index
    %c0_307 = arith.constant 0 : index
    %c0_308 = arith.constant 0 : index
    %328 = vector.load %arg15[%c1_306, %c0_307, %c0_308] : memref<9x16x64xbf16, #tpu.memory_space<vmem>>, vector<1x16x64xbf16>
    %329 = vector.shape_cast %328 : vector<1x16x64xbf16> to vector<16x64xbf16>
    %cst_309 = arith.constant dense<0.000000e+00> : vector<32x64xf32>
    %330 = tpu.matmul %318, %329, %cst_309 {dimension_numbers = #tpu.dot_dimension_numbers<[1], [0], [0], [1], [0, 0, 1, 1], [], []>} : vector<32x16xbf16>, vector<16x64xbf16>, vector<32x64xf32> -> vector<32x64xf32>
    %c1_310 = arith.constant 1 : index
    %c0_311 = arith.constant 0 : index
    %c0_312 = arith.constant 0 : index
    %331 = vector.load %arg14[%c1_310, %c0_311, %c0_312] : memref<9x16x32xbf16, #tpu.memory_space<vmem>>, vector<1x16x32xbf16>
    %332 = vector.shape_cast %331 : vector<1x16x32xbf16> to vector<16x32xbf16>
    %333 = arith.truncf %330 : vector<32x64xf32> to vector<32x64xbf16>
    %cst_313 = arith.constant dense<0.000000e+00> : vector<16x64xf32>
    %334 = tpu.matmul %332, %333, %cst_313 {dimension_numbers = #tpu.dot_dimension_numbers<[1], [0], [0], [1], [0, 0, 1, 1], [], []>} : vector<16x32xbf16>, vector<32x64xbf16>, vector<16x64xf32> -> vector<16x64xf32>
    %335 = arith.addf %327, %334 : vector<16x64xf32>
    %c2_314 = arith.constant 2 : index
    %c0_315 = arith.constant 0 : index
    %c0_316 = arith.constant 0 : index
    %336 = vector.load %arg15[%c2_314, %c0_315, %c0_316] : memref<9x16x64xbf16, #tpu.memory_space<vmem>>, vector<1x16x64xbf16>
    %337 = vector.shape_cast %336 : vector<1x16x64xbf16> to vector<16x64xbf16>
    %cst_317 = arith.constant dense<0.000000e+00> : vector<32x64xf32>
    %338 = tpu.matmul %318, %337, %cst_317 {dimension_numbers = #tpu.dot_dimension_numbers<[1], [0], [0], [1], [0, 0, 1, 1], [], []>} : vector<32x16xbf16>, vector<16x64xbf16>, vector<32x64xf32> -> vector<32x64xf32>
    %c2_318 = arith.constant 2 : index
    %c0_319 = arith.constant 0 : index
    %c0_320 = arith.constant 0 : index
    %339 = vector.load %arg14[%c2_318, %c0_319, %c0_320] : memref<9x16x32xbf16, #tpu.memory_space<vmem>>, vector<1x16x32xbf16>
    %340 = vector.shape_cast %339 : vector<1x16x32xbf16> to vector<16x32xbf16>
    %341 = arith.truncf %338 : vector<32x64xf32> to vector<32x64xbf16>
    %cst_321 = arith.constant dense<0.000000e+00> : vector<16x64xf32>
    %342 = tpu.matmul %340, %341, %cst_321 {dimension_numbers = #tpu.dot_dimension_numbers<[1], [0], [0], [1], [0, 0, 1, 1], [], []>} : vector<16x32xbf16>, vector<32x64xbf16>, vector<16x64xf32> -> vector<16x64xf32>
    %343 = arith.addf %335, %342 : vector<16x64xf32>
    %c3_322 = arith.constant 3 : index
    %c0_323 = arith.constant 0 : index
    %c0_324 = arith.constant 0 : index
    %344 = vector.load %arg15[%c3_322, %c0_323, %c0_324] : memref<9x16x64xbf16, #tpu.memory_space<vmem>>, vector<1x16x64xbf16>
    %345 = vector.shape_cast %344 : vector<1x16x64xbf16> to vector<16x64xbf16>
    %cst_325 = arith.constant dense<0.000000e+00> : vector<32x64xf32>
    %346 = tpu.matmul %318, %345, %cst_325 {dimension_numbers = #tpu.dot_dimension_numbers<[1], [0], [0], [1], [0, 0, 1, 1], [], []>} : vector<32x16xbf16>, vector<16x64xbf16>, vector<32x64xf32> -> vector<32x64xf32>
    %c3_326 = arith.constant 3 : index
    %c0_327 = arith.constant 0 : index
    %c0_328 = arith.constant 0 : index
    %347 = vector.load %arg14[%c3_326, %c0_327, %c0_328] : memref<9x16x32xbf16, #tpu.memory_space<vmem>>, vector<1x16x32xbf16>
    %348 = vector.shape_cast %347 : vector<1x16x32xbf16> to vector<16x32xbf16>
    %349 = arith.truncf %346 : vector<32x64xf32> to vector<32x64xbf16>
    %cst_329 = arith.constant dense<0.000000e+00> : vector<16x64xf32>
    %350 = tpu.matmul %348, %349, %cst_329 {dimension_numbers = #tpu.dot_dimension_numbers<[1], [0], [0], [1], [0, 0, 1, 1], [], []>} : vector<16x32xbf16>, vector<32x64xbf16>, vector<16x64xf32> -> vector<16x64xf32>
    %351 = arith.addf %343, %350 : vector<16x64xf32>
    %c4_330 = arith.constant 4 : index
    %c0_331 = arith.constant 0 : index
    %c0_332 = arith.constant 0 : index
    %352 = vector.load %arg15[%c4_330, %c0_331, %c0_332] : memref<9x16x64xbf16, #tpu.memory_space<vmem>>, vector<1x16x64xbf16>
    %353 = vector.shape_cast %352 : vector<1x16x64xbf16> to vector<16x64xbf16>
    %cst_333 = arith.constant dense<0.000000e+00> : vector<32x64xf32>
    %354 = tpu.matmul %318, %353, %cst_333 {dimension_numbers = #tpu.dot_dimension_numbers<[1], [0], [0], [1], [0, 0, 1, 1], [], []>} : vector<32x16xbf16>, vector<16x64xbf16>, vector<32x64xf32> -> vector<32x64xf32>
    %c4_334 = arith.constant 4 : index
    %c0_335 = arith.constant 0 : index
    %c0_336 = arith.constant 0 : index
    %355 = vector.load %arg14[%c4_334, %c0_335, %c0_336] : memref<9x16x32xbf16, #tpu.memory_space<vmem>>, vector<1x16x32xbf16>
    %356 = vector.shape_cast %355 : vector<1x16x32xbf16> to vector<16x32xbf16>
    %357 = arith.truncf %354 : vector<32x64xf32> to vector<32x64xbf16>
    %cst_337 = arith.constant dense<0.000000e+00> : vector<16x64xf32>
    %358 = tpu.matmul %356, %357, %cst_337 {dimension_numbers = #tpu.dot_dimension_numbers<[1], [0], [0], [1], [0, 0, 1, 1], [], []>} : vector<16x32xbf16>, vector<32x64xbf16>, vector<16x64xf32> -> vector<16x64xf32>
    %359 = arith.addf %351, %358 : vector<16x64xf32>
    %c5_338 = arith.constant 5 : index
    %c0_339 = arith.constant 0 : index
    %c0_340 = arith.constant 0 : index
    %360 = vector.load %arg15[%c5_338, %c0_339, %c0_340] : memref<9x16x64xbf16, #tpu.memory_space<vmem>>, vector<1x16x64xbf16>
    %361 = vector.shape_cast %360 : vector<1x16x64xbf16> to vector<16x64xbf16>
    %cst_341 = arith.constant dense<0.000000e+00> : vector<32x64xf32>
    %362 = tpu.matmul %318, %361, %cst_341 {dimension_numbers = #tpu.dot_dimension_numbers<[1], [0], [0], [1], [0, 0, 1, 1], [], []>} : vector<32x16xbf16>, vector<16x64xbf16>, vector<32x64xf32> -> vector<32x64xf32>
    %c5_342 = arith.constant 5 : index
    %c0_343 = arith.constant 0 : index
    %c0_344 = arith.constant 0 : index
    %363 = vector.load %arg14[%c5_342, %c0_343, %c0_344] : memref<9x16x32xbf16, #tpu.memory_space<vmem>>, vector<1x16x32xbf16>
    %364 = vector.shape_cast %363 : vector<1x16x32xbf16> to vector<16x32xbf16>
    %365 = arith.truncf %362 : vector<32x64xf32> to vector<32x64xbf16>
    %cst_345 = arith.constant dense<0.000000e+00> : vector<16x64xf32>
    %366 = tpu.matmul %364, %365, %cst_345 {dimension_numbers = #tpu.dot_dimension_numbers<[1], [0], [0], [1], [0, 0, 1, 1], [], []>} : vector<16x32xbf16>, vector<32x64xbf16>, vector<16x64xf32> -> vector<16x64xf32>
    %367 = arith.addf %359, %366 : vector<16x64xf32>
    %c6_346 = arith.constant 6 : index
    %c0_347 = arith.constant 0 : index
    %c0_348 = arith.constant 0 : index
    %368 = vector.load %arg15[%c6_346, %c0_347, %c0_348] : memref<9x16x64xbf16, #tpu.memory_space<vmem>>, vector<1x16x64xbf16>
    %369 = vector.shape_cast %368 : vector<1x16x64xbf16> to vector<16x64xbf16>
    %cst_349 = arith.constant dense<0.000000e+00> : vector<32x64xf32>
    %370 = tpu.matmul %318, %369, %cst_349 {dimension_numbers = #tpu.dot_dimension_numbers<[1], [0], [0], [1], [0, 0, 1, 1], [], []>} : vector<32x16xbf16>, vector<16x64xbf16>, vector<32x64xf32> -> vector<32x64xf32>
    %c6_350 = arith.constant 6 : index
    %c0_351 = arith.constant 0 : index
    %c0_352 = arith.constant 0 : index
    %371 = vector.load %arg14[%c6_350, %c0_351, %c0_352] : memref<9x16x32xbf16, #tpu.memory_space<vmem>>, vector<1x16x32xbf16>
    %372 = vector.shape_cast %371 : vector<1x16x32xbf16> to vector<16x32xbf16>
    %373 = arith.truncf %370 : vector<32x64xf32> to vector<32x64xbf16>
    %cst_353 = arith.constant dense<0.000000e+00> : vector<16x64xf32>
    %374 = tpu.matmul %372, %373, %cst_353 {dimension_numbers = #tpu.dot_dimension_numbers<[1], [0], [0], [1], [0, 0, 1, 1], [], []>} : vector<16x32xbf16>, vector<32x64xbf16>, vector<16x64xf32> -> vector<16x64xf32>
    %375 = arith.addf %367, %374 : vector<16x64xf32>
    %c7_354 = arith.constant 7 : index
    %c0_355 = arith.constant 0 : index
    %c0_356 = arith.constant 0 : index
    %376 = vector.load %arg15[%c7_354, %c0_355, %c0_356] : memref<9x16x64xbf16, #tpu.memory_space<vmem>>, vector<1x16x64xbf16>
    %377 = vector.shape_cast %376 : vector<1x16x64xbf16> to vector<16x64xbf16>
    %cst_357 = arith.constant dense<0.000000e+00> : vector<32x64xf32>
    %378 = tpu.matmul %318, %377, %cst_357 {dimension_numbers = #tpu.dot_dimension_numbers<[1], [0], [0], [1], [0, 0, 1, 1], [], []>} : vector<32x16xbf16>, vector<16x64xbf16>, vector<32x64xf32> -> vector<32x64xf32>
    %c7_358 = arith.constant 7 : index
    %c0_359 = arith.constant 0 : index
    %c0_360 = arith.constant 0 : index
    %379 = vector.load %arg14[%c7_358, %c0_359, %c0_360] : memref<9x16x32xbf16, #tpu.memory_space<vmem>>, vector<1x16x32xbf16>
    %380 = vector.shape_cast %379 : vector<1x16x32xbf16> to vector<16x32xbf16>
    %381 = arith.truncf %378 : vector<32x64xf32> to vector<32x64xbf16>
    %cst_361 = arith.constant dense<0.000000e+00> : vector<16x64xf32>
    %382 = tpu.matmul %380, %381, %cst_361 {dimension_numbers = #tpu.dot_dimension_numbers<[1], [0], [0], [1], [0, 0, 1, 1], [], []>} : vector<16x32xbf16>, vector<32x64xbf16>, vector<16x64xf32> -> vector<16x64xf32>
    %383 = arith.addf %375, %382 : vector<16x64xf32>
    %c8_362 = arith.constant 8 : index
    %c0_363 = arith.constant 0 : index
    %c0_364 = arith.constant 0 : index
    %384 = vector.load %arg15[%c8_362, %c0_363, %c0_364] : memref<9x16x64xbf16, #tpu.memory_space<vmem>>, vector<1x16x64xbf16>
    %385 = vector.shape_cast %384 : vector<1x16x64xbf16> to vector<16x64xbf16>
    %cst_365 = arith.constant dense<0.000000e+00> : vector<32x64xf32>
    %386 = tpu.matmul %318, %385, %cst_365 {dimension_numbers = #tpu.dot_dimension_numbers<[1], [0], [0], [1], [0, 0, 1, 1], [], []>} : vector<32x16xbf16>, vector<16x64xbf16>, vector<32x64xf32> -> vector<32x64xf32>
    %c8_366 = arith.constant 8 : index
    %c0_367 = arith.constant 0 : index
    %c0_368 = arith.constant 0 : index
    %387 = vector.load %arg14[%c8_366, %c0_367, %c0_368] : memref<9x16x32xbf16, #tpu.memory_space<vmem>>, vector<1x16x32xbf16>
    %388 = vector.shape_cast %387 : vector<1x16x32xbf16> to vector<16x32xbf16>
    %389 = arith.truncf %386 : vector<32x64xf32> to vector<32x64xbf16>
    %cst_369 = arith.constant dense<0.000000e+00> : vector<16x64xf32>
    %390 = tpu.matmul %388, %389, %cst_369 {dimension_numbers = #tpu.dot_dimension_numbers<[1], [0], [0], [1], [0, 0, 1, 1], [], []>} : vector<16x32xbf16>, vector<32x64xbf16>, vector<16x64xf32> -> vector<16x64xf32>
    %391 = arith.addf %383, %390 : vector<16x64xf32>
    %c0_370 = arith.constant 0 : index
    %c0_371 = arith.constant 0 : index
    %392 = vector.load %arg16[%c0_370, %c0_371] : memref<16x1xf32, #tpu.memory_space<vmem>>, vector<16x1xf32>
    %393 = vector.broadcast %392 : vector<16x1xf32> to vector<16x64xf32>
    %394 = arith.addf %391, %393 : vector<16x64xf32>
    %cst_372 = arith.constant 0.000000e+00 : f32
    %395 = vector.broadcast %cst_372 : f32 to vector<16x64xf32>
    %396 = arith.maximumf %394, %395 : vector<16x64xf32>
    %397 = arith.truncf %396 : vector<16x64xf32> to vector<16x64xbf16>
    %cst_373 = arith.constant 0.000000e+00 : f32
    %398 = vector.broadcast %cst_373 : f32 to vector<3x256xf32>
    %c0_374 = arith.constant 0 : index
    %c0_375 = arith.constant 0 : index
    %c0_376 = arith.constant 0 : index
    %399 = vector.load %arg18[%c0_374, %c0_375, %c0_376] : memref<9x64x256xbf16, #tpu.memory_space<vmem>>, vector<1x64x256xbf16>
    %400 = vector.shape_cast %399 : vector<1x64x256xbf16> to vector<64x256xbf16>
    %cst_377 = arith.constant dense<0.000000e+00> : vector<16x256xf32>
    %401 = tpu.matmul %397, %400, %cst_377 {dimension_numbers = #tpu.dot_dimension_numbers<[1], [0], [0], [1], [0, 0, 1, 1], [], []>} : vector<16x64xbf16>, vector<64x256xbf16>, vector<16x256xf32> -> vector<16x256xf32>
    %c0_378 = arith.constant 0 : index
    %c0_379 = arith.constant 0 : index
    %c0_380 = arith.constant 0 : index
    %402 = vector.load %arg17[%c0_378, %c0_379, %c0_380] : memref<9x3x16xbf16, #tpu.memory_space<vmem>>, vector<1x3x16xbf16>
    %403 = vector.shape_cast %402 : vector<1x3x16xbf16> to vector<3x16xbf16>
    %404 = arith.truncf %401 : vector<16x256xf32> to vector<16x256xbf16>
    %cst_381 = arith.constant dense<0.000000e+00> : vector<3x256xf32>
    %405 = tpu.matmul %403, %404, %cst_381 {dimension_numbers = #tpu.dot_dimension_numbers<[1], [0], [0], [1], [0, 0, 1, 1], [], []>} : vector<3x16xbf16>, vector<16x256xbf16>, vector<3x256xf32> -> vector<3x256xf32>
    %406 = arith.addf %398, %405 : vector<3x256xf32>
    %c1_382 = arith.constant 1 : index
    %c0_383 = arith.constant 0 : index
    %c0_384 = arith.constant 0 : index
    %407 = vector.load %arg18[%c1_382, %c0_383, %c0_384] : memref<9x64x256xbf16, #tpu.memory_space<vmem>>, vector<1x64x256xbf16>
    %408 = vector.shape_cast %407 : vector<1x64x256xbf16> to vector<64x256xbf16>
    %cst_385 = arith.constant dense<0.000000e+00> : vector<16x256xf32>
    %409 = tpu.matmul %397, %408, %cst_385 {dimension_numbers = #tpu.dot_dimension_numbers<[1], [0], [0], [1], [0, 0, 1, 1], [], []>} : vector<16x64xbf16>, vector<64x256xbf16>, vector<16x256xf32> -> vector<16x256xf32>
    %c1_386 = arith.constant 1 : index
    %c0_387 = arith.constant 0 : index
    %c0_388 = arith.constant 0 : index
    %410 = vector.load %arg17[%c1_386, %c0_387, %c0_388] : memref<9x3x16xbf16, #tpu.memory_space<vmem>>, vector<1x3x16xbf16>
    %411 = vector.shape_cast %410 : vector<1x3x16xbf16> to vector<3x16xbf16>
    %412 = arith.truncf %409 : vector<16x256xf32> to vector<16x256xbf16>
    %cst_389 = arith.constant dense<0.000000e+00> : vector<3x256xf32>
    %413 = tpu.matmul %411, %412, %cst_389 {dimension_numbers = #tpu.dot_dimension_numbers<[1], [0], [0], [1], [0, 0, 1, 1], [], []>} : vector<3x16xbf16>, vector<16x256xbf16>, vector<3x256xf32> -> vector<3x256xf32>
    %414 = arith.addf %406, %413 : vector<3x256xf32>
    %c2_390 = arith.constant 2 : index
    %c0_391 = arith.constant 0 : index
    %c0_392 = arith.constant 0 : index
    %415 = vector.load %arg18[%c2_390, %c0_391, %c0_392] : memref<9x64x256xbf16, #tpu.memory_space<vmem>>, vector<1x64x256xbf16>
    %416 = vector.shape_cast %415 : vector<1x64x256xbf16> to vector<64x256xbf16>
    %cst_393 = arith.constant dense<0.000000e+00> : vector<16x256xf32>
    %417 = tpu.matmul %397, %416, %cst_393 {dimension_numbers = #tpu.dot_dimension_numbers<[1], [0], [0], [1], [0, 0, 1, 1], [], []>} : vector<16x64xbf16>, vector<64x256xbf16>, vector<16x256xf32> -> vector<16x256xf32>
    %c2_394 = arith.constant 2 : index
    %c0_395 = arith.constant 0 : index
    %c0_396 = arith.constant 0 : index
    %418 = vector.load %arg17[%c2_394, %c0_395, %c0_396] : memref<9x3x16xbf16, #tpu.memory_space<vmem>>, vector<1x3x16xbf16>
    %419 = vector.shape_cast %418 : vector<1x3x16xbf16> to vector<3x16xbf16>
    %420 = arith.truncf %417 : vector<16x256xf32> to vector<16x256xbf16>
    %cst_397 = arith.constant dense<0.000000e+00> : vector<3x256xf32>
    %421 = tpu.matmul %419, %420, %cst_397 {dimension_numbers = #tpu.dot_dimension_numbers<[1], [0], [0], [1], [0, 0, 1, 1], [], []>} : vector<3x16xbf16>, vector<16x256xbf16>, vector<3x256xf32> -> vector<3x256xf32>
    %422 = arith.addf %414, %421 : vector<3x256xf32>
    %c3_398 = arith.constant 3 : index
    %c0_399 = arith.constant 0 : index
    %c0_400 = arith.constant 0 : index
    %423 = vector.load %arg18[%c3_398, %c0_399, %c0_400] : memref<9x64x256xbf16, #tpu.memory_space<vmem>>, vector<1x64x256xbf16>
    %424 = vector.shape_cast %423 : vector<1x64x256xbf16> to vector<64x256xbf16>
    %cst_401 = arith.constant dense<0.000000e+00> : vector<16x256xf32>
    %425 = tpu.matmul %397, %424, %cst_401 {dimension_numbers = #tpu.dot_dimension_numbers<[1], [0], [0], [1], [0, 0, 1, 1], [], []>} : vector<16x64xbf16>, vector<64x256xbf16>, vector<16x256xf32> -> vector<16x256xf32>
    %c3_402 = arith.constant 3 : index
    %c0_403 = arith.constant 0 : index
    %c0_404 = arith.constant 0 : index
    %426 = vector.load %arg17[%c3_402, %c0_403, %c0_404] : memref<9x3x16xbf16, #tpu.memory_space<vmem>>, vector<1x3x16xbf16>
    %427 = vector.shape_cast %426 : vector<1x3x16xbf16> to vector<3x16xbf16>
    %428 = arith.truncf %425 : vector<16x256xf32> to vector<16x256xbf16>
    %cst_405 = arith.constant dense<0.000000e+00> : vector<3x256xf32>
    %429 = tpu.matmul %427, %428, %cst_405 {dimension_numbers = #tpu.dot_dimension_numbers<[1], [0], [0], [1], [0, 0, 1, 1], [], []>} : vector<3x16xbf16>, vector<16x256xbf16>, vector<3x256xf32> -> vector<3x256xf32>
    %430 = arith.addf %422, %429 : vector<3x256xf32>
    %c4_406 = arith.constant 4 : index
    %c0_407 = arith.constant 0 : index
    %c0_408 = arith.constant 0 : index
    %431 = vector.load %arg18[%c4_406, %c0_407, %c0_408] : memref<9x64x256xbf16, #tpu.memory_space<vmem>>, vector<1x64x256xbf16>
    %432 = vector.shape_cast %431 : vector<1x64x256xbf16> to vector<64x256xbf16>
    %cst_409 = arith.constant dense<0.000000e+00> : vector<16x256xf32>
    %433 = tpu.matmul %397, %432, %cst_409 {dimension_numbers = #tpu.dot_dimension_numbers<[1], [0], [0], [1], [0, 0, 1, 1], [], []>} : vector<16x64xbf16>, vector<64x256xbf16>, vector<16x256xf32> -> vector<16x256xf32>
    %c4_410 = arith.constant 4 : index
    %c0_411 = arith.constant 0 : index
    %c0_412 = arith.constant 0 : index
    %434 = vector.load %arg17[%c4_410, %c0_411, %c0_412] : memref<9x3x16xbf16, #tpu.memory_space<vmem>>, vector<1x3x16xbf16>
    %435 = vector.shape_cast %434 : vector<1x3x16xbf16> to vector<3x16xbf16>
    %436 = arith.truncf %433 : vector<16x256xf32> to vector<16x256xbf16>
    %cst_413 = arith.constant dense<0.000000e+00> : vector<3x256xf32>
    %437 = tpu.matmul %435, %436, %cst_413 {dimension_numbers = #tpu.dot_dimension_numbers<[1], [0], [0], [1], [0, 0, 1, 1], [], []>} : vector<3x16xbf16>, vector<16x256xbf16>, vector<3x256xf32> -> vector<3x256xf32>
    %438 = arith.addf %430, %437 : vector<3x256xf32>
    %c5_414 = arith.constant 5 : index
    %c0_415 = arith.constant 0 : index
    %c0_416 = arith.constant 0 : index
    %439 = vector.load %arg18[%c5_414, %c0_415, %c0_416] : memref<9x64x256xbf16, #tpu.memory_space<vmem>>, vector<1x64x256xbf16>
    %440 = vector.shape_cast %439 : vector<1x64x256xbf16> to vector<64x256xbf16>
    %cst_417 = arith.constant dense<0.000000e+00> : vector<16x256xf32>
    %441 = tpu.matmul %397, %440, %cst_417 {dimension_numbers = #tpu.dot_dimension_numbers<[1], [0], [0], [1], [0, 0, 1, 1], [], []>} : vector<16x64xbf16>, vector<64x256xbf16>, vector<16x256xf32> -> vector<16x256xf32>
    %c5_418 = arith.constant 5 : index
    %c0_419 = arith.constant 0 : index
    %c0_420 = arith.constant 0 : index
    %442 = vector.load %arg17[%c5_418, %c0_419, %c0_420] : memref<9x3x16xbf16, #tpu.memory_space<vmem>>, vector<1x3x16xbf16>
    %443 = vector.shape_cast %442 : vector<1x3x16xbf16> to vector<3x16xbf16>
    %444 = arith.truncf %441 : vector<16x256xf32> to vector<16x256xbf16>
    %cst_421 = arith.constant dense<0.000000e+00> : vector<3x256xf32>
    %445 = tpu.matmul %443, %444, %cst_421 {dimension_numbers = #tpu.dot_dimension_numbers<[1], [0], [0], [1], [0, 0, 1, 1], [], []>} : vector<3x16xbf16>, vector<16x256xbf16>, vector<3x256xf32> -> vector<3x256xf32>
    %446 = arith.addf %438, %445 : vector<3x256xf32>
    %c6_422 = arith.constant 6 : index
    %c0_423 = arith.constant 0 : index
    %c0_424 = arith.constant 0 : index
    %447 = vector.load %arg18[%c6_422, %c0_423, %c0_424] : memref<9x64x256xbf16, #tpu.memory_space<vmem>>, vector<1x64x256xbf16>
    %448 = vector.shape_cast %447 : vector<1x64x256xbf16> to vector<64x256xbf16>
    %cst_425 = arith.constant dense<0.000000e+00> : vector<16x256xf32>
    %449 = tpu.matmul %397, %448, %cst_425 {dimension_numbers = #tpu.dot_dimension_numbers<[1], [0], [0], [1], [0, 0, 1, 1], [], []>} : vector<16x64xbf16>, vector<64x256xbf16>, vector<16x256xf32> -> vector<16x256xf32>
    %c6_426 = arith.constant 6 : index
    %c0_427 = arith.constant 0 : index
    %c0_428 = arith.constant 0 : index
    %450 = vector.load %arg17[%c6_426, %c0_427, %c0_428] : memref<9x3x16xbf16, #tpu.memory_space<vmem>>, vector<1x3x16xbf16>
    %451 = vector.shape_cast %450 : vector<1x3x16xbf16> to vector<3x16xbf16>
    %452 = arith.truncf %449 : vector<16x256xf32> to vector<16x256xbf16>
    %cst_429 = arith.constant dense<0.000000e+00> : vector<3x256xf32>
    %453 = tpu.matmul %451, %452, %cst_429 {dimension_numbers = #tpu.dot_dimension_numbers<[1], [0], [0], [1], [0, 0, 1, 1], [], []>} : vector<3x16xbf16>, vector<16x256xbf16>, vector<3x256xf32> -> vector<3x256xf32>
    %454 = arith.addf %446, %453 : vector<3x256xf32>
    %c7_430 = arith.constant 7 : index
    %c0_431 = arith.constant 0 : index
    %c0_432 = arith.constant 0 : index
    %455 = vector.load %arg18[%c7_430, %c0_431, %c0_432] : memref<9x64x256xbf16, #tpu.memory_space<vmem>>, vector<1x64x256xbf16>
    %456 = vector.shape_cast %455 : vector<1x64x256xbf16> to vector<64x256xbf16>
    %cst_433 = arith.constant dense<0.000000e+00> : vector<16x256xf32>
    %457 = tpu.matmul %397, %456, %cst_433 {dimension_numbers = #tpu.dot_dimension_numbers<[1], [0], [0], [1], [0, 0, 1, 1], [], []>} : vector<16x64xbf16>, vector<64x256xbf16>, vector<16x256xf32> -> vector<16x256xf32>
    %c7_434 = arith.constant 7 : index
    %c0_435 = arith.constant 0 : index
    %c0_436 = arith.constant 0 : index
    %458 = vector.load %arg17[%c7_434, %c0_435, %c0_436] : memref<9x3x16xbf16, #tpu.memory_space<vmem>>, vector<1x3x16xbf16>
    %459 = vector.shape_cast %458 : vector<1x3x16xbf16> to vector<3x16xbf16>
    %460 = arith.truncf %457 : vector<16x256xf32> to vector<16x256xbf16>
    %cst_437 = arith.constant dense<0.000000e+00> : vector<3x256xf32>
    %461 = tpu.matmul %459, %460, %cst_437 {dimension_numbers = #tpu.dot_dimension_numbers<[1], [0], [0], [1], [0, 0, 1, 1], [], []>} : vector<3x16xbf16>, vector<16x256xbf16>, vector<3x256xf32> -> vector<3x256xf32>
    %462 = arith.addf %454, %461 : vector<3x256xf32>
    %c8_438 = arith.constant 8 : index
    %c0_439 = arith.constant 0 : index
    %c0_440 = arith.constant 0 : index
    %463 = vector.load %arg18[%c8_438, %c0_439, %c0_440] : memref<9x64x256xbf16, #tpu.memory_space<vmem>>, vector<1x64x256xbf16>
    %464 = vector.shape_cast %463 : vector<1x64x256xbf16> to vector<64x256xbf16>
    %cst_441 = arith.constant dense<0.000000e+00> : vector<16x256xf32>
    %465 = tpu.matmul %397, %464, %cst_441 {dimension_numbers = #tpu.dot_dimension_numbers<[1], [0], [0], [1], [0, 0, 1, 1], [], []>} : vector<16x64xbf16>, vector<64x256xbf16>, vector<16x256xf32> -> vector<16x256xf32>
    %c8_442 = arith.constant 8 : index
    %c0_443 = arith.constant 0 : index
    %c0_444 = arith.constant 0 : index
    %466 = vector.load %arg17[%c8_442, %c0_443, %c0_444] : memref<9x3x16xbf16, #tpu.memory_space<vmem>>, vector<1x3x16xbf16>
    %467 = vector.shape_cast %466 : vector<1x3x16xbf16> to vector<3x16xbf16>
    %468 = arith.truncf %465 : vector<16x256xf32> to vector<16x256xbf16>
    %cst_445 = arith.constant dense<0.000000e+00> : vector<3x256xf32>
    %469 = tpu.matmul %467, %468, %cst_445 {dimension_numbers = #tpu.dot_dimension_numbers<[1], [0], [0], [1], [0, 0, 1, 1], [], []>} : vector<3x16xbf16>, vector<16x256xbf16>, vector<3x256xf32> -> vector<3x256xf32>
    %470 = arith.addf %462, %469 : vector<3x256xf32>
    %c0_446 = arith.constant 0 : index
    %c0_447 = arith.constant 0 : index
    %471 = vector.load %arg19[%c0_446, %c0_447] : memref<3x1xf32, #tpu.memory_space<vmem>>, vector<3x1xf32>
    %472 = vector.broadcast %471 : vector<3x1xf32> to vector<3x256xf32>
    %473 = arith.addf %470, %472 : vector<3x256xf32>
    %cst_448 = arith.constant 5.000000e-01 : f32
    %474 = vector.broadcast %cst_448 : f32 to vector<3x256xf32>
    %475 = arith.mulf %474, %473 : vector<3x256xf32>
    %476 = math.tanh %475 : vector<3x256xf32>
    %cst_449 = arith.constant 5.000000e-01 : f32
    %477 = vector.broadcast %cst_449 : f32 to vector<3x256xf32>
    %478 = arith.mulf %477, %476 : vector<3x256xf32>
    %cst_450 = arith.constant 5.000000e-01 : f32
    %479 = vector.broadcast %cst_450 : f32 to vector<3x256xf32>
    %480 = arith.addf %478, %479 : vector<3x256xf32>
    %c0_451 = arith.constant 0 : index
    %c0_452 = arith.constant 0 : index
    %c0_453 = arith.constant 0 : index
    %481 = vector.load %arg20[%c0_451, %c0_452, %c0_453] : memref<1x3x256xf32, #tpu.memory_space<vmem>>, vector<1x3x256xf32>
    %482 = vector.shape_cast %481 : vector<1x3x256xf32> to vector<3x256xf32>
    %483 = vector.shape_cast %480 : vector<3x256xf32> to vector<1x3x256xf32>
    tpu.vector_store %arg20[%c0_451, %c0_452, %c0_453], %483 {strides = array<i32>} : memref<1x3x256xf32, #tpu.memory_space<vmem>>, vector<1x3x256xf32>,
    return
  }
  func.func @transform_0(%arg0: i32) -> (i32, i32, i32) {
    %c0_i32 = arith.constant 0 : i32
    %c0_i32_0 = arith.constant 0 : i32
    %c0_i32_1 = arith.constant 0 : i32
    return %arg0, %c0_i32, %c0_i32_0 : i32, i32, i32
  }
  func.func @transform_1(%arg0: i32) -> (i32, i32, i32) {
    %c0_i32 = arith.constant 0 : i32
    %c0_i32_0 = arith.constant 0 : i32
    %c0_i32_1 = arith.constant 0 : i32
    %c0_i32_2 = arith.constant 0 : i32
    return %c0_i32, %c0_i32_0, %c0_i32_1 : i32, i32, i32
  }
  func.func @transform_2(%arg0: i32) -> (i32, i32, i32) {
    %c0_i32 = arith.constant 0 : i32
    %c0_i32_0 = arith.constant 0 : i32
    %c0_i32_1 = arith.constant 0 : i32
    %c0_i32_2 = arith.constant 0 : i32
    return %c0_i32, %c0_i32_0, %c0_i32_1 : i32, i32, i32
  }
  func.func @transform_3(%arg0: i32) -> (i32, i32) {
    %c0_i32 = arith.constant 0 : i32
    %c0_i32_0 = arith.constant 0 : i32
    %c0_i32_1 = arith.constant 0 : i32
    return %c0_i32, %c0_i32_0 : i32, i32
  }
  func.func @transform_4(%arg0: i32) -> (i32, i32, i32) {
    %c0_i32 = arith.constant 0 : i32
    %c0_i32_0 = arith.constant 0 : i32
    %c0_i32_1 = arith.constant 0 : i32
    %c0_i32_2 = arith.constant 0 : i32
    return %c0_i32, %c0_i32_0, %c0_i32_1 : i32, i32, i32
  }
  func.func @transform_5(%arg0: i32) -> (i32, i32, i32) {
    %c0_i32 = arith.constant 0 : i32
    %c0_i32_0 = arith.constant 0 : i32
    %c0_i32_1 = arith.constant 0 : i32
    %c0_i32_2 = arith.constant 0 : i32
    return %c0_i32, %c0_i32_0, %c0_i32_1 : i32, i32, i32
  }
  func.func @transform_6(%arg0: i32) -> (i32, i32) {
    %c0_i32 = arith.constant 0 : i32
    %c0_i32_0 = arith.constant 0 : i32
    %c0_i32_1 = arith.constant 0 : i32
    return %c0_i32, %c0_i32_0 : i32, i32
  }
  func.func @transform_7(%arg0: i32) -> (i32, i32, i32) {
    %c0_i32 = arith.constant 0 : i32
    %c0_i32_0 = arith.constant 0 : i32
    %c0_i32_1 = arith.constant 0 : i32
    %c0_i32_2 = arith.constant 0 : i32
    return %c0_i32, %c0_i32_0, %c0_i32_1 : i32, i32, i32
  }
  func.func @transform_8(%arg0: i32) -> (i32, i32, i32) {
    %c0_i32 = arith.constant 0 : i32
    %c0_i32_0 = arith.constant 0 : i32
    %c0_i32_1 = arith.constant 0 : i32
    %c0_i32_2 = arith.constant 0 : i32
    return %c0_i32, %c0_i32_0, %c0_i32_1 : i32, i32, i32
  }
  func.func @transform_9(%arg0: i32) -> (i32, i32) {
    %c0_i32 = arith.constant 0 : i32
    %c0_i32_0 = arith.constant 0 : i32
    %c0_i32_1 = arith.constant 0 : i32
    return %c0_i32, %c0_i32_0 : i32, i32
  }
  func.func @transform_10(%arg0: i32) -> (i32, i32, i32) {
    %c0_i32 = arith.constant 0 : i32
    %c0_i32_0 = arith.constant 0 : i32
    %c0_i32_1 = arith.constant 0 : i32
    %c0_i32_2 = arith.constant 0 : i32
    return %c0_i32, %c0_i32_0, %c0_i32_1 : i32, i32, i32
  }
  func.func @transform_11(%arg0: i32) -> (i32, i32, i32) {
    %c0_i32 = arith.constant 0 : i32
    %c0_i32_0 = arith.constant 0 : i32
    %c0_i32_1 = arith.constant 0 : i32
    %c0_i32_2 = arith.constant 0 : i32
    return %c0_i32, %c0_i32_0, %c0_i32_1 : i32, i32, i32
  }
  func.func @transform_12(%arg0: i32) -> (i32, i32) {
    %c0_i32 = arith.constant 0 : i32
    %c0_i32_0 = arith.constant 0 : i32
    %c0_i32_1 = arith.constant 0 : i32
    return %c0_i32, %c0_i32_0 : i32, i32
  }
  func.func @transform_13(%arg0: i32) -> (i32, i32, i32) {
    %c0_i32 = arith.constant 0 : i32
    %c0_i32_0 = arith.constant 0 : i32
    %c0_i32_1 = arith.constant 0 : i32
    %c0_i32_2 = arith.constant 0 : i32
    return %c0_i32, %c0_i32_0, %c0_i32_1 : i32, i32, i32
  }
  func.func @transform_14(%arg0: i32) -> (i32, i32, i32) {
    %c0_i32 = arith.constant 0 : i32
    %c0_i32_0 = arith.constant 0 : i32
    %c0_i32_1 = arith.constant 0 : i32
    %c0_i32_2 = arith.constant 0 : i32
    return %c0_i32, %c0_i32_0, %c0_i32_1 : i32, i32, i32
  }
  func.func @transform_15(%arg0: i32) -> (i32, i32) {
    %c0_i32 = arith.constant 0 : i32
    %c0_i32_0 = arith.constant 0 : i32
    %c0_i32_1 = arith.constant 0 : i32
    return %c0_i32, %c0_i32_0 : i32, i32
  }
  func.func @transform_16(%arg0: i32) -> (i32, i32, i32) {
    %c0_i32 = arith.constant 0 : i32
    %c0_i32_0 = arith.constant 0 : i32
    %c0_i32_1 = arith.constant 0 : i32
    %c0_i32_2 = arith.constant 0 : i32
    return %c0_i32, %c0_i32_0, %c0_i32_1 : i32, i32, i32
  }
  func.func @transform_17(%arg0: i32) -> (i32, i32, i32) {
    %c0_i32 = arith.constant 0 : i32
    %c0_i32_0 = arith.constant 0 : i32
    %c0_i32_1 = arith.constant 0 : i32
    %c0_i32_2 = arith.constant 0 : i32
    return %c0_i32, %c0_i32_0, %c0_i32_1 : i32, i32, i32
  }
  func.func @transform_18(%arg0: i32) -> (i32, i32) {
    %c0_i32 = arith.constant 0 : i32
    %c0_i32_0 = arith.constant 0 : i32
    %c0_i32_1 = arith.constant 0 : i32
    return %c0_i32, %c0_i32_0 : i32, i32
  }
  func.func @transform_19(%arg0: i32) -> (i32, i32, i32) {
    %c0_i32 = arith.constant 0 : i32
    %c0_i32_0 = arith.constant 0 : i32
    %c0_i32_1 = arith.constant 0 : i32
    return %arg0, %c0_i32, %c0_i32_0 : i32, i32, i32
  }
}

</mosaic_0001>

<bundles_post_ra>
// kernel: conv_autoencoder_forward.1
= control target key start
LH: loop header
LB: loop body
LE: loop exit
PB: predicated region body
PF: predicated region fallthrough
CT: control target
= control target key end

     0   :  { %s14262_s0 = inlined_call_operand.vmem [shape: f32[2,3,256], index: 0, kind: input, shape index: {}]   ;;  %s14263_s1 = inlined_call_operand.vmem [shape: bf16[9,16,3], index: 1, kind: input, shape index: {}]   ;;  %s14264_s2 = inlined_call_operand.vmem [shape: bf16[9,256,64], index: 2, kind: input, shape index: {}]   ;;  %s14265_s3 = inlined_call_operand.vmem [shape: f32[16,1], index: 3, kind: input, shape index: {}]   ;;  %s14266_s4 = inlined_call_operand.vmem [shape: bf16[9,32,16], index: 4, kind: input, shape index: {}]   ;;  %s14267_s5 = inlined_call_operand.vmem [shape: bf16[9,64,16], index: 5, kind: input, shape index: {}]   ;;  %s14268_s6 = inlined_call_operand.vmem [shape: f32[32,1], index: 6, kind: input, shape index: {}]   ;;  %s14269_s7 = inlined_call_operand.vmem [shape: bf16[9,64,32], index: 7, kind: input, shape index: {}]   ;;  %s14270_s8 = inlined_call_operand.vmem [shape: bf16[9,16,4], index: 8, kind: input, shape index: {}]   ;;  %s14271_s9 = inlined_call_operand.vmem [shape: f32[64,1], index: 9, kind: input, shape index: {}]   ;;  %s14272_s10 = inlined_call_operand.vmem [shape: bf16[9,32,64], index: 10, kind: input, shape index: {}]   ;;  %s14273_s11 = inlined_call_operand.vmem [shape: bf16[9,4,16], index: 11, kind: input, shape index: {}]   ;;  %s14274_s12 = inlined_call_operand.vmem [shape: f32[32,1], index: 12, kind: input, shape index: {}]   ;;  %s14275_s13 = inlined_call_operand.vmem [shape: bf16[9,16,32], index: 13, kind: input, shape index: {}]   ;;  %s14276_s14 = inlined_call_operand.vmem [shape: bf16[9,16,64], index: 14, kind: input, shape index: {}]   ;;  %s14277_s15 = inlined_call_operand.vmem [shape: f32[16,1], index: 15, kind: input, shape index: {}]   ;;  %s14278_s16 = inlined_call_operand.vmem [shape: bf16[9,3,16], index: 16, kind: input, shape index: {}]   ;;  %s14279_s17 = inlined_call_operand.vmem [shape: bf16[9,64,256], index: 17, kind: input, shape index: {}]   ;;  %s14280_s18 = inlined_call_operand.vmem [shape: f32[3,1], index: 18, kind: input, shape index: {}]   ;;  %s14281_s19 = inlined_call_operand.vmem [shape: f32[2,3,256], index: 19, kind: output, shape index: {}]  }
   0x1   :  { %14286 = sst [smem:[#allocation3_spill]] %s14262_s0  ;;  %s12467_s0 = smov 0  }
   0x2   :  { %14287 = sst [smem:[#allocation4_spill]] %s14263_s1 }
   0x3   :  { %14288 = sst [smem:[#allocation5_spill]] %s14264_s2 }
   0x4   :  { %14289 = sst [smem:[#allocation6_spill]] %s14265_s3 }
   0x5 LB: > { %14290 = sst [smem:[#allocation2_spill]] %s12361_s0  ;;  %s9425_s30 = sadd.s32 4294967295, %s12361_s0   ;;  %s12361_s0 = sphi %s12467_s0, %s29_s0  }
   0x6   : > { %p9429_p0 = scmp.ge.s32.totalorder %s12361_s0, 1  ;;  %p537_p1 = scmp.lt.s32.totalorder %s12361_s0, 3 }
   0x8   : > { %p538_p2 = pnand %p9429_p0, %p537_p1 }
   0x9   : > { %s14291_s1 = sld [smem:[#allocation5_spill]] (!%p538_p2)  ;;  %p593_p3 = scmp.lt.s32.totalorder (!%p538_p2), %s9425_s30, 1  ;;  %v12363_v36 = vmov (!%p538_p2), 0.0   ;;  %vm12364_vm0 = vmmov (!%p538_p2), 0   ;;  %vm963_vm1 = vcmask (!%p538_p2), 1040384   ;;  %vm964_vm2 = vcmask (!%p538_p2), 1041408  }
   0xa   : > { %541 = sbr.rel (%p538_p2) target bundleno = 7757 (0x1e4d), region = 96  ;;  %s14292_s2 = sld [smem:[#allocation3_spill]] (!%p538_p2)  ;;  %v12365_v39 = vmov (!%p538_p2), 65535   ;;  %vm959_vm3 = vcmask (!%p538_p2), 23552   ;;  %vm2701_vm4 = vcmask (!%p538_p2), 523264   ;;  %vm2841_vm5 = vcmask (!%p538_p2), 130048  }
   0xb   : > { %v965_v40 = vsel (!%p538_p2), %vm963_vm1, 4294967295, %v12365_v39  ;;  %s14293_s20 = sld [smem:[#allocation4_spill]] (!%p538_p2)  ;;  %s14294_s0 = sld [smem:[#allocation6_spill]] (!%p538_p2)  ;;  %vm4201_vm6 = vcmask (!%p538_p2), 261120   ;;  %vm5663_vm7 = vcmask (!%p538_p2), 31744  }
   0xc   : > { %v12598_v47 = vsel (!%p538_p2), %vm964_vm2, %v965_v40, 0 }
   0xf   : > { %v11954_v0 = vld [vmem:[%s14291_s1 + $0x40] sm:$0xff] (!%p538_p2)   ;;  %v11958_v4 = vld [vmem:[%s14291_s1 + $0x48] sm:$0xff] (!%p538_p2)   ;;  %v11962_v8 = vld [vmem:[%s14291_s1 + $0x50] sm:$0xff] (!%p538_p2)  }
  0x10   : > { %v11955_v1 = vld [vmem:[%s14291_s1 + $0xc0] sm:$0xff] (!%p538_p2)   ;;  %10579 = vmatprep.subr.bf16.mxu0 (!%p538_p2), %v11954_v0  ;;  %v11959_v5 = vld [vmem:[%s14291_s1 + $0xc8] sm:$0xff] (!%p538_p2)   ;;  %v11963_v9 = vld [vmem:[%s14291_s1 + $0xd0] sm:$0xff] (!%p538_p2)  }
  0x11   : > { %v11956_v2 = vld [vmem:[%s14291_s1] sm:$0xff]   ;;  %10601 = vmatprep.subr.bf16.mxu1 %v11955_v1  ;;  %v11960_v6 = vld [vmem:[%s14291_s1 + $0x8] sm:$0xff]   ;;  %v11964_v10 = vld [vmem:[%s14291_s1 + $0x10] sm:$0xff]   ;;  %s14298_s30 = smov (!%p593_p3, %s9425_s30), 1  ;;  %s14295_s27 = smov %s14294_s0 }
  0x12   : > { %v11957_v3 = vld [vmem:[%s14291_s1 + $0x80] sm:$0xff]   ;;  %10580 = vmatpush3.bf16.msra.mxu0 %v11956_v2  ;;  %v11961_v7 = vld [vmem:[%s14291_s1 + $0x88] sm:$0xff]   ;;  %v11965_v11 = vld [vmem:[%s14291_s1 + $0x90] sm:$0xff]   ;;  %s10577_s25 = sshll.u32 %s14298_s30, 3 }
  0x13   : > { %10602 = vmatpush3.bf16.msra.mxu1 %v11957_v3  ;;  %10581 = vmatprep.subr.bf16.mxu0 %v11958_v4  ;;  %v11966_v12 = vld [vmem:[%s14291_s1 + $0x58] sm:$0xff]   ;;  %v11970_v16 = vld [vmem:[%s14291_s1 + $0x60] sm:$0xff]   ;;  %v11974_v20 = vld [vmem:[%s14291_s1 + $0x68] sm:$0xff]   ;;  %s597_s23 = scalar_lea.vmem %s14292_s2, %s10577_s25  ;;  %s602_s2 = scalar_lea.vmem %s14281_s19, %s10577_s25 }
  0x14   : > { %10603 = vmatprep.subr.bf16.mxu1 %v11959_v5  ;;  %v11967_v13 = vld [vmem:[%s14291_s1 + $0xd8] sm:$0xff]   ;;  %v11971_v17 = vld [vmem:[%s14291_s1 + $0xe0] sm:$0xff]   ;;  %v11975_v21 = vld [vmem:[%s14291_s1 + $0xe8] sm:$0xff]  }
  0x15   : > { %v11968_v14 = vld [vmem:[%s14291_s1 + $0x18] sm:$0xff]   ;;  %v11972_v18 = vld [vmem:[%s14291_s1 + $0x20] sm:$0xff]   ;;  %v11976_v22 = vld [vmem:[%s14291_s1 + $0x28] sm:$0xff]  }
  0x16   : > { %10582 = vmatpush3.bf16.msra.mxu0 %v11960_v6  ;;  %v11969_v15 = vld [vmem:[%s14291_s1 + $0x98] sm:$0xff]   ;;  %v11973_v19 = vld [vmem:[%s14291_s1 + $0xa0] sm:$0xff]   ;;  %v11977_v23 = vld [vmem:[%s14291_s1 + $0xa8] sm:$0xff]  }
  0x17   : > { %10604 = vmatpush3.bf16.msra.mxu1 %v11961_v7  ;;  %10583 = vmatprep.subr.bf16.mxu0 %v11962_v8  ;;  %v11978_v24 = vld [vmem:[%s14291_s1 + $0x70] sm:$0xff]   ;;  %v11982_v28 = vld [vmem:[%s14291_s1 + $0x78] sm:$0xff]   ;;  %v604_v32 = vld [vmem:[%s597_s23] sm:$0x77] }
  0x18   : > { %10605 = vmatprep.subr.bf16.mxu1 %v11963_v9  ;;  %v11979_v25 = vld [vmem:[%s14291_s1 + $0xf0] sm:$0xff]   ;;  %v11983_v29 = vld [vmem:[%s14291_s1 + $0xf8] sm:$0xff]   ;;  %v606_v33 = vcombine.high %v604_v32, %v604_v32  ;;  %v12583_v34 = vpack.c.bf16 %v604_v32, %v604_v32  ;;  %v11989_v52 = vld [vmem:[%s14291_s1 + $0x140] sm:$0xff]  }
  0x19   : > { %v11980_v26 = vld [vmem:[%s14291_s1 + $0x30] sm:$0xff]   ;;  %v11984_v30 = vld [vmem:[%s14291_s1 + $0x38] sm:$0xff]   ;;  %v11987_v55 = vld [vmem:[%s14293_s20 + $0x8] sm:$0xff]  }
  0x1a   : > { %10584 = vmatpush3.bf16.msra.mxu0 %v11964_v10  ;;  %v11981_v27 = vld [vmem:[%s14291_s1 + $0xb0] sm:$0xff]   ;;  %v11985_v31 = vld [vmem:[%s14291_s1 + $0xb8] sm:$0xff]   ;;  %v12585_v35 = vpack.c.bf16 %v606_v33, %v606_v33  ;;  %v11988_v56 = vld [vmem:[%s14293_s20] sm:$0xff]  }
  0x1b   : > { %10606 = vmatpush3.bf16.msra.mxu1 %v11965_v11  ;;  %10585 = vmatprep.subr.bf16.mxu0 %v11966_v12  ;;  %v11990_v57 = vld [vmem:[%s14291_s1 + $0x100] sm:$0xff]   ;;  %v11991_v58 = vld [vmem:[%s14291_s1 + $0x148] sm:$0xff]   ;;  %v11993_v60 = vld [vmem:[%s14291_s1 + $0x150] sm:$0xff]  }
  0x1c   : > { %10607 = vmatprep.subr.bf16.mxu1 %v11967_v13  ;;  %770 = vmatprep.mubr.bf16.mxu0 %v12585_v35  ;;  %v11992_v59 = vld [vmem:[%s14291_s1 + $0x108] sm:$0xff]   ;;  %v11994_v61 = vld [vmem:[%s14291_s1 + $0x110] sm:$0xff]   ;;  %v11995_v62 = vld [vmem:[%s14291_s1 + $0x158] sm:$0xff]  }
  0x1d   : > { %942 = vmatprep.mubr.bf16.mxu1 %v12585_v35  ;;  %v11996_v63 = vld [vmem:[%s14291_s1 + $0x118] sm:$0xff]   ;;  %v11997_v0 = vld [vmem:[%s14291_s1 + $0x160] sm:$0xff]   ;;  %v11999_v2 = vld [vmem:[%s14291_s1 + $0x168] sm:$0xff]  }
  0x1e   : > { %10586 = vmatpush3.bf16.msra.mxu0 %v11968_v14  ;;  %v11998_v1 = vld [vmem:[%s14291_s1 + $0x120] sm:$0xff]   ;;  %v12000_v3 = vld [vmem:[%s14291_s1 + $0x128] sm:$0xff]   ;;  %v12001_v4 = vld [vmem:[%s14291_s1 + $0x170] sm:$0xff]  }
  0x1f   : > { %10608 = vmatpush3.bf16.msra.mxu1 %v11969_v15  ;;  %10587 = vmatprep.subr.bf16.mxu0 %v11970_v16  ;;  %v12002_v5 = vld [vmem:[%s14291_s1 + $0x130] sm:$0xff]   ;;  %v12003_v6 = vld [vmem:[%s14291_s1 + $0x178] sm:$0xff]   ;;  %v12016_v39 = vld [vmem:[%s14291_s1 + $0x1e8] sm:$0xff]  }
  0x20   : > { %10609 = vmatprep.subr.bf16.mxu1 %v11971_v17  ;;  %v12004_v7 = vld [vmem:[%s14291_s1 + $0x138] sm:$0xff]   ;;  %v12017_v40 = vld [vmem:[%s14291_s1 + $0x1a8] sm:$0xff]  }
  0x21   : > { %v12012_v32 = vld [vmem:[%s14291_s1 + $0x1d8] sm:$0xff]  }
  0x22   : > { %10588 = vmatpush3.bf16.msra.mxu0 %v11972_v18  ;;  %v12013_v33 = vld [vmem:[%s14291_s1 + $0x198] sm:$0xff]  }
  0x23   : > { %10610 = vmatpush3.bf16.msra.mxu1 %v11973_v19  ;;  %10589 = vmatprep.subr.bf16.mxu0 %v11974_v20 }
  0x24   : > { %10611 = vmatprep.subr.bf16.mxu1 %v11975_v21 }
  0x26   : > { %10590 = vmatpush3.bf16.msra.mxu0 %v11976_v22 }
  0x27   : > { %10612 = vmatpush3.bf16.msra.mxu1 %v11977_v23  ;;  %10591 = vmatprep.subr.bf16.mxu0 %v11978_v24  ;;  %v12006_v24 = vld [vmem:[%s14291_s1 + $0x1c0] sm:$0xff]  }
  0x28   : > { %10613 = vmatprep.subr.bf16.mxu1 %v11979_v25 }
  0x2a   : > { %10592 = vmatpush3.bf16.msra.mxu0 %v11980_v26  ;;  %v12005_v26 = vld [vmem:[%s14293_s20 + $0x10] sm:$0xff]  }
  0x2b   : > { %10614 = vmatpush3.bf16.msra.mxu1 %v11981_v27  ;;  %10593 = vmatprep.subr.bf16.mxu0 %v11982_v28  ;;  %v12007_v27 = vld [vmem:[%s14291_s1 + $0x180] sm:$0xff]   ;;  %v12008_v28 = vld [vmem:[%s14291_s1 + $0x1c8] sm:$0xff]  }
  0x2c   : > { %10615 = vmatprep.subr.bf16.mxu1 %v11983_v29  ;;  %v12009_v29 = vld [vmem:[%s14291_s1 + $0x188] sm:$0xff]  }
  0x2e   : > { %10594 = vmatpush3.bf16.msra.mxu0 %v11984_v30  ;;  %v12010_v30 = vld [vmem:[%s14291_s1 + $0x1d0] sm:$0xff]  }
  0x2f   : > { %10616 = vmatpush3.bf16.msra.mxu1 %v11985_v31  ;;  %11101 = vmatprep.subr.bf16.mxu0 %v12363_v36  ;;  %v12011_v31 = vld [vmem:[%s14291_s1 + $0x190] sm:$0xff]  }
  0x30   : > { %11107 = vmatprep.subr.bf16.mxu1 %v12363_v36 }
  0x31   : > { %771 = vmatmul.mubr.bf16.vlgmr.msra.gmra.mrb[0].mxu0 %v12583_v34 }
  0x32   : > { %943 = vmatmul.mubr.bf16.vlgmr.msra.gmra.mrb[0].mxu1 %v12583_v34  ;;  %11103 = vmatprep.mubr.msk.bf16.mxu0 %vm12364_vm0, %v12363_v36 }
  0x33   : > { %11109 = vmatprep.mubr.msk.bf16.mxu1 %vm12364_vm0, %v12363_v36 }
 0x104   : > { %v10595_v37 = vpop.f32.mrb[0].mxu0 }
 0x105   : > { %v10617_v38 = vpop.f32.mrb[0].mxu1  ;;  %v10596_v41 = vpop.f32.mrb[1].mxu0 }
 0x106   : > { %v10618_v42 = vpop.f32.mrb[1].mxu1  ;;  %v10597_v43 = vadd.f32 %v10596_v41, %v10595_v37  ;;  %v10598_v46 = vpop.f32.mrb[2].mxu0  ;;  %v12014_v37 = vld [vmem:[%s14291_s1 + $0x1e0] sm:$0xff]   ;;  %v12018_v41 = vld [vmem:[%s14291_s1 + $0x1f0] sm:$0xff]  }
 0x107   : > { %v10619_v44 = vadd.f32 %v10618_v42, %v10617_v38  ;;  %v10620_v45 = vpop.f32.mrb[2].mxu1  ;;  %v10599_v49 = vpop.f32.mrb[3].mxu0  ;;  %v12015_v38 = vld [vmem:[%s14291_s1 + $0x1a0] sm:$0xff]   ;;  %v12019_v42 = vld [vmem:[%s14291_s1 + $0x1b0] sm:$0xff]  }
 0x108   : > { %v10621_v48 = vpop.f32.mrb[3].mxu1  ;;  %v780_v50 = vpack.c.bf16 %v10597_v43, %v10597_v43  ;;  %v12020_v43 = vld [vmem:[%s14291_s1 + $0x1f8] sm:$0xff]  }
 0x109   : > { %v953_v51 = vpack.c.bf16 %v10619_v44, %v10619_v44  ;;  %v12021_v44 = vld [vmem:[%s14291_s1 + $0x1b8] sm:$0xff]  }
 0x10a   : > { %v1020_v53 = vand.u32 %v12598_v47, %v780_v50 }
 0x10b   : > { %v968_v54 = vand.u32 %v12598_v47, %v953_v51 }
 0x10c   : > { %11108 = vmatpush3.bf16.msra.mxu1 %v1020_v53 }
 0x10d   : > { %11102 = vmatpush3.bf16.msra.mxu0 %v968_v54  ;;  %11113 = vmatprep.subr.bf16.mxu1 %v12363_v36 }
 0x10e   : > { %10627 = vmatprep.subr.bf16.mxu0 %v11989_v52 }
 0x10f   : > { %11110 = vmatmul.mubr.msk.bf16.vlgmr.msra.gmra.mrb[4].mxu1 %vm959_vm3, %v11988_v56 }
 0x110   : > { %11104 = vmatmul.mubr.msk.bf16.vlgmr.msra.gmra.mrb[4].mxu0 %vm959_vm3, %v11987_v55  ;;  %11115 = vmatprep.mubr.msk.bf16.mxu1 %vm12364_vm0, %v12363_v36 }
 0x111   : > { %10628 = vmatpush3.bf16.msra.mxu0 %v11990_v57  ;;  %1224 = vmatprep.mubr.bf16.mxu0 %v12585_v35 }
 0x112   : > { %10629 = vmatprep.subr.bf16.mxu0 %v11991_v58  ;;  %v12023_v58 = vld [vmem:[%s14291_s1 + $0x240] sm:$0xff]  }
 0x115   : > { %10630 = vmatpush3.bf16.msra.mxu0 %v11992_v59 }
 0x116   : > { %10631 = vmatprep.subr.bf16.mxu0 %v11993_v60  ;;  %v12022_v60 = vld [vmem:[%s14293_s20 + $0x18] sm:$0xff]  }
 0x119   : > { %10632 = vmatpush3.bf16.msra.mxu0 %v11994_v61  ;;  %v12024_v61 = vld [vmem:[%s14291_s1 + $0x200] sm:$0xff]  }
 0x11a   : > { %10633 = vmatprep.subr.bf16.mxu0 %v11995_v62  ;;  %v12025_v62 = vld [vmem:[%s14291_s1 + $0x248] sm:$0xff]  }
 0x11d   : > { %10634 = vmatpush3.bf16.msra.mxu0 %v11996_v63  ;;  %v12026_v63 = vld [vmem:[%s14291_s1 + $0x208] sm:$0xff]  }
 0x11e   : > { %10635 = vmatprep.subr.bf16.mxu0 %v11997_v0  ;;  %v12027_v0 = vld [vmem:[%s14291_s1 + $0x250] sm:$0xff]  }
 0x121   : > { %10636 = vmatpush3.bf16.msra.mxu0 %v11998_v1  ;;  %v12028_v1 = vld [vmem:[%s14291_s1 + $0x210] sm:$0xff]  }
 0x122   : > { %10637 = vmatprep.subr.bf16.mxu0 %v11999_v2  ;;  %v12029_v2 = vld [vmem:[%s14291_s1 + $0x258] sm:$0xff]  }
 0x125   : > { %10638 = vmatpush3.bf16.msra.mxu0 %v12000_v3  ;;  %v12030_v3 = vld [vmem:[%s14291_s1 + $0x218] sm:$0xff]  }
 0x126   : > { %10639 = vmatprep.subr.bf16.mxu0 %v12001_v4  ;;  %v12031_v4 = vld [vmem:[%s14291_s1 + $0x260] sm:$0xff]  }
 0x129   : > { %10640 = vmatpush3.bf16.msra.mxu0 %v12002_v5  ;;  %v12032_v5 = vld [vmem:[%s14291_s1 + $0x220] sm:$0xff]  }
 0x12a   : > { %10641 = vmatprep.subr.bf16.mxu0 %v12003_v6  ;;  %v12033_v6 = vld [vmem:[%s14291_s1 + $0x268] sm:$0xff]  }
 0x12d   : > { %10642 = vmatpush3.bf16.msra.mxu0 %v12004_v7  ;;  %v12034_v7 = vld [vmem:[%s14291_s1 + $0x228] sm:$0xff]  }
 0x12e   : > { %11119 = vmatprep.subr.bf16.mxu0 %v12363_v36 }
 0x130   : > { %1225 = vmatmul.mubr.bf16.vlgmr.msra.gmra.mrb[8].mxu0 %v12583_v34 }
 0x131   : > { %11121 = vmatprep.mubr.msk.bf16.mxu0 %vm12364_vm0, %v12363_v36 }
 0x1e2   : > { %v1056_v9 = vpop.f32.mrb[4].mxu1 }
 0x1e3   : > { %v1004_v8 = vpop.f32.mrb[4].mxu0  ;;  %v11111_v12 = vpop.f32.mrb[5].mxu1 }
 0x1e4   : > { %v1057_v10 = vadd.f32 %v1056_v9, %v1004_v8  ;;  %v11105_v11 = vpop.f32.mrb[5].mxu0  ;;  %v1059_v14 = vpop.f32.mrb[6].mxu1  ;;  %v12035_v8 = vld [vmem:[%s14291_s1 + $0x270] sm:$0xff]  }
 0x1e5   : > { %v1007_v13 = vpop.f32.mrb[6].mxu0  ;;  %v11112_v17 = vpop.f32.mrb[7].mxu1  ;;  %v12036_v9 = vld [vmem:[%s14291_s1 + $0x230] sm:$0xff]   ;;  %v12038_v11 = vld [vmem:[%s14291_s1 + $0x238] sm:$0xff]  }
 0x1e6   : > { %v1060_v15 = vadd.f32 %v1059_v14, %v1007_v13  ;;  %v11106_v16 = vpop.f32.mrb[7].mxu0 }
 0x203   : > { %v10643_v18 = vpop.f32.mrb[8].mxu0 }
 0x204   : > { %v10644_v19 = vpop.f32.mrb[9].mxu0 }
 0x205   : > { %v10645_v20 = vadd.f32 %v10644_v19, %v10643_v18  ;;  %v10646_v21 = vpop.f32.mrb[10].mxu0 }
 0x206   : > { %v10647_v22 = vpop.f32.mrb[11].mxu0 }
 0x207   : > { %v1235_v23 = vpack.c.bf16 %v10645_v20, %v10645_v20 }
 0x209   : > { %v1245_v25 = vand.u32 %v1235_v23, %v12598_v47 }
 0x20b   : > { %11114 = vmatpush3.bf16.msra.mxu1 %v1245_v25 }
 0x20c   : > { %10651 = vmatprep.subr.bf16.mxu1 %v12006_v24  ;;  %v12040_v24 = vld [vmem:[%s14291_s1 + $0x2c0] sm:$0xff]  }
 0x20e   : > { %11116 = vmatmul.mubr.msk.bf16.vlgmr.msra.gmra.mrb[8].mxu1 %vm959_vm3, %v12005_v26  ;;  %v12039_v26 = vld [vmem:[%s14293_s20 + $0x20] sm:$0xff]  }
 0x20f   : > { %10652 = vmatpush3.bf16.msra.mxu1 %v12007_v27  ;;  %1451 = vmatprep.mubr.bf16.mxu1 %v12585_v35  ;;  %v12041_v27 = vld [vmem:[%s14291_s1 + $0x280] sm:$0xff]  }
 0x210   : > { %10653 = vmatprep.subr.bf16.mxu1 %v12008_v28  ;;  %v12042_v28 = vld [vmem:[%s14291_s1 + $0x2c8] sm:$0xff]  }
 0x213   : > { %10654 = vmatpush3.bf16.msra.mxu1 %v12009_v29  ;;  %v12043_v29 = vld [vmem:[%s14291_s1 + $0x288] sm:$0xff]  }
 0x214   : > { %10655 = vmatprep.subr.bf16.mxu1 %v12010_v30  ;;  %v12044_v30 = vld [vmem:[%s14291_s1 + $0x2d0] sm:$0xff]  }
 0x217   : > { %10656 = vmatpush3.bf16.msra.mxu1 %v12011_v31  ;;  %v12045_v31 = vld [vmem:[%s14291_s1 + $0x290] sm:$0xff]  }
 0x218   : > { %10657 = vmatprep.subr.bf16.mxu1 %v12012_v32  ;;  %v12046_v32 = vld [vmem:[%s14291_s1 + $0x2d8] sm:$0xff]  }
 0x21b   : > { %10658 = vmatpush3.bf16.msra.mxu1 %v12013_v33  ;;  %v12047_v33 = vld [vmem:[%s14291_s1 + $0x298] sm:$0xff]  }
 0x21c   : > { %10659 = vmatprep.subr.bf16.mxu1 %v12014_v37  ;;  %v12048_v37 = vld [vmem:[%s14291_s1 + $0x2e0] sm:$0xff]  }
 0x21f   : > { %10660 = vmatpush3.bf16.msra.mxu1 %v12015_v38  ;;  %v12049_v38 = vld [vmem:[%s14291_s1 + $0x2a0] sm:$0xff]  }
 0x220   : > { %10661 = vmatprep.subr.bf16.mxu1 %v12016_v39  ;;  %v12050_v39 = vld [vmem:[%s14291_s1 + $0x2e8] sm:$0xff]  }
 0x223   : > { %10662 = vmatpush3.bf16.msra.mxu1 %v12017_v40  ;;  %v12051_v40 = vld [vmem:[%s14291_s1 + $0x2a8] sm:$0xff]  }
 0x224   : > { %10663 = vmatprep.subr.bf16.mxu1 %v12018_v41  ;;  %v12052_v41 = vld [vmem:[%s14291_s1 + $0x2f0] sm:$0xff]  }
 0x227   : > { %10664 = vmatpush3.bf16.msra.mxu1 %v12019_v42  ;;  %v12053_v42 = vld [vmem:[%s14291_s1 + $0x2b0] sm:$0xff]  }
 0x228   : > { %10665 = vmatprep.subr.bf16.mxu1 %v12020_v43  ;;  %v12054_v43 = vld [vmem:[%s14291_s1 + $0x2f8] sm:$0xff]  }
 0x22b   : > { %10666 = vmatpush3.bf16.msra.mxu1 %v12021_v44  ;;  %v12055_v44 = vld [vmem:[%s14291_s1 + $0x2b8] sm:$0xff]  }
 0x22c   : > { %11125 = vmatprep.subr.bf16.mxu1 %v12363_v36 }
 0x22e   : > { %1452 = vmatmul.mubr.bf16.vlgmr.msra.gmra.mrb[12].mxu1 %v12583_v34 }
 0x22f   : > { %11127 = vmatprep.mubr.msk.bf16.mxu1 %vm12364_vm0, %v12363_v36 }
 0x2e1   : > { %v1281_v45 = vpop.f32.mrb[8].mxu1 }
 0x2e2   : > { %v1288_v46 = vadd.f32 %v1281_v45, %v1057_v10  ;;  %v11117_v48 = vpop.f32.mrb[9].mxu1  ;;  %v12037_v10 = vld [vmem:[%s14291_s1 + $0x278] sm:$0xff]  }
 0x2e3   : > { %v1284_v49 = vpop.f32.mrb[10].mxu1 }
 0x2e4   : > { %v1289_v50 = vadd.f32 %v1284_v49, %v1060_v15  ;;  %v11118_v51 = vpop.f32.mrb[11].mxu1 }
 0x301   : > { %v10667_v52 = vpop.f32.mrb[12].mxu1 }
 0x302   : > { %v10668_v53 = vpop.f32.mrb[13].mxu1 }
 0x303   : > { %v10669_v54 = vadd.f32 %v10668_v53, %v10667_v52  ;;  %v10670_v55 = vpop.f32.mrb[14].mxu1 }
 0x304   : > { %v10671_v56 = vpop.f32.mrb[15].mxu1 }
 0x305   : > { %v1462_v57 = vpack.c.bf16 %v10669_v54, %v10669_v54 }
 0x307   : > { %v1472_v59 = vand.u32 %v1462_v57, %v12598_v47 }
 0x309   : > { %11120 = vmatpush3.bf16.msra.mxu0 %v1472_v59 }
 0x30a   : > { %10675 = vmatprep.subr.bf16.mxu0 %v12023_v58  ;;  %v12057_v58 = vld [vmem:[%s14291_s1 + $0x340] sm:$0xff]  }
 0x30c   : > { %11122 = vmatmul.mubr.msk.bf16.vlgmr.msra.gmra.mrb[12].mxu0 %vm959_vm3, %v12022_v60  ;;  %v12056_v60 = vld [vmem:[%s14293_s20 + $0x28] sm:$0xff]  }
 0x30d   : > { %10676 = vmatpush3.bf16.msra.mxu0 %v12024_v61  ;;  %1678 = vmatprep.mubr.bf16.mxu0 %v12585_v35  ;;  %v12058_v61 = vld [vmem:[%s14291_s1 + $0x300] sm:$0xff]  }
 0x30e   : > { %10677 = vmatprep.subr.bf16.mxu0 %v12025_v62  ;;  %v12059_v62 = vld [vmem:[%s14291_s1 + $0x348] sm:$0xff]  }
 0x311   : > { %10678 = vmatpush3.bf16.msra.mxu0 %v12026_v63  ;;  %v12060_v63 = vld [vmem:[%s14291_s1 + $0x308] sm:$0xff]  }
 0x312   : > { %10679 = vmatprep.subr.bf16.mxu0 %v12027_v0  ;;  %v12061_v0 = vld [vmem:[%s14291_s1 + $0x350] sm:$0xff]  }
 0x315   : > { %10680 = vmatpush3.bf16.msra.mxu0 %v12028_v1  ;;  %v12062_v1 = vld [vmem:[%s14291_s1 + $0x310] sm:$0xff]  }
 0x316   : > { %10681 = vmatprep.subr.bf16.mxu0 %v12029_v2  ;;  %v12063_v2 = vld [vmem:[%s14291_s1 + $0x358] sm:$0xff]  }
 0x319   : > { %10682 = vmatpush3.bf16.msra.mxu0 %v12030_v3  ;;  %v12064_v3 = vld [vmem:[%s14291_s1 + $0x318] sm:$0xff]  }
 0x31a   : > { %10683 = vmatprep.subr.bf16.mxu0 %v12031_v4  ;;  %v12065_v4 = vld [vmem:[%s14291_s1 + $0x360] sm:$0xff]  }
 0x31d   : > { %10684 = vmatpush3.bf16.msra.mxu0 %v12032_v5  ;;  %v12066_v5 = vld [vmem:[%s14291_s1 + $0x320] sm:$0xff]  }
 0x31e   : > { %10685 = vmatprep.subr.bf16.mxu0 %v12033_v6  ;;  %v12067_v6 = vld [vmem:[%s14291_s1 + $0x368] sm:$0xff]  }
 0x321   : > { %10686 = vmatpush3.bf16.msra.mxu0 %v12034_v7  ;;  %v12068_v7 = vld [vmem:[%s14291_s1 + $0x328] sm:$0xff]  }
 0x322   : > { %10687 = vmatprep.subr.bf16.mxu0 %v12035_v8  ;;  %v12069_v8 = vld [vmem:[%s14291_s1 + $0x370] sm:$0xff]  }
 0x325   : > { %10688 = vmatpush3.bf16.msra.mxu0 %v12036_v9  ;;  %v12070_v9 = vld [vmem:[%s14291_s1 + $0x330] sm:$0xff]  }
 0x326   : > { %10689 = vmatprep.subr.bf16.mxu0 %v12037_v10  ;;  %v12071_v10 = vld [vmem:[%s14291_s1 + $0x378] sm:$0xff]  }
 0x329   : > { %10690 = vmatpush3.bf16.msra.mxu0 %v12038_v11  ;;  %v12072_v11 = vld [vmem:[%s14291_s1 + $0x338] sm:$0xff]  }
 0x32a   : > { %11131 = vmatprep.subr.bf16.mxu0 %v12363_v36 }
 0x32c   : > { %1679 = vmatmul.mubr.bf16.vlgmr.msra.gmra.mrb[16].mxu0 %v12583_v34 }
 0x32d   : > { %11133 = vmatprep.mubr.msk.bf16.mxu0 %vm12364_vm0, %v12363_v36 }
 0x3df   : > { %v1508_v12 = vpop.f32.mrb[12].mxu0 }
 0x3e0   : > { %v1515_v13 = vadd.f32 %v1508_v12, %v1288_v46  ;;  %v11123_v14 = vpop.f32.mrb[13].mxu0 }
 0x3e1   : > { %v1511_v15 = vpop.f32.mrb[14].mxu0 }
 0x3e2   : > { %v1516_v16 = vadd.f32 %v1511_v15, %v1289_v50  ;;  %v11124_v17 = vpop.f32.mrb[15].mxu0 }
 0x3ff   : > { %v10691_v18 = vpop.f32.mrb[16].mxu0 }
 0x400   : > { %v10692_v19 = vpop.f32.mrb[17].mxu0 }
 0x401   : > { %v10693_v20 = vadd.f32 %v10692_v19, %v10691_v18  ;;  %v10694_v21 = vpop.f32.mrb[18].mxu0 }
 0x402   : > { %v10695_v22 = vpop.f32.mrb[19].mxu0 }
 0x403   : > { %v1689_v23 = vpack.c.bf16 %v10693_v20, %v10693_v20 }
 0x405   : > { %v1699_v25 = vand.u32 %v1689_v23, %v12598_v47 }
 0x407   : > { %11126 = vmatpush3.bf16.msra.mxu1 %v1699_v25 }
 0x408   : > { %10699 = vmatprep.subr.bf16.mxu1 %v12040_v24  ;;  %v12074_v24 = vld [vmem:[%s14291_s1 + $0x3c0] sm:$0xff]  }
 0x40a   : > { %11128 = vmatmul.mubr.msk.bf16.vlgmr.msra.gmra.mrb[16].mxu1 %vm959_vm3, %v12039_v26  ;;  %v12073_v26 = vld [vmem:[%s14293_s20 + $0x30] sm:$0xff]  }
 0x40b   : > { %10700 = vmatpush3.bf16.msra.mxu1 %v12041_v27  ;;  %1905 = vmatprep.mubr.bf16.mxu1 %v12585_v35  ;;  %v12075_v27 = vld [vmem:[%s14291_s1 + $0x380] sm:$0xff]  }
 0x40c   : > { %10701 = vmatprep.subr.bf16.mxu1 %v12042_v28  ;;  %v12076_v28 = vld [vmem:[%s14291_s1 + $0x3c8] sm:$0xff]  }
 0x40f   : > { %10702 = vmatpush3.bf16.msra.mxu1 %v12043_v29  ;;  %v12077_v29 = vld [vmem:[%s14291_s1 + $0x388] sm:$0xff]  }
 0x410   : > { %10703 = vmatprep.subr.bf16.mxu1 %v12044_v30  ;;  %v12078_v30 = vld [vmem:[%s14291_s1 + $0x3d0] sm:$0xff]  }
 0x413   : > { %10704 = vmatpush3.bf16.msra.mxu1 %v12045_v31  ;;  %v12079_v31 = vld [vmem:[%s14291_s1 + $0x390] sm:$0xff]  }
 0x414   : > { %10705 = vmatprep.subr.bf16.mxu1 %v12046_v32  ;;  %v12080_v32 = vld [vmem:[%s14291_s1 + $0x3d8] sm:$0xff]  }
 0x417   : > { %10706 = vmatpush3.bf16.msra.mxu1 %v12047_v33  ;;  %v12081_v33 = vld [vmem:[%s14291_s1 + $0x398] sm:$0xff]  }
 0x418   : > { %10707 = vmatprep.subr.bf16.mxu1 %v12048_v37  ;;  %v12082_v37 = vld [vmem:[%s14291_s1 + $0x3e0] sm:$0xff]  }
 0x41b   : > { %10708 = vmatpush3.bf16.msra.mxu1 %v12049_v38  ;;  %v12083_v38 = vld [vmem:[%s14291_s1 + $0x3a0] sm:$0xff]  }
 0x41c   : > { %10709 = vmatprep.subr.bf16.mxu1 %v12050_v39  ;;  %v12084_v39 = vld [vmem:[%s14291_s1 + $0x3e8] sm:$0xff]  }
 0x41f   : > { %10710 = vmatpush3.bf16.msra.mxu1 %v12051_v40  ;;  %v12085_v40 = vld [vmem:[%s14291_s1 + $0x3a8] sm:$0xff]  }
 0x420   : > { %10711 = vmatprep.subr.bf16.mxu1 %v12052_v41  ;;  %v12086_v41 = vld [vmem:[%s14291_s1 + $0x3f0] sm:$0xff]  }
 0x423   : > { %10712 = vmatpush3.bf16.msra.mxu1 %v12053_v42  ;;  %v12087_v42 = vld [vmem:[%s14291_s1 + $0x3b0] sm:$0xff]  }
 0x424   : > { %10713 = vmatprep.subr.bf16.mxu1 %v12054_v43  ;;  %v12088_v43 = vld [vmem:[%s14291_s1 + $0x3f8] sm:$0xff]  }
 0x427   : > { %10714 = vmatpush3.bf16.msra.mxu1 %v12055_v44  ;;  %v12089_v44 = vld [vmem:[%s14291_s1 + $0x3b8] sm:$0xff]  }
 0x428   : > { %11137 = vmatprep.subr.bf16.mxu1 %v12363_v36 }
 0x42a   : > { %1906 = vmatmul.mubr.bf16.vlgmr.msra.gmra.mrb[20].mxu1 %v12583_v34 }
 0x42b   : > { %11139 = vmatprep.mubr.msk.bf16.mxu1 %vm12364_vm0, %v12363_v36 }
 0x4dd   : > { %v1735_v45 = vpop.f32.mrb[16].mxu1 }
 0x4de   : > { %v1742_v46 = vadd.f32 %v1735_v45, %v1515_v13  ;;  %v11129_v48 = vpop.f32.mrb[17].mxu1 }
 0x4df   : > { %v1738_v49 = vpop.f32.mrb[18].mxu1 }
 0x4e0   : > { %v1743_v50 = vadd.f32 %v1738_v49, %v1516_v16  ;;  %v11130_v51 = vpop.f32.mrb[19].mxu1 }
 0x4fd   : > { %v10715_v52 = vpop.f32.mrb[20].mxu1 }
 0x4fe   : > { %v10716_v53 = vpop.f32.mrb[21].mxu1 }
 0x4ff   : > { %v10717_v54 = vadd.f32 %v10716_v53, %v10715_v52  ;;  %v10718_v55 = vpop.f32.mrb[22].mxu1 }
 0x500   : > { %v10719_v56 = vpop.f32.mrb[23].mxu1 }
 0x501   : > { %v1916_v57 = vpack.c.bf16 %v10717_v54, %v10717_v54 }
 0x503   : > { %v1926_v59 = vand.u32 %v1916_v57, %v12598_v47 }
 0x505   : > { %11132 = vmatpush3.bf16.msra.mxu0 %v1926_v59 }
 0x506   : > { %10723 = vmatprep.subr.bf16.mxu0 %v12057_v58  ;;  %v12091_v58 = vld [vmem:[%s14291_s1 + $0x440] sm:$0xff]  }
 0x508   : > { %11134 = vmatmul.mubr.msk.bf16.vlgmr.msra.gmra.mrb[20].mxu0 %vm959_vm3, %v12056_v60  ;;  %v12090_v60 = vld [vmem:[%s14293_s20 + $0x38] sm:$0xff]  }
 0x509   : > { %10724 = vmatpush3.bf16.msra.mxu0 %v12058_v61  ;;  %2132 = vmatprep.mubr.bf16.mxu0 %v12585_v35  ;;  %v12092_v61 = vld [vmem:[%s14291_s1 + $0x400] sm:$0xff]  }
 0x50a   : > { %10725 = vmatprep.subr.bf16.mxu0 %v12059_v62  ;;  %v12093_v62 = vld [vmem:[%s14291_s1 + $0x448] sm:$0xff]  }
 0x50d   : > { %10726 = vmatpush3.bf16.msra.mxu0 %v12060_v63  ;;  %v12094_v63 = vld [vmem:[%s14291_s1 + $0x408] sm:$0xff]  }
 0x50e   : > { %10727 = vmatprep.subr.bf16.mxu0 %v12061_v0  ;;  %v12095_v0 = vld [vmem:[%s14291_s1 + $0x450] sm:$0xff]  }
 0x511   : > { %10728 = vmatpush3.bf16.msra.mxu0 %v12062_v1  ;;  %v12096_v1 = vld [vmem:[%s14291_s1 + $0x410] sm:$0xff]  }
 0x512   : > { %10729 = vmatprep.subr.bf16.mxu0 %v12063_v2  ;;  %v12097_v2 = vld [vmem:[%s14291_s1 + $0x458] sm:$0xff]  }
 0x515   : > { %10730 = vmatpush3.bf16.msra.mxu0 %v12064_v3  ;;  %v12099_v3 = vld [vmem:[%s14291_s1 + $0x460] sm:$0xff]  }
 0x516   : > { %10731 = vmatprep.subr.bf16.mxu0 %v12065_v4  ;;  %v12100_v4 = vld [vmem:[%s14291_s1 + $0x420] sm:$0xff]  }
 0x519   : > { %10732 = vmatpush3.bf16.msra.mxu0 %v12066_v5  ;;  %v12101_v5 = vld [vmem:[%s14291_s1 + $0x468] sm:$0xff]  }
 0x51a   : > { %10733 = vmatprep.subr.bf16.mxu0 %v12067_v6  ;;  %v12102_v6 = vld [vmem:[%s14291_s1 + $0x428] sm:$0xff]  }
 0x51d   : > { %10734 = vmatpush3.bf16.msra.mxu0 %v12068_v7  ;;  %v12103_v7 = vld [vmem:[%s14291_s1 + $0x470] sm:$0xff]  }
 0x51e   : > { %10735 = vmatprep.subr.bf16.mxu0 %v12069_v8  ;;  %v12104_v8 = vld [vmem:[%s14291_s1 + $0x430] sm:$0xff]  }
 0x521   : > { %10736 = vmatpush3.bf16.msra.mxu0 %v12070_v9  ;;  %v12105_v9 = vld [vmem:[%s14291_s1 + $0x478] sm:$0xff]  }
 0x522   : > { %10737 = vmatprep.subr.bf16.mxu0 %v12071_v10  ;;  %v12106_v10 = vld [vmem:[%s14291_s1 + $0x438] sm:$0xff]  }
 0x525   : > { %10738 = vmatpush3.bf16.msra.mxu0 %v12072_v11  ;;  %v2652_v11 = vld [vmem:[%s14294_s0] sm:$0xff] }
 0x526   : > { %11143 = vmatprep.subr.bf16.mxu0 %v12363_v36 }
 0x528   : > { %2133 = vmatmul.mubr.bf16.vlgmr.msra.gmra.mrb[24].mxu0 %v12583_v34 }
 0x529   : > { %11145 = vmatprep.mubr.msk.bf16.mxu0 %vm12364_vm0, %v12363_v36 }
 0x5db   : > { %v1962_v12 = vpop.f32.mrb[20].mxu0 }
 0x5dc   : > { %v1969_v13 = vadd.f32 %v1962_v12, %v1742_v46  ;;  %v11135_v14 = vpop.f32.mrb[21].mxu0  ;;  %v12366_v12 = vmov 0  }
 0x5dd   : > { %v1965_v15 = vpop.f32.mrb[22].mxu0  ;;  %11952 = vset.pattern.permute.xlu0 %v12366_v12  ;;  %11953 = vset.pattern.permute.xlu1 %v12366_v12  ;;  %v4007_v14 = vld [vmem:[%s14268_s6 + $0x10] sm:$0xff] }
 0x5de   : > { %v1970_v16 = vadd.f32 %v1965_v15, %v1743_v50  ;;  %v11136_v17 = vpop.f32.mrb[23].mxu0  ;;  %2656 = vperm.xlu0 %11952, %v2652_v11   ;;  %v5596_v15 = vld [vmem:[%s14271_s9 + $0x10] sm:$0xff]  ;;  %v12132_v11 = vld [vmem:[%s14267_s5 + $0x100] sm:$0xff]  }
 0x5df   : > { %v5600_v17 = vld [vmem:[%s14271_s9 + $0x30] sm:$0xff] }
 0x5fb   : > { %v10739_v18 = vpop.f32.mrb[24].mxu0 }
 0x5fc   : > { %v10740_v19 = vpop.f32.mrb[25].mxu0 }
 0x5fd   : > { %v10741_v20 = vadd.f32 %v10740_v19, %v10739_v18  ;;  %v10742_v21 = vpop.f32.mrb[26].mxu0  ;;  %v6997_v18 = vld [vmem:[%s14274_s12] sm:$0xff]  ;;  %v6999_v19 = vld [vmem:[%s14274_s12 + $0x10] sm:$0xff] }
 0x5fe   : > { %v10743_v22 = vpop.f32.mrb[27].mxu0  ;;  %v9349_v21 = vld [vmem:[%s14280_s18] sm:$0x7] }
 0x5ff   : > { %v2143_v23 = vpack.c.bf16 %v10741_v20, %v10741_v20  ;;  %v8057_v20 = vld [vmem:[%s14277_s15] sm:$0xff] }
 0x601   : > { %v2153_v25 = vand.u32 %v2143_v23, %v12598_v47 }
 0x603   : > { %11138 = vmatpush3.bf16.msra.mxu1 %v2153_v25 }
 0x604   : > { %10747 = vmatprep.subr.bf16.mxu1 %v12074_v24 }
 0x606   : > { %11140 = vmatmul.mubr.msk.bf16.vlgmr.msra.gmra.mrb[24].mxu1 %vm959_vm3, %v12073_v26 }
 0x607   : > { %10748 = vmatpush3.bf16.msra.mxu1 %v12075_v27  ;;  %2359 = vmatprep.mubr.bf16.mxu1 %v12585_v35 }
 0x608   : > { %10749 = vmatprep.subr.bf16.mxu1 %v12076_v28 }
 0x60b   : > { %10750 = vmatpush3.bf16.msra.mxu1 %v12077_v29 }
 0x60c   : > { %10751 = vmatprep.subr.bf16.mxu1 %v12078_v30 }
 0x60f   : > { %10752 = vmatpush3.bf16.msra.mxu1 %v12079_v31 }
 0x610   : > { %10753 = vmatprep.subr.bf16.mxu1 %v12080_v32 }
 0x613   : > { %10754 = vmatpush3.bf16.msra.mxu1 %v12081_v33 }
 0x614   : > { %10755 = vmatprep.subr.bf16.mxu1 %v12082_v37 }
 0x617   : > { %10756 = vmatpush3.bf16.msra.mxu1 %v12083_v38  ;;  %v12107_v38 = vld [vmem:[%s14293_s20 + $0x40] sm:$0xff]  }
 0x618   : > { %10757 = vmatprep.subr.bf16.mxu1 %v12084_v39  ;;  %v12108_v39 = vld [vmem:[%s14267_s5] sm:$0xff]  }
 0x61b   : > { %10758 = vmatpush3.bf16.msra.mxu1 %v12085_v40  ;;  %v12109_v40 = vld [vmem:[%s14267_s5 + $0x8] sm:$0xff]  }
 0x61c   : > { %10759 = vmatprep.subr.bf16.mxu1 %v12086_v41  ;;  %v12111_v41 = vld [vmem:[%s14267_s5 + $0x18] sm:$0xff]  }
 0x61f   : > { %10760 = vmatpush3.bf16.msra.mxu1 %v12087_v42 }
 0x620   : > { %10761 = vmatprep.subr.bf16.mxu1 %v12088_v43 }
 0x623   : > { %10762 = vmatpush3.bf16.msra.mxu1 %v12089_v44 }
 0x624   : > { %11149 = vmatprep.subr.bf16.mxu1 %v12363_v36 }
 0x626   : > { %2360 = vmatmul.mubr.bf16.vlgmr.msra.gmra.mrb[28].mxu1 %v12583_v34 }
 0x627   : > { %11151 = vmatprep.mubr.msk.bf16.mxu1 %vm12364_vm0, %v12363_v36 }
 0x65d   : > { %v2657_v42 = vpop.permute.xlu0 %2656 }
 0x6d9   : > { %v2189_v45 = vpop.f32.mrb[24].mxu1 }
 0x6da   : > { %v12956_v46 = vadd.f32 %v2189_v45, %v1969_v13  ;;  %v11141_v48 = vpop.f32.mrb[25].mxu1  ;;  %v2653_v13 = vld [vmem:[%s14295_s27 + $0x8] sm:$0xff] }
 0x6db   : > { %v2192_v49 = vpop.f32.mrb[26].mxu1  ;;  %2661 = vperm.xlu0 %11952, %v2653_v13   ;;  %v12133_v13 = vld [vmem:[%s14267_s5 + $0x108] sm:$0xff]  }
 0x6dc   : > { %v12958_v50 = vadd.f32 %v2192_v49, %v1970_v16  ;;  %v11142_v51 = vpop.f32.mrb[27].mxu1  ;;  %v5598_v16 = vld [vmem:[%s14271_s9 + $0x20] sm:$0xff] }
 0x6df   : > { %4021 = vperm.xlu0 %11952, %v4007_v14   ;;  %v12134_v14 = vld [vmem:[%s14267_s5 + $0x110] sm:$0xff]  }
 0x6f9   : > { %v10763_v52 = vpop.f32.mrb[28].mxu1 }
 0x6fa   : > { %v10764_v53 = vpop.f32.mrb[29].mxu1 }
 0x6fb   : > { %v10765_v54 = vadd.f32 %v10764_v53, %v10763_v52  ;;  %v10766_v55 = vpop.f32.mrb[30].mxu1 }
 0x6fc   : > { %v10767_v56 = vpop.f32.mrb[31].mxu1  ;;  %v12112_v55 = vld [vmem:[%s14267_s5 + $0x20] sm:$0xff]  }
 0x6fd   : > { %v2370_v57 = vpack.c.bf16 %v10765_v54, %v10765_v54 }
 0x6ff   : > { %v2380_v59 = vand.u32 %v2370_v57, %v12598_v47  ;;  %v12113_v57 = vld [vmem:[%s14267_s5 + $0x28] sm:$0xff]  }
 0x701   : > { %11144 = vmatpush3.bf16.msra.mxu0 %v2380_v59  ;;  %v12115_v59 = vld [vmem:[%s14267_s5 + $0x38] sm:$0xff]  }
 0x702   : > { %10771 = vmatprep.subr.bf16.mxu0 %v12091_v58  ;;  %v12114_v58 = vld [vmem:[%s14267_s5 + $0x30] sm:$0xff]  }
 0x704   : > { %11146 = vmatmul.mubr.msk.bf16.vlgmr.msra.gmra.mrb[28].mxu0 %vm959_vm3, %v12090_v60  ;;  %v12116_v60 = vld [vmem:[%s14267_s5 + $0x40] sm:$0xff]  }
 0x705   : > { %10772 = vmatpush3.bf16.msra.mxu0 %v12092_v61  ;;  %2586 = vmatprep.mubr.bf16.mxu0 %v12585_v35  ;;  %v12098_v35 = vld [vmem:[%s14291_s1 + $0x418] sm:$0xff]   ;;  %v12117_v61 = vld [vmem:[%s14267_s5 + $0x48] sm:$0xff]  }
 0x706   : > { %10773 = vmatprep.subr.bf16.mxu0 %v12093_v62  ;;  %v12118_v62 = vld [vmem:[%s14267_s5 + $0x50] sm:$0xff]  }
 0x709   : > { %10774 = vmatpush3.bf16.msra.mxu0 %v12094_v63  ;;  %v12119_v63 = vld [vmem:[%s14267_s5 + $0x58] sm:$0xff]  }
 0x70a   : > { %10775 = vmatprep.subr.bf16.mxu0 %v12095_v0  ;;  %v12120_v0 = vld [vmem:[%s14267_s5 + $0x80] sm:$0xff]  }
 0x70d   : > { %10776 = vmatpush3.bf16.msra.mxu0 %v12096_v1  ;;  %v12121_v1 = vld [vmem:[%s14267_s5 + $0x88] sm:$0xff]  }
 0x70e   : > { %10777 = vmatprep.subr.bf16.mxu0 %v12097_v2  ;;  %v12122_v2 = vld [vmem:[%s14267_s5 + $0x90] sm:$0xff]  }
 0x711   : > { %10778 = vmatpush3.bf16.msra.mxu0 %v12098_v35  ;;  %v12123_v35 = vld [vmem:[%s14267_s5 + $0x98] sm:$0xff]  }
 0x712   : > { %10779 = vmatprep.subr.bf16.mxu0 %v12099_v3  ;;  %v12124_v3 = vld [vmem:[%s14267_s5 + $0xa0] sm:$0xff]  }
 0x715   : > { %10780 = vmatpush3.bf16.msra.mxu0 %v12100_v4  ;;  %v12125_v4 = vld [vmem:[%s14267_s5 + $0xa8] sm:$0xff]  }
 0x716   : > { %10781 = vmatprep.subr.bf16.mxu0 %v12101_v5  ;;  %v12126_v5 = vld [vmem:[%s14267_s5 + $0xb0] sm:$0xff]  }
 0x719   : > { %10782 = vmatpush3.bf16.msra.mxu0 %v12102_v6  ;;  %v12127_v6 = vld [vmem:[%s14267_s5 + $0xb8] sm:$0xff]  }
 0x71a   : > { %10783 = vmatprep.subr.bf16.mxu0 %v12103_v7  ;;  %v12128_v7 = vld [vmem:[%s14267_s5 + $0xc0] sm:$0xff]  }
 0x71d   : > { %10784 = vmatpush3.bf16.msra.mxu0 %v12104_v8  ;;  %v12129_v8 = vld [vmem:[%s14267_s5 + $0xc8] sm:$0xff]  }
 0x71e   : > { %10785 = vmatprep.subr.bf16.mxu0 %v12105_v9  ;;  %v12130_v9 = vld [vmem:[%s14267_s5 + $0xd0] sm:$0xff]  }
 0x721   : > { %10786 = vmatpush3.bf16.msra.mxu0 %v12106_v10  ;;  %v12131_v10 = vld [vmem:[%s14267_s5 + $0xd8] sm:$0xff]  }
 0x724   : > { %2587 = vmatmul.mubr.bf16.vlgmr.msra.gmra.mrb[32].mxu0 %v12583_v34  ;;  %v5594_v34 = vld [vmem:[%s14271_s9] sm:$0xff] }
 0x725   : > { %5604 = vperm.xlu0 %11952, %v5594_v34   ;;  %v12135_v34 = vld [vmem:[%s14267_s5 + $0x118] sm:$0xff]  }
 0x729   : > { %5614 = vperm.xlu0 %11952, %v5596_v15   ;;  %v12136_v15 = vld [vmem:[%s14266_s4 + $0x10] sm:$0xff]  }
 0x72a   : > { %11181 = vmatprep.mubr.msk.bf16.mxu0 %vm2841_vm5, %v12136_v15  ;;  %v12157_v15 = vld [vmem:[%s14267_s5 + $0xf8] sm:$0xff]  }
 0x72d   : > { %5624 = vperm.xlu0 %11952, %v5598_v16  }
 0x731   : > { %5634 = vperm.xlu0 %11952, %v5600_v17  }
 0x735   : > { %7003 = vperm.xlu0 %11952, %v6997_v18  }
 0x739   : > { %7013 = vperm.xlu0 %11952, %v6999_v19  }
 0x73d   : > { %8061 = vperm.xlu0 %11952, %v8057_v20  }
 0x741   : > { %9352 = vperm.xlu0 %11952, %v9349_v21  }
 0x75a   : > { %v2662_v51 = vpop.permute.xlu0 %2661 }
 0x7d7   : > { %v2416_v22 = vpop.f32.mrb[28].mxu0 }
 0x7d8   : > { %v2423_v23 = vadd.f32 %v2416_v22, %v12956_v46  ;;  %v11147_v24 = vpop.f32.mrb[29].mxu0 }
 0x7d9   : > { %v2419_v25 = vpop.f32.mrb[30].mxu0 }
 0x7da   : > { %v2424_v26 = vadd.f32 %v2419_v25, %v12958_v50  ;;  %v11148_v27 = vpop.f32.mrb[31].mxu0 }
 0x7db   : > { %v12138_v27 = vld [vmem:[%s14266_s4] sm:$0xff]  }
 0x7f7   : > { %v10787_v28 = vpop.f32.mrb[32].mxu0 }
 0x7f8   : > { %v10788_v29 = vpop.f32.mrb[33].mxu0 }
 0x7f9   : > { %v10789_v30 = vadd.f32 %v10788_v29, %v10787_v28  ;;  %v10790_v31 = vpop.f32.mrb[34].mxu0 }
 0x7fa   : > { %v10791_v32 = vpop.f32.mrb[35].mxu0 }
 0x7fb   : > { %v2597_v33 = vpack.c.bf16 %v10789_v30, %v10789_v30  ;;  %v12139_v30 = vld [vmem:[%s14266_s4 + $0x8] sm:$0xff]   ;;  %v12140_v32 = vld [vmem:[%s14266_s4 + $0x20] sm:$0xff]  }
 0x7fd   : > { %v2607_v37 = vand.u32 %v2597_v33, %v12598_v47  ;;  %v12110_v47 = vld [vmem:[%s14267_s5 + $0x10] sm:$0xff]  }
 0x7ff   : > { %11150 = vmatpush3.bf16.msra.mxu1 %v2607_v37 }
 0x800   : > { %11155 = vmatprep.subr.bf16.mxu1 %v12363_v36 }
 0x802   : > { %11152 = vmatmul.mubr.msk.bf16.vlgmr.msra.gmra.mrb[32].mxu1 %vm959_vm3, %v12107_v38  ;;  %v12141_v38 = vld [vmem:[%s14266_s4 + $0x28] sm:$0xff]  }
 0x803   : > { %11156 = vmatpush3.bf16.msra.mxu1 %v12108_v39  ;;  %11163 = vmatprep.mubr.msk.bf16.mxu1 %vm12364_vm0, %v12363_v36  ;;  %v12142_v39 = vld [vmem:[%s14267_s5 + $0x60] sm:$0xff]  }
 0x804   : > { %11157 = vmatprep.subr.bf16.mxu1 %v12363_v36 }
 0x807   : > { %11158 = vmatpush3.bf16.msra.mxu1 %v12109_v40 }
 0x808   : > { %11159 = vmatprep.subr.bf16.mxu1 %v12363_v36 }
 0x80b   : > { %11160 = vmatpush3.bf16.msra.mxu1 %v12110_v47 }
 0x80c   : > { %11161 = vmatprep.subr.bf16.mxu1 %v12363_v36 }
 0x80f   : > { %11162 = vmatpush3.bf16.msra.mxu1 %v12111_v41 }
 0x810   : > { %11167 = vmatprep.subr.bf16.mxu1 %v12363_v36 }
 0x8d5   : > { %v2643_v43 = vpop.f32.mrb[32].mxu1 }
 0x8d6   : > { %v2650_v44 = vadd.f32 %v2643_v43, %v2423_v23  ;;  %v11153_v45 = vpop.f32.mrb[33].mxu1 }
 0x8d7   : > { %v2646_v46 = vpop.f32.mrb[34].mxu1  ;;  %v12144_v45 = vld [vmem:[%s14267_s5 + $0x70] sm:$0xff]  }
 0x8d8   : > { %v2664_v48 = vadd.f32 %v2657_v42, %v2650_v44  ;;  %v2651_v49 = vadd.f32 %v2646_v46, %v2424_v26  ;;  %v11154_v50 = vpop.f32.mrb[35].mxu1  ;;  %v12137_v26 = vld [vmem:[%s14266_s4 + $0x18] sm:$0xff]   ;;  %v12143_v42 = vld [vmem:[%s14267_s5 + $0x68] sm:$0xff]  }
 0x8d9   : > { %v12145_v46 = vld [vmem:[%s14267_s5 + $0x78] sm:$0xff]  }
 0x8da   : > { %v2665_v52 = vadd.f32 %v2662_v51, %v2651_v49  ;;  %v2666_v53 = vmax.f32 %v2664_v48, 0.0 }
 0x8dc   : > { %v2667_v54 = vmax.f32 %v2665_v52, 0.0 }
 0x8de   : > { %v13079_v56 = vpack.c.bf16 %v2667_v54, %v2666_v53 }
 0x8e0   : > { %11164 = vmatmul.mubr.msk.bf16.vlgmr.msra.gmra.mrb[36].mxu1 %vm2701_vm4, %v13079_v56 }
 0x8e1   : > { %11168 = vmatpush3.bf16.msra.mxu1 %v12112_v55  ;;  %11175 = vmatprep.mubr.msk.bf16.mxu1 %vm12364_vm0, %v12363_v36 }
 0x8e2   : > { %11169 = vmatprep.subr.bf16.mxu1 %v12363_v36 }
 0x8e5   : > { %11170 = vmatpush3.bf16.msra.mxu1 %v12113_v57 }
 0x8e6   : > { %11171 = vmatprep.subr.bf16.mxu1 %v12363_v36 }
 0x8e9   : > { %11172 = vmatpush3.bf16.msra.mxu1 %v12114_v58 }
 0x8ea   : > { %11173 = vmatprep.subr.bf16.mxu1 %v12363_v36 }
 0x8ed   : > { %11174 = vmatpush3.bf16.msra.mxu1 %v12115_v59 }
 0x8ee   : > { %11191 = vmatprep.subr.bf16.mxu1 %v12363_v36 }
 0x8f0   : > { %11176 = vmatmul.mubr.msk.bf16.vlgmr.msra.gmra.mrb[40].mxu1 %vm2701_vm4, %v13079_v56 }
 0x8f1   : > { %11192 = vmatpush3.bf16.msra.mxu1 %v12116_v60  ;;  %11199 = vmatprep.mubr.msk.bf16.mxu1 %vm12364_vm0, %v12363_v36 }
 0x8f2   : > { %11193 = vmatprep.subr.bf16.mxu1 %v12363_v36 }
 0x8f5   : > { %11194 = vmatpush3.bf16.msra.mxu1 %v12117_v61 }
 0x8f6   : > { %11195 = vmatprep.subr.bf16.mxu1 %v12363_v36 }
 0x8f9   : > { %11196 = vmatpush3.bf16.msra.mxu1 %v12118_v62 }
 0x8fa   : > { %11197 = vmatprep.subr.bf16.mxu1 %v12363_v36 }
 0x8fd   : > { %11198 = vmatpush3.bf16.msra.mxu1 %v12119_v63 }
 0x8fe   : > { %11227 = vmatprep.subr.bf16.mxu1 %v12363_v36 }
 0x900   : > { %11200 = vmatmul.mubr.msk.bf16.vlgmr.msra.gmra.mrb[44].mxu1 %vm2701_vm4, %v13079_v56 }
 0x901   : > { %11228 = vmatpush3.bf16.msra.mxu1 %v12120_v0  ;;  %11235 = vmatprep.mubr.msk.bf16.mxu1 %vm12364_vm0, %v12363_v36  ;;  %v12146_v0 = vld [vmem:[%s14266_s4 + $0x30] sm:$0xff]  }
 0x902   : > { %11229 = vmatprep.subr.bf16.mxu1 %v12363_v36 }
 0x905   : > { %11230 = vmatpush3.bf16.msra.mxu1 %v12121_v1 }
 0x906   : > { %11231 = vmatprep.subr.bf16.mxu1 %v12363_v36 }
 0x909   : > { %11232 = vmatpush3.bf16.msra.mxu1 %v12122_v2 }
 0x90a   : > { %11233 = vmatprep.subr.bf16.mxu1 %v12363_v36 }
 0x90d   : > { %11234 = vmatpush3.bf16.msra.mxu1 %v12123_v35 }
 0x90e   : > { %11245 = vmatprep.subr.bf16.mxu1 %v12363_v36 }
 0x910   : > { %11236 = vmatmul.mubr.msk.bf16.vlgmr.msra.gmra.mrb[48].mxu1 %vm2701_vm4, %v13079_v56 }
 0x911   : > { %11246 = vmatpush3.bf16.msra.mxu1 %v12124_v3  ;;  %11253 = vmatprep.mubr.msk.bf16.mxu1 %vm12364_vm0, %v12363_v36 }
 0x912   : > { %11247 = vmatprep.subr.bf16.mxu1 %v12363_v36 }
 0x915   : > { %11248 = vmatpush3.bf16.msra.mxu1 %v12125_v4 }
 0x916   : > { %11249 = vmatprep.subr.bf16.mxu1 %v12363_v36 }
 0x919   : > { %11250 = vmatpush3.bf16.msra.mxu1 %v12126_v5  ;;  %v12147_v5 = vld [vmem:[%s14266_s4 + $0x38] sm:$0xff]  }
 0x91a   : > { %11251 = vmatprep.subr.bf16.mxu1 %v12363_v36 }
 0x91d   : > { %11252 = vmatpush3.bf16.msra.mxu1 %v12127_v6  ;;  %v12148_v6 = vld [vmem:[%s14266_s4 + $0x40] sm:$0xff]  }
 0x91e   : > { %11263 = vmatprep.subr.bf16.mxu1 %v12363_v36 }
 0x920   : > { %11254 = vmatmul.mubr.msk.bf16.vlgmr.msra.gmra.mrb[52].mxu1 %vm2701_vm4, %v13079_v56 }
 0x921   : > { %11264 = vmatpush3.bf16.msra.mxu1 %v12128_v7  ;;  %11271 = vmatprep.mubr.msk.bf16.mxu1 %vm12364_vm0, %v12363_v36  ;;  %v12149_v7 = vld [vmem:[%s14266_s4 + $0x48] sm:$0xff]  }
 0x922   : > { %11265 = vmatprep.subr.bf16.mxu1 %v12363_v36 }
 0x925   : > { %11266 = vmatpush3.bf16.msra.mxu1 %v12129_v8  ;;  %v12150_v8 = vld [vmem:[%s14266_s4 + $0x50] sm:$0xff]  }
 0x926   : > { %11267 = vmatprep.subr.bf16.mxu1 %v12363_v36 }
 0x929   : > { %11268 = vmatpush3.bf16.msra.mxu1 %v12130_v9  ;;  %v12151_v9 = vld [vmem:[%s14266_s4 + $0x58] sm:$0xff]  }
 0x92a   : > { %11269 = vmatprep.subr.bf16.mxu1 %v12363_v36 }
 0x92d   : > { %11270 = vmatpush3.bf16.msra.mxu1 %v12131_v10  ;;  %v12152_v10 = vld [vmem:[%s14266_s4 + $0x60] sm:$0xff]  }
 0x92e   : > { %11299 = vmatprep.subr.bf16.mxu1 %v12363_v36 }
 0x930   : > { %11272 = vmatmul.mubr.msk.bf16.vlgmr.msra.gmra.mrb[56].mxu1 %vm2701_vm4, %v13079_v56 }
 0x931   : > { %11300 = vmatpush3.bf16.msra.mxu1 %v12132_v11  ;;  %11307 = vmatprep.mubr.msk.bf16.mxu1 %vm12364_vm0, %v12363_v36  ;;  %v12153_v11 = vld [vmem:[%s14266_s4 + $0x68] sm:$0xff]  }
 0x932   : > { %11301 = vmatprep.subr.bf16.mxu1 %v12363_v36 }
 0x935   : > { %11302 = vmatpush3.bf16.msra.mxu1 %v12133_v13  ;;  %v12154_v13 = vld [vmem:[%s14267_s5 + $0xe0] sm:$0xff]  }
 0x936   : > { %11303 = vmatprep.subr.bf16.mxu1 %v12363_v36 }
 0x939   : > { %11304 = vmatpush3.bf16.msra.mxu1 %v12134_v14  ;;  %v12155_v14 = vld [vmem:[%s14267_s5 + $0xe8] sm:$0xff]  }
 0x93a   : > { %11305 = vmatprep.subr.bf16.mxu1 %v12363_v36 }
 0x93d   : > { %11306 = vmatpush3.bf16.msra.mxu1 %v12135_v34  ;;  %v12156_v34 = vld [vmem:[%s14267_s5 + $0xf0] sm:$0xff]  }
 0x940   : > { %11308 = vmatmul.mubr.msk.bf16.vlgmr.msra.gmra.mrb[60].mxu1 %vm2701_vm4, %v13079_v56 }
 0x9b3   : > { %v2739_v16 = vpop.f32.mrb[36].mxu1 }
 0x9b4   : > { %v11165_v17 = vpop.f32.mrb[37].mxu1 }
 0x9b5   : > { %v2742_v18 = vpop.f32.mrb[38].mxu1  ;;  %v4005_v17 = vld [vmem:[%s14268_s6] sm:$0xff] }
 0x9b6   : > { %v2750_v19 = vpack.c.bf16 %v2742_v18, %v2739_v16  ;;  %v11166_v20 = vpop.f32.mrb[39].mxu1  ;;  %v12158_v16 = vld [vmem:[%s14266_s4 + $0x70] sm:$0xff]   ;;  %4011 = vperm.xlu1 %11953, %v4005_v17   ;;  %v4006_v18 = vld [vmem:[%s14268_s6 + $0x8] sm:$0xff] }
 0x9b7   : > { %v5597_v20 = vld [vmem:[%s14271_s9 + $0x18] sm:$0xff] }
 0x9ba   : > { %4016 = vperm.xlu1 %11953, %v4006_v18  }
 0x9c3   : > { %v2818_v21 = vpop.f32.mrb[40].mxu1 }
 0x9c4   : > { %v11177_v22 = vpop.f32.mrb[41].mxu1 }
 0x9c5   : > { %v2821_v23 = vpop.f32.mrb[42].mxu1  ;;  %v5601_v22 = vld [vmem:[%s14271_s9 + $0x38] sm:$0xff] }
 0x9c6   : > { %v2830_v24 = vpack.c.bf16 %v2821_v23, %v2818_v21  ;;  %v11178_v25 = vpop.f32.mrb[43].mxu1  ;;  %v5599_v21 = vld [vmem:[%s14271_s9 + $0x28] sm:$0xff] }
 0x9c7   : > { %v6998_v23 = vld [vmem:[%s14274_s12 + $0x8] sm:$0xff] }
 0x9c8   : > { %11179 = vmatprep.subr.bf16.mxu0 %v2830_v24  ;;  %v8058_v25 = vld [vmem:[%s14277_s15 + $0x8] sm:$0xff] }
 0x9c9   : > { %11180 = vmatpush3.bf16.msra.mxu0 %v2830_v24  ;;  %v7000_v24 = vld [vmem:[%s14274_s12 + $0x18] sm:$0xff] }
 0x9ca   : > { %11185 = vmatprep.subr.bf16.mxu0 %v2750_v19 }
 0x9cc   : > { %11182 = vmatmul.mubr.msk.bf16.vlgmr.msra.gmra.mrb[36].mxu0 %vm2841_vm5, %v12137_v26 }
 0x9cd   : > { %11186 = vmatpush3.bf16.msra.mxu0 %v2750_v19  ;;  %11187 = vmatprep.mubr.msk.bf16.mxu0 %vm2841_vm5, %v12138_v27  ;;  %v5595_v19 = vld [vmem:[%s14271_s9 + $0x8] sm:$0xff] }
 0x9d3   : > { %v3029_v28 = vpop.f32.mrb[44].mxu1 }
 0x9d4   : > { %v11201_v29 = vpop.f32.mrb[45].mxu1 }
 0x9d5   : > { %v3032_v31 = vpop.f32.mrb[46].mxu1 }
 0x9d6   : > { %v3041_v33 = vpack.c.bf16 %v3032_v31, %v3029_v28  ;;  %v11202_v37 = vpop.f32.mrb[47].mxu1  ;;  %v12159_v31 = vld [vmem:[%s14266_s4 + $0x78] sm:$0xff]  }
 0x9d7   : > { %v12162_v37 = vld [vmem:[%s14270_s8] sm:$0xff]  }
 0x9d8   : > { %11188 = vmatmul.mubr.msk.bf16.vlgmr.msra.gmra.mrb[36].mxu0 %vm2841_vm5, %v12139_v30  ;;  %11203 = vmatprep.subr.bf16.mxu0 %v3041_v33 }
 0x9d9   : > { %11204 = vmatpush3.bf16.msra.mxu0 %v3041_v33  ;;  %11205 = vmatprep.mubr.msk.bf16.mxu0 %vm2841_vm5, %v12140_v32  ;;  %v12160_v32 = vld [vmem:[%s14266_s4 + $0x80] sm:$0xff]   ;;  %v12161_v33 = vld [vmem:[%s14266_s4 + $0x88] sm:$0xff]  }
 0x9da   : > { %11209 = vmatprep.subr.bf16.mxu0 %v12363_v36  ;;  %11317 = vmatprep.subr.bf16.mxu1 %v12162_v37 }
 0x9db   : > { %11318 = vmatpush3.bf16.msra.mxu1 %v12162_v37  ;;  %v12177_v37 = vld [vmem:[%s14269_s7 + $0x10] sm:$0xff]  }
 0x9e3   : > { %v3327_v40 = vpop.f32.mrb[48].mxu1 }
 0x9e4   : > { %11206 = vmatmul.mubr.msk.bf16.vlgmr.msra.gmra.mrb[36].mxu0 %vm2841_vm5, %v12141_v38  ;;  %v11237_v47 = vpop.f32.mrb[49].mxu1  ;;  %v12163_v38 = vld [vmem:[%s14270_s8 + $0x8] sm:$0xff]  }
 0x9e5   : > { %11210 = vmatpush3.bf16.msra.mxu0 %v12142_v39  ;;  %v3330_v41 = vpop.f32.mrb[50].mxu1  ;;  %11217 = vmatprep.mubr.msk.bf16.mxu0 %vm12364_vm0, %v12363_v36  ;;  %v4022_v47 = vpop.permute.xlu0 %4021 }
 0x9e6   : > { %v3339_v43 = vpack.c.bf16 %v3330_v41, %v3327_v40  ;;  %v11238_v44 = vpop.f32.mrb[51].mxu1  ;;  %11211 = vmatprep.subr.bf16.mxu0 %v12363_v36  ;;  %11323 = vmatprep.subr.bf16.mxu1 %v12163_v38 }
 0x9e9   : > { %11212 = vmatpush3.bf16.msra.mxu0 %v12143_v42 }
 0x9ea   : > { %11213 = vmatprep.subr.bf16.mxu0 %v12363_v36 }
 0x9ed   : > { %11214 = vmatpush3.bf16.msra.mxu0 %v12144_v45 }
 0x9ee   : > { %11215 = vmatprep.subr.bf16.mxu0 %v12363_v36 }
 0x9f1   : > { %11216 = vmatpush3.bf16.msra.mxu0 %v12145_v46 }
 0x9f3   : > { %v3476_v48 = vpop.f32.mrb[52].mxu1 }
 0x9f4   : > { %11218 = vmatmul.mubr.msk.bf16.vlgmr.msra.gmra.mrb[40].mxu0 %vm2701_vm4, %v13079_v56  ;;  %v11255_v49 = vpop.f32.mrb[53].mxu1 }
 0x9f5   : > { %v3479_v50 = vpop.f32.mrb[54].mxu1  ;;  %11223 = vmatprep.mubr.msk.bf16.mxu0 %vm2841_vm5, %v12146_v0  ;;  %v12170_v0 = vld [vmem:[%s14270_s8 + $0x40] sm:$0xff]  }
 0x9f6   : > { %v3488_v51 = vpack.c.bf16 %v3479_v50, %v3476_v48  ;;  %v11256_v52 = vpop.f32.mrb[55].mxu1 }
 0xa03   : > { %v3625_v53 = vpop.f32.mrb[56].mxu1 }
 0xa04   : > { %v11273_v54 = vpop.f32.mrb[57].mxu1 }
 0xa05   : > { %v3628_v55 = vpop.f32.mrb[58].mxu1 }
 0xa06   : > { %v3637_v57 = vpack.c.bf16 %v3628_v55, %v3625_v53  ;;  %v11274_v58 = vpop.f32.mrb[59].mxu1 }
 0xa07   : > { %v12164_v58 = vld [vmem:[%s14270_s8 + $0x10] sm:$0xff]  }
 0xa13   : > { %v3923_v59 = vpop.f32.mrb[60].mxu1 }
 0xa14   : > { %v11309_v60 = vpop.f32.mrb[61].mxu1 }
 0xa15   : > { %v3926_v61 = vpop.f32.mrb[62].mxu1  ;;  %v12166_v60 = vld [vmem:[%s14270_s8 + $0x20] sm:$0xff]  }
 0xa16   : > { %v13243_v62 = vpack.c.bf16 %v3926_v61, %v3923_v59  ;;  %v11310_v63 = vpop.f32.mrb[63].mxu1  ;;  %v12165_v59 = vld [vmem:[%s14270_s8 + $0x18] sm:$0xff]   ;;  %v12167_v61 = vld [vmem:[%s14270_s8 + $0x28] sm:$0xff]  }
 0xa17   : > { %v12169_v63 = vld [vmem:[%s14270_s8 + $0x38] sm:$0xff]  }
 0xa35   : > { %v4012_v39 = vpop.permute.xlu1 %4011 }
 0xa39   : > { %v4017_v40 = vpop.permute.xlu1 %4016 }
 0xac7   : > { %v3178_v1 = vpop.f32.mrb[40].mxu0 }
 0xac8   : > { %v11219_v2 = vpop.f32.mrb[41].mxu0 }
 0xac9   : > { %v3181_v35 = vpop.f32.mrb[42].mxu0 }
 0xaca   : > { %v3190_v3 = vpack.c.bf16 %v3181_v35, %v3178_v1  ;;  %v11220_v4 = vpop.f32.mrb[43].mxu0  ;;  %v12171_v1 = vld [vmem:[%s14269_s7 + $0x20] sm:$0xff]  }
 0xacc   : > { %11221 = vmatprep.subr.bf16.mxu0 %v3190_v3 }
 0xacd   : > { %11222 = vmatpush3.bf16.msra.mxu0 %v3190_v3 }
 0xace   : > { %11239 = vmatprep.subr.bf16.mxu0 %v3339_v43 }
 0xad0   : > { %11224 = vmatmul.mubr.msk.bf16.vlgmr.msra.gmra.mrb[36].mxu0 %vm2841_vm5, %v12147_v5 }
 0xad1   : > { %11240 = vmatpush3.bf16.msra.mxu0 %v3339_v43  ;;  %11241 = vmatprep.mubr.msk.bf16.mxu0 %vm2841_vm5, %v12148_v6 }
 0xad2   : > { %11257 = vmatprep.subr.bf16.mxu0 %v3488_v51 }
 0xadc   : > { %11242 = vmatmul.mubr.msk.bf16.vlgmr.msra.gmra.mrb[36].mxu0 %vm2841_vm5, %v12149_v7 }
 0xadd   : > { %11258 = vmatpush3.bf16.msra.mxu0 %v3488_v51  ;;  %11259 = vmatprep.mubr.msk.bf16.mxu0 %vm2841_vm5, %v12150_v8 }
 0xade   : > { %11275 = vmatprep.subr.bf16.mxu0 %v3637_v57 }
 0xae8   : > { %11260 = vmatmul.mubr.msk.bf16.vlgmr.msra.gmra.mrb[36].mxu0 %vm2841_vm5, %v12151_v9 }
 0xae9   : > { %11276 = vmatpush3.bf16.msra.mxu0 %v3637_v57  ;;  %11277 = vmatprep.mubr.msk.bf16.mxu0 %vm2841_vm5, %v12152_v10 }
 0xaea   : > { %11281 = vmatprep.subr.bf16.mxu0 %v12363_v36 }
 0xaf4   : > { %11278 = vmatmul.mubr.msk.bf16.vlgmr.msra.gmra.mrb[36].mxu0 %vm2841_vm5, %v12153_v11 }
 0xaf5   : > { %11282 = vmatpush3.bf16.msra.mxu0 %v12154_v13  ;;  %11289 = vmatprep.mubr.msk.bf16.mxu0 %vm12364_vm0, %v12363_v36 }
 0xaf6   : > { %11283 = vmatprep.subr.bf16.mxu0 %v12363_v36 }
 0xaf9   : > { %11284 = vmatpush3.bf16.msra.mxu0 %v12155_v14 }
 0xafa   : > { %11285 = vmatprep.subr.bf16.mxu0 %v12363_v36 }
 0xafd   : > { %11286 = vmatpush3.bf16.msra.mxu0 %v12156_v34 }
 0xafe   : > { %11287 = vmatprep.subr.bf16.mxu0 %v12363_v36 }
 0xb01   : > { %11288 = vmatpush3.bf16.msra.mxu0 %v12157_v15 }
 0xb04   : > { %11290 = vmatmul.mubr.msk.bf16.vlgmr.msra.gmra.mrb[44].mxu0 %vm2701_vm4, %v13079_v56  ;;  %v4008_v56 = vld [vmem:[%s14268_s6 + $0x18] sm:$0xff] }
 0xb05   : > { %11295 = vmatprep.mubr.msk.bf16.mxu0 %vm2841_vm5, %v12158_v16  ;;  %4026 = vperm.xlu1 %11953, %v4008_v56   ;;  %v12172_v16 = vld [vmem:[%s14269_s7 + $0x28] sm:$0xff]   ;;  %v12173_v56 = vld [vmem:[%s14269_s7 + $0x30] sm:$0xff]  }
 0xb09   : > { %5609 = vperm.xlu1 %11953, %v5595_v19  }
 0xb0d   : > { %5619 = vperm.xlu1 %11953, %v5597_v20  }
 0xb11   : > { %5629 = vperm.xlu1 %11953, %v5599_v21  }
 0xb15   : > { %5639 = vperm.xlu1 %11953, %v5601_v22  }
 0xb19   : > { %7008 = vperm.xlu1 %11953, %v6998_v23   ;;  %v12174_v23 = vld [vmem:[%s14269_s7 + $0x38] sm:$0xff]  }
 0xb1d   : > { %7018 = vperm.xlu1 %11953, %v7000_v24  }
 0xb21   : > { %8066 = vperm.xlu1 %11953, %v8058_v25  }
 0xb84   : > { %v4027_v44 = vpop.permute.xlu1 %4026 }
 0xbd7   : > { %v3774_v26 = vpop.f32.mrb[44].mxu0 }
 0xbd8   : > { %v11291_v27 = vpop.f32.mrb[45].mxu0 }
 0xbd9   : > { %v3777_v28 = vpop.f32.mrb[46].mxu0 }
 0xbda   : > { %v3786_v29 = vpack.c.bf16 %v3777_v28, %v3774_v26  ;;  %v11292_v30 = vpop.f32.mrb[47].mxu0  ;;  %v12175_v26 = vld [vmem:[%s14269_s7] sm:$0xff]  }
 0xbdc   : > { %11293 = vmatprep.subr.bf16.mxu0 %v3786_v29 }
 0xbdd   : > { %11294 = vmatpush3.bf16.msra.mxu0 %v3786_v29 }
 0xbde   : > { %11311 = vmatprep.subr.bf16.mxu0 %v13243_v62 }
 0xbe0   : > { %11296 = vmatmul.mubr.msk.bf16.vlgmr.msra.gmra.mrb[36].mxu0 %vm2841_vm5, %v12159_v31  ;;  %v12176_v31 = vld [vmem:[%s14269_s7 + $0x8] sm:$0xff]  }
 0xbe1   : > { %11312 = vmatpush3.bf16.msra.mxu0 %v13243_v62  ;;  %11313 = vmatprep.mubr.msk.bf16.mxu0 %vm2841_vm5, %v12160_v32  ;;  %v12168_v62 = vld [vmem:[%s14270_s8 + $0x30] sm:$0xff]  }
 0xbec   : > { %11314 = vmatmul.mubr.msk.bf16.vlgmr.msra.gmra.mrb[36].mxu0 %vm2841_vm5, %v12161_v33 }
 0xbed   : > { %11333 = vmatprep.mubr.msk.bf16.mxu0 %vm4201_vm6, %v12171_v1 }
 0xcbf   : > { %v11315_v41 = vpop.f32.mrb[36].mxu0 }
 0xcc0   : > { %v4031_v42 = vadd.f32 %v11315_v41, %v4022_v47  ;;  %v3986_v43 = vpop.f32.mrb[37].mxu0  ;;  %v12178_v41 = vld [vmem:[%s14269_s7 + $0x18] sm:$0xff]  }
 0xcc1   : > { %v4029_v45 = vadd.f32 %v4012_v39, %v3986_v43  ;;  %v11316_v46 = vpop.f32.mrb[38].mxu0 }
 0xcc2   : > { %v4032_v48 = vadd.f32 %v11316_v46, %v4027_v44  ;;  %v3989_v49 = vpop.f32.mrb[39].mxu0  ;;  %v4035_v51 = vmax.f32 %v4031_v42, 0.0  ;;  %v12179_v44 = vld [vmem:[%s14269_s7 + $0x40] sm:$0xff]  }
 0xcc3   : > { %v4030_v50 = vadd.f32 %v4017_v40, %v3989_v49  ;;  %v4033_v53 = vmax.f32 %v4029_v45, 0.0 }
 0xcc4   : > { %v4036_v52 = vmax.f32 %v4032_v48, 0.0 }
 0xcc5   : > { %v4034_v54 = vmax.f32 %v4030_v50, 0.0  ;;  %v12180_v50 = vld [vmem:[%s14269_s7 + $0x48] sm:$0xff]  }
 0xcc6   : > { %v4038_v55 = vpack.c.bf16 %v4036_v52, %v4035_v51 }
 0xcc7   : > { %v4037_v57 = vpack.c.bf16 %v4034_v54, %v4033_v53  ;;  %v12181_v53 = vld [vmem:[%s14269_s7 + $0x50] sm:$0xff]  }
 0xcc9   : > { %11319 = vmatprep.mubr.msk.bf16.mxu1 %vm2841_vm5, %v4037_v57 }
 0xcca   : > { %11320 = vmatmul.mubr.msk.bf16.vlgmr.msra.gmra.mrb[64].mxu1 %vm2841_vm5, %v4038_v55 }
 0xccb   : > { %11325 = vmatprep.mubr.msk.bf16.mxu1 %vm2841_vm5, %v4037_v57  ;;  %11324 = vmatpush3.bf16.msra.mxu1 %v12163_v38 }
 0xccc   : > { %11353 = vmatprep.subr.bf16.mxu1 %v12164_v58 }
 0xcd2   : > { %11326 = vmatmul.mubr.msk.bf16.vlgmr.msra.gmra.mrb[68].mxu1 %vm2841_vm5, %v4038_v55 }
 0xcd3   : > { %11355 = vmatprep.mubr.msk.bf16.mxu1 %vm2841_vm5, %v4037_v57  ;;  %11354 = vmatpush3.bf16.msra.mxu1 %v12164_v58 }
 0xcd4   : > { %11371 = vmatprep.subr.bf16.mxu1 %v12165_v59 }
 0xcda   : > { %11356 = vmatmul.mubr.msk.bf16.vlgmr.msra.gmra.mrb[72].mxu1 %vm2841_vm5, %v4038_v55 }
 0xcdb   : > { %11373 = vmatprep.mubr.msk.bf16.mxu1 %vm2841_vm5, %v4037_v57  ;;  %11372 = vmatpush3.bf16.msra.mxu1 %v12165_v59  ;;  %v12182_v59 = vld [vmem:[%s14269_s7 + $0x58] sm:$0xff]  }
 0xcdc   : > { %11389 = vmatprep.subr.bf16.mxu1 %v12166_v60 }
 0xce2   : > { %11374 = vmatmul.mubr.msk.bf16.vlgmr.msra.gmra.mrb[76].mxu1 %vm2841_vm5, %v4038_v55 }
 0xce3   : > { %11391 = vmatprep.mubr.msk.bf16.mxu1 %vm2841_vm5, %v4037_v57  ;;  %11390 = vmatpush3.bf16.msra.mxu1 %v12166_v60 }
 0xce4   : > { %11407 = vmatprep.subr.bf16.mxu1 %v12167_v61 }
 0xcea   : > { %11392 = vmatmul.mubr.msk.bf16.vlgmr.msra.gmra.mrb[80].mxu1 %vm2841_vm5, %v4038_v55 }
 0xceb   : > { %11409 = vmatprep.mubr.msk.bf16.mxu1 %vm2841_vm5, %v4037_v57  ;;  %11408 = vmatpush3.bf16.msra.mxu1 %v12167_v61 }
 0xcec   : > { %11425 = vmatprep.subr.bf16.mxu1 %v12168_v62 }
 0xcf2   : > { %11410 = vmatmul.mubr.msk.bf16.vlgmr.msra.gmra.mrb[84].mxu1 %vm2841_vm5, %v4038_v55 }
 0xcf3   : > { %11427 = vmatprep.mubr.msk.bf16.mxu1 %vm2841_vm5, %v4037_v57  ;;  %11426 = vmatpush3.bf16.msra.mxu1 %v12168_v62  ;;  %v12183_v62 = vld [vmem:[%s14269_s7 + $0x60] sm:$0xff]  }
 0xcf4   : > { %11443 = vmatprep.subr.bf16.mxu1 %v12169_v63 }
 0xcfa   : > { %11428 = vmatmul.mubr.msk.bf16.vlgmr.msra.gmra.mrb[88].mxu1 %vm2841_vm5, %v4038_v55 }
 0xcfb   : > { %11445 = vmatprep.mubr.msk.bf16.mxu1 %vm2841_vm5, %v4037_v57  ;;  %11444 = vmatpush3.bf16.msra.mxu1 %v12169_v63 }
 0xcfc   : > { %11461 = vmatprep.subr.bf16.mxu1 %v12170_v0 }
 0xd02   : > { %11446 = vmatmul.mubr.msk.bf16.vlgmr.msra.gmra.mrb[92].mxu1 %vm2841_vm5, %v4038_v55 }
 0xd03   : > { %11463 = vmatprep.mubr.msk.bf16.mxu1 %vm2841_vm5, %v4037_v57  ;;  %11462 = vmatpush3.bf16.msra.mxu1 %v12170_v0 }
 0xd0a   : > { %11464 = vmatmul.mubr.msk.bf16.vlgmr.msra.gmra.mrb[96].mxu1 %vm2841_vm5, %v4038_v55 }
 0xd9d   : > { %v11321_v2 = vpop.f32.mrb[64].mxu1 }
 0xd9e   : > { %v4087_v35 = vpop.f32.mrb[65].mxu1 }
 0xd9f   : > { %v11322_v3 = vpop.f32.mrb[66].mxu1 }
 0xda0   : > { %v4111_v4 = vpack.c.bf16 %v11322_v3, %v11321_v2  ;;  %v4090_v5 = vpop.f32.mrb[67].mxu1 }
 0xda1   : > { %v4110_v6 = vpack.c.bf16 %v4090_v5, %v4087_v35  ;;  %v12184_v35 = vld [vmem:[%s14269_s7 + $0x68] sm:$0xff]   ;;  %v12185_v5 = vld [vmem:[%s14269_s7 + $0x70] sm:$0xff]  }
 0xda5   : > { %v11327_v7 = vpop.f32.mrb[68].mxu1 }
 0xda6   : > { %v4155_v8 = vpop.f32.mrb[69].mxu1 }
 0xda7   : > { %v11328_v9 = vpop.f32.mrb[70].mxu1 }
 0xda8   : > { %v4180_v10 = vpack.c.bf16 %v11328_v9, %v11327_v7  ;;  %v4158_v11 = vpop.f32.mrb[71].mxu1  ;;  %v12186_v7 = vld [vmem:[%s14269_s7 + $0x78] sm:$0xff]   ;;  %v12188_v9 = vld [vmem:[%s14269_s7 + $0x88] sm:$0xff]  }
 0xda9   : > { %v4179_v13 = vpack.c.bf16 %v4158_v11, %v4155_v8  ;;  %v12187_v8 = vld [vmem:[%s14269_s7 + $0x80] sm:$0xff]   ;;  %v12190_v11 = vld [vmem:[%s14269_s7 + $0x98] sm:$0xff]  }
 0xdab   : > { %11329 = vmatprep.subr.bf16.mxu0 %v4179_v13 }
 0xdac   : > { %11330 = vmatpush3.bf16.msra.mxu0 %v4179_v13  ;;  %v12191_v13 = vld [vmem:[%s14269_s7 + $0xa0] sm:$0xff]  }
 0xdad   : > { %11331 = vmatprep.subr.bf16.mxu0 %v4180_v10  ;;  %v11357_v14 = vpop.f32.mrb[72].mxu1 }
 0xdae   : > { %v4419_v34 = vpop.f32.mrb[73].mxu1 }
 0xdaf   : > { %v11358_v15 = vpop.f32.mrb[74].mxu1 }
 0xdb0   : > { %v4444_v17 = vpack.c.bf16 %v11358_v15, %v11357_v14  ;;  %11332 = vmatpush3.bf16.msra.mxu0 %v4180_v10  ;;  %v4422_v18 = vpop.f32.mrb[75].mxu1  ;;  %v12189_v10 = vld [vmem:[%s14269_s7 + $0x90] sm:$0xff]   ;;  %v12192_v14 = vld [vmem:[%s14269_s7 + $0xa8] sm:$0xff]   ;;  %v12194_v15 = vld [vmem:[%s14269_s7 + $0xb8] sm:$0xff]  }
 0xdb1   : > { %v4443_v19 = vpack.c.bf16 %v4422_v18, %v4419_v34  ;;  %11341 = vmatprep.subr.bf16.mxu0 %v4110_v6  ;;  %v12193_v34 = vld [vmem:[%s14269_s7 + $0xb0] sm:$0xff]  }
 0xdb2   : > { %v12197_v18 = vld [vmem:[%s14269_s7 + $0xd0] sm:$0xff]  }
 0xdb3   : > { %11334 = vmatmul.mubr.msk.bf16.vlgmr.msra.gmra.mrb[48].mxu0 %vm4201_vm6, %v12172_v16  ;;  %v12195_v16 = vld [vmem:[%s14269_s7 + $0xc0] sm:$0xff]  }
 0xdb4   : > { %11342 = vmatpush3.bf16.msra.mxu0 %v4110_v6  ;;  %11337 = vmatprep.mubr.msk.bf16.mxu0 %vm4201_vm6, %v12173_v56  ;;  %v12198_v56 = vld [vmem:[%s14269_s7 + $0xd8] sm:$0xff]  }
 0xdb5   : > { %11343 = vmatprep.subr.bf16.mxu0 %v4111_v4  ;;  %v11375_v20 = vpop.f32.mrb[76].mxu1 }
 0xdb6   : > { %v4593_v21 = vpop.f32.mrb[77].mxu1 }
 0xdb7   : > { %v11376_v22 = vpop.f32.mrb[78].mxu1 }
 0xdb8   : > { %v4618_v24 = vpack.c.bf16 %v11376_v22, %v11375_v20  ;;  %11344 = vmatpush3.bf16.msra.mxu0 %v4111_v4  ;;  %v4596_v25 = vpop.f32.mrb[79].mxu1  ;;  %v12200_v20 = vld [vmem:[%s14269_s7 + $0xe8] sm:$0xff]   ;;  %v12202_v22 = vld [vmem:[%s14269_s7 + $0xf8] sm:$0xff]  }
 0xdb9   : > { %v4617_v27 = vpack.c.bf16 %v4596_v25, %v4593_v21  ;;  %11359 = vmatprep.subr.bf16.mxu0 %v4443_v19  ;;  %v12201_v21 = vld [vmem:[%s14269_s7 + $0xf0] sm:$0xff]  }
 0xdba   : > { %v12205_v25 = vld [vmem:[%s14269_s7 + $0x110] sm:$0xff]  }
 0xdbb   : > { %11338 = vmatmul.mubr.msk.bf16.gmra.mrb[52].mxu0 %vm4201_vm6, %v12174_v23  ;;  %v12203_v23 = vld [vmem:[%s14269_s7 + $0x100] sm:$0xff]  }
 0xdbc   : > { %11345 = vmatprep.mubr.msk.bf16.mxu0 %vm4201_vm6, %v12175_v26  ;;  %v12206_v26 = vld [vmem:[%s14269_s7 + $0x118] sm:$0xff]  }
 0xdbd   : > { %v11393_v28 = vpop.f32.mrb[80].mxu1 }
 0xdbe   : > { %v4767_v29 = vpop.f32.mrb[81].mxu1 }
 0xdbf   : > { %v11394_v30 = vpop.f32.mrb[82].mxu1 }
 0xdc0   : > { %v4792_v32 = vpack.c.bf16 %v11394_v30, %v11393_v28  ;;  %v4770_v33 = vpop.f32.mrb[83].mxu1  ;;  %v10271_v28 = vld [vmem:[%s14273_s11 + $0x8] sm:$0x3] }
 0xdc1   : > { %v4791_v38 = vpack.c.bf16 %v4770_v33, %v4767_v29  ;;  %v6260_v30 = vsel %vm964_vm2, %v10271_v28, 0  ;;  %v5605_v33 = vpop.permute.xlu0 %5604 }
 0xdc3   : > { %11346 = vmatmul.mubr.msk.bf16.vlgmr.msra.gmra.mrb[48].mxu0 %vm4201_vm6, %v12176_v31  ;;  %v10228_v31 = vld [vmem:[%s14273_s11 + $0x2] sm:$0x3] }
 0xdc4   : > { %11360 = vmatpush3.bf16.msra.mxu0 %v4443_v19  ;;  %11349 = vmatprep.mubr.msk.bf16.mxu0 %vm4201_vm6, %v12177_v37  ;;  %v12199_v19 = vld [vmem:[%s14269_s7 + $0xe0] sm:$0xff]   ;;  %v5610_v37 = vpop.permute.xlu1 %5609 }
 0xdc5   : > { %11361 = vmatprep.subr.bf16.mxu0 %v4444_v17  ;;  %v11411_v39 = vpop.f32.mrb[84].mxu1 }
 0xdc6   : > { %v4941_v40 = vpop.f32.mrb[85].mxu1 }
 0xdc7   : > { %v11412_v47 = vpop.f32.mrb[86].mxu1 }
 0xdc8   : > { %11362 = vmatpush3.bf16.msra.mxu0 %v4444_v17  ;;  %v4966_v42 = vpack.c.bf16 %v11412_v47, %v11411_v39  ;;  %v4944_v43 = vpop.f32.mrb[87].mxu1  ;;  %v12196_v17 = vld [vmem:[%s14269_s7 + $0xc8] sm:$0xff]   ;;  %v5620_v39 = vpop.permute.xlu1 %5619 }
 0xdc9   : > { %11377 = vmatprep.subr.bf16.mxu0 %v4617_v27  ;;  %v4965_v45 = vpack.c.bf16 %v4944_v43, %v4941_v40 }
 0xdcb   : > { %11350 = vmatmul.mubr.msk.bf16.gmra.mrb[52].mxu0 %vm4201_vm6, %v12178_v41 }
 0xdcc   : > { %11363 = vmatprep.mubr.msk.bf16.mxu0 %vm4201_vm6, %v12179_v44 }
 0xdcd   : > { %v11429_v46 = vpop.f32.mrb[88].mxu1 }
 0xdce   : > { %v5115_v48 = vpop.f32.mrb[89].mxu1 }
 0xdcf   : > { %v11430_v49 = vpop.f32.mrb[90].mxu1 }
 0xdd0   : > { %v5140_v51 = vpack.c.bf16 %v11430_v49, %v11429_v46  ;;  %v5118_v52 = vpop.f32.mrb[91].mxu1 }
 0xdd1   : > { %v5139_v54 = vpack.c.bf16 %v5118_v52, %v5115_v48  ;;  %v5630_v48 = vpop.permute.xlu1 %5629 }
 0xdd3   : > { %11364 = vmatmul.mubr.msk.bf16.vlgmr.msra.gmra.mrb[48].mxu0 %vm4201_vm6, %v12180_v50 }
 0xdd4   : > { %11378 = vmatpush3.bf16.msra.mxu0 %v4617_v27  ;;  %11367 = vmatprep.mubr.msk.bf16.mxu0 %vm4201_vm6, %v12181_v53  ;;  %v5662_v27 = vld [vmem:[%s14273_s11] sm:$0x3] }
 0xdd5   : > { %11379 = vmatprep.subr.bf16.mxu0 %v4618_v24  ;;  %v11447_v55 = vpop.f32.mrb[92].mxu1  ;;  %11931 = vmatprep.subr.msk.bf16.mxu1 %vm964_vm2, %v5662_v27  ;;  %v5677_v29 = vsel %vm964_vm2, %v5662_v27, 0 }
 0xdd6   : > { %v5289_v57 = vpop.f32.mrb[93].mxu1  ;;  %11480 = vmatpush3.bf16.msra.mxu1 %v5677_v29 }
 0xdd7   : > { %v11448_v58 = vpop.f32.mrb[94].mxu1  ;;  %11932 = vmatprep.subr.msk.bf16.mxu1 %vm964_vm2, %v10228_v31 }
 0xdd8   : > { %11380 = vmatpush3.bf16.msra.mxu0 %v4618_v24  ;;  %v5314_v60 = vpack.c.bf16 %v11448_v58, %v11447_v55  ;;  %v5292_v61 = vpop.f32.mrb[95].mxu1  ;;  %v12204_v24 = vld [vmem:[%s14269_s7 + $0x108] sm:$0xff]  }
 0xdd9   : > { %11395 = vmatprep.subr.bf16.mxu0 %v4791_v38  ;;  %v5313_v63 = vpack.c.bf16 %v5292_v61, %v5289_v57  ;;  %v5755_v61 = vsel %vm964_vm2, %v10228_v31, 0 }
 0xddb   : > { %11368 = vmatmul.mubr.msk.bf16.gmra.mrb[52].mxu0 %vm4201_vm6, %v12182_v59 }
 0xddc   : > { %11381 = vmatprep.mubr.msk.bf16.mxu0 %vm4201_vm6, %v12183_v62 }
 0xddd   : > { %v11465_v0 = vpop.f32.mrb[96].mxu1 }
 0xdde   : > { %v5463_v1 = vpop.f32.mrb[97].mxu1 }
 0xddf   : > { %v11466_v2 = vpop.f32.mrb[98].mxu1 }
 0xde0   : > { %v5488_v3 = vpack.c.bf16 %v11466_v2, %v11465_v0  ;;  %v5466_v4 = vpop.f32.mrb[99].mxu1  ;;  %v10297_v2 = vld [vmem:[%s14273_s11 + $0xc] sm:$0x3] }
 0xde1   : > { %v5487_v6 = vpack.c.bf16 %v5466_v4, %v5463_v1 }
 0xde3   : > { %11382 = vmatmul.mubr.msk.bf16.vlgmr.msra.gmra.mrb[48].mxu0 %vm4201_vm6, %v12184_v35 }
 0xde4   : > { %11396 = vmatpush3.bf16.msra.mxu0 %v4791_v38  ;;  %11385 = vmatprep.mubr.msk.bf16.mxu0 %vm4201_vm6, %v12185_v5  ;;  %v5615_v38 = vpop.permute.xlu0 %5614 }
 0xde5   : > { %11397 = vmatprep.subr.bf16.mxu0 %v4792_v32 }
 0xde8   : > { %11398 = vmatpush3.bf16.msra.mxu0 %v4792_v32  ;;  %v10284_v32 = vld [vmem:[%s14273_s11 + $0xa] sm:$0x3] }
 0xde9   : > { %11413 = vmatprep.subr.bf16.mxu0 %v4965_v45  ;;  %v6408_v62 = vsel %vm964_vm2, %v10284_v32, 0 }
 0xdeb   : > { %11386 = vmatmul.mubr.msk.bf16.gmra.mrb[52].mxu0 %vm4201_vm6, %v12186_v7 }
 0xdec   : > { %11399 = vmatprep.mubr.msk.bf16.mxu0 %vm4201_vm6, %v12187_v8 }
 0xdf3   : > { %11400 = vmatmul.mubr.msk.bf16.vlgmr.msra.gmra.mrb[48].mxu0 %vm4201_vm6, %v12188_v9 }
 0xdf4   : > { %11414 = vmatpush3.bf16.msra.mxu0 %v4965_v45  ;;  %11403 = vmatprep.mubr.msk.bf16.mxu0 %vm4201_vm6, %v12189_v10 }
 0xdf5   : > { %11415 = vmatprep.subr.bf16.mxu0 %v4966_v42 }
 0xdf8   : > { %11416 = vmatpush3.bf16.msra.mxu0 %v4966_v42  ;;  %v5625_v42 = vpop.permute.xlu0 %5624 }
 0xdf9   : > { %11431 = vmatprep.subr.bf16.mxu0 %v5139_v54 }
 0xdfb   : > { %11404 = vmatmul.mubr.msk.bf16.gmra.mrb[52].mxu0 %vm4201_vm6, %v12190_v11  ;;  %v6556_v11 = vsel %vm964_vm2, %v10297_v2, 0 }
 0xdfc   : > { %11417 = vmatprep.mubr.msk.bf16.mxu0 %vm4201_vm6, %v12191_v13  ;;  %v5635_v55 = vpop.permute.xlu0 %5634  ;;  %v10310_v13 = vld [vmem:[%s14273_s11 + $0xe] sm:$0x3] }
 0xe03   : > { %11418 = vmatmul.mubr.msk.bf16.vlgmr.msra.gmra.mrb[48].mxu0 %vm4201_vm6, %v12192_v14  ;;  %v6704_v14 = vsel %vm964_vm2, %v10310_v13, 0 }
 0xe04   : > { %11432 = vmatpush3.bf16.msra.mxu0 %v5139_v54  ;;  %11421 = vmatprep.mubr.msk.bf16.mxu0 %vm4201_vm6, %v12193_v34  ;;  %v10323_v34 = vld [vmem:[%s14273_s11 + $0x10] sm:$0x3] }
 0xe05   : > { %11433 = vmatprep.subr.bf16.mxu0 %v5140_v51 }
 0xe08   : > { %11434 = vmatpush3.bf16.msra.mxu0 %v5140_v51 }
 0xe09   : > { %11449 = vmatprep.subr.bf16.mxu0 %v5313_v63 }
 0xe0b   : > { %11422 = vmatmul.mubr.msk.bf16.gmra.mrb[52].mxu0 %vm4201_vm6, %v12194_v15  ;;  %v6852_v15 = vsel %vm964_vm2, %v10323_v34, 0 }
 0xe0c   : > { %11435 = vmatprep.mubr.msk.bf16.mxu0 %vm4201_vm6, %v12195_v16  ;;  %v12207_v16 = vld [vmem:[%s14272_s10 + $0x10] sm:$0xff]  }
 0xe13   : > { %11436 = vmatmul.mubr.msk.bf16.vlgmr.msra.gmra.mrb[48].mxu0 %vm4201_vm6, %v12196_v17 }
 0xe14   : > { %11450 = vmatpush3.bf16.msra.mxu0 %v5313_v63  ;;  %11439 = vmatprep.mubr.msk.bf16.mxu0 %vm4201_vm6, %v12197_v18  ;;  %v5640_v63 = vpop.permute.xlu1 %5639 }
 0xe15   : > { %11451 = vmatprep.subr.bf16.mxu0 %v5314_v60 }
 0xe18   : > { %11452 = vmatpush3.bf16.msra.mxu0 %v5314_v60 }
 0xe19   : > { %11467 = vmatprep.subr.bf16.mxu0 %v5487_v6 }
 0xe1b   : > { %11440 = vmatmul.mubr.msk.bf16.gmra.mrb[52].mxu0 %vm4201_vm6, %v12198_v56 }
 0xe1c   : > { %11453 = vmatprep.mubr.msk.bf16.mxu0 %vm4201_vm6, %v12199_v19 }
 0xe23   : > { %11454 = vmatmul.mubr.msk.bf16.vlgmr.msra.gmra.mrb[48].mxu0 %vm4201_vm6, %v12200_v20 }
 0xe24   : > { %11468 = vmatpush3.bf16.msra.mxu0 %v5487_v6  ;;  %11457 = vmatprep.mubr.msk.bf16.mxu0 %vm4201_vm6, %v12201_v21 }
 0xe25   : > { %11469 = vmatprep.subr.bf16.mxu0 %v5488_v3 }
 0xe28   : > { %11470 = vmatpush3.bf16.msra.mxu0 %v5488_v3 }
 0xe29   : > { %11935 = vmatprep.subr.msk.bf16.mxu0 %vm964_vm2, %v10271_v28 }
 0xe2b   : > { %11458 = vmatmul.mubr.msk.bf16.gmra.mrb[52].mxu0 %vm4201_vm6, %v12202_v22 }
 0xe2c   : > { %11471 = vmatprep.mubr.msk.bf16.mxu0 %vm4201_vm6, %v12203_v23 }
 0xe33   : > { %11472 = vmatmul.mubr.msk.bf16.vlgmr.msra.gmra.mrb[48].mxu0 %vm4201_vm6, %v12204_v24 }
 0xe34   : > { %11475 = vmatprep.mubr.msk.bf16.mxu0 %vm4201_vm6, %v12205_v25  ;;  %11568 = vmatpush3.bf16.msra.mxu0 %v6260_v30 }
 0xe35   : > { %11936 = vmatprep.subr.msk.bf16.mxu0 %vm964_vm2, %v10284_v32 }
 0xe3b   : > { %11476 = vmatmul.mubr.msk.bf16.gmra.mrb[52].mxu0 %vm4201_vm6, %v12206_v26 }
 0xf06   : > { %v11473_v40 = vpop.f32.mrb[48].mxu0 }
 0xf07   : > { %v5644_v47 = vadd.f32 %v11473_v40, %v5615_v38  ;;  %v5555_v41 = vpop.f32.mrb[49].mxu0 }
 0xf08   : > { %v5642_v43 = vadd.f32 %v5605_v33, %v5555_v41  ;;  %v11474_v44 = vpop.f32.mrb[50].mxu0 }
 0xf09   : > { %v5645_v45 = vadd.f32 %v11474_v44, %v5620_v39  ;;  %v5558_v46 = vpop.f32.mrb[51].mxu0  ;;  %v5652_v50 = vmax.f32 %v5644_v47, 0.0 }
 0xf0a   : > { %v5643_v49 = vadd.f32 %v5610_v37, %v5558_v46  ;;  %v5650_v52 = vmax.f32 %v5642_v43, 0.0 }
 0xf0b   : > { %v5653_v51 = vmax.f32 %v5645_v45, 0.0 }
 0xf0c   : > { %v5651_v53 = vmax.f32 %v5643_v49, 0.0 }
 0xf0d   : > { %v13552_v54 = vpack.c.bf16 %v5653_v51, %v5652_v50 }
 0xf0e   : > { %v13554_v57 = vpack.c.bf16 %v5651_v53, %v5650_v52  ;;  %v11477_v58 = vpop.f32.mrb[52].mxu0 }
 0xf0f   : > { %v5648_v59 = vadd.f32 %v11477_v58, %v5635_v55  ;;  %v5571_v60 = vpop.f32.mrb[53].mxu0 }
 0xf10   : > { %v5646_v0 = vadd.f32 %v5625_v42, %v5571_v60  ;;  %v11478_v1 = vpop.f32.mrb[54].mxu0  ;;  %11481 = vmatprep.mubr.msk.bf16.mxu1 %vm5663_vm7, %v13554_v57  ;;  %11569 = vmatprep.mubr.msk.bf16.mxu0 %vm5663_vm7, %v13554_v57 }
 0xf11   : > { %v5649_v35 = vadd.f32 %v11478_v1, %v5640_v63  ;;  %v5574_v3 = vpop.f32.mrb[55].mxu0  ;;  %11482 = vmatmul.mubr.msk.bf16.vlgmr.msra.gmra.mrb[100].mxu1 %vm5663_vm7, %v13552_v54  ;;  %11570 = vmatmul.mubr.msk.bf16.vlgmr.msra.gmra.mrb[56].mxu0 %vm5663_vm7, %v13552_v54  ;;  %v5656_v5 = vmax.f32 %v5648_v59, 0.0 }
 0xf12   : > { %v5647_v4 = vadd.f32 %v5630_v48, %v5574_v3  ;;  %11490 = vmatpush3.bf16.msra.mxu1 %v5755_v61  ;;  %11590 = vmatpush3.bf16.msra.mxu0 %v6408_v62  ;;  %v5654_v7 = vmax.f32 %v5646_v0, 0.0 }
 0xf13   : > { %v5657_v6 = vmax.f32 %v5649_v35, 0.0  ;;  %11937 = vmatprep.subr.msk.bf16.mxu0 %vm964_vm2, %v10297_v2 }
 0xf14   : > { %v5655_v8 = vmax.f32 %v5647_v4, 0.0 }
 0xf15   : > { %v13570_v9 = vpack.c.bf16 %v5657_v6, %v5656_v5 }
 0xf16   : > { %v13572_v10 = vpack.c.bf16 %v5655_v8, %v5654_v7  ;;  %v12208_v8 = vld [vmem:[%s14272_s10 + $0x18] sm:$0xff]  }
 0xf18   : > { %11485 = vmatprep.mubr.msk.bf16.mxu1 %vm5663_vm7, %v13572_v10  ;;  %11573 = vmatprep.mubr.msk.bf16.mxu0 %vm5663_vm7, %v13572_v10 }
 0xf19   : > { %11486 = vmatmul.mubr.msk.bf16.gmra.mrb[104].mxu1 %vm5663_vm7, %v13570_v9  ;;  %11574 = vmatmul.mubr.msk.bf16.gmra.mrb[60].mxu0 %vm5663_vm7, %v13570_v9 }
 0xf1a   : > { %11491 = vmatprep.mubr.msk.bf16.mxu1 %vm5663_vm7, %v13554_v57  ;;  %11591 = vmatprep.mubr.msk.bf16.mxu0 %vm5663_vm7, %v13554_v57 }
 0xf21   : > { %11492 = vmatmul.mubr.msk.bf16.vlgmr.msra.gmra.mrb[108].mxu1 %vm5663_vm7, %v13552_v54  ;;  %11592 = vmatmul.mubr.msk.bf16.vlgmr.msra.gmra.mrb[64].mxu0 %vm5663_vm7, %v13552_v54 }
 0xf22   : > { %11495 = vmatprep.mubr.msk.bf16.mxu1 %vm5663_vm7, %v13572_v10  ;;  %11595 = vmatprep.mubr.msk.bf16.mxu0 %vm5663_vm7, %v13572_v10 }
 0xf23   : > { %11612 = vmatpush3.bf16.msra.mxu0 %v6556_v11 }
 0xf24   : > { %11938 = vmatprep.subr.msk.bf16.mxu0 %vm964_vm2, %v10310_v13 }
 0xf29   : > { %11496 = vmatmul.mubr.msk.bf16.gmra.mrb[112].mxu1 %vm5663_vm7, %v13570_v9  ;;  %11596 = vmatmul.mubr.msk.bf16.gmra.mrb[68].mxu0 %vm5663_vm7, %v13570_v9 }
 0xf2a   : > { %11613 = vmatprep.mubr.msk.bf16.mxu0 %vm5663_vm7, %v13554_v57  ;;  %11507 = vmatprep.mubr.msk.bf16.mxu1 %vm2701_vm4, %v12207_v16 }
 0xf31   : > { %11614 = vmatmul.mubr.msk.bf16.vlgmr.msra.gmra.mrb[72].mxu0 %vm5663_vm7, %v13552_v54 }
 0xf32   : > { %11617 = vmatprep.mubr.msk.bf16.mxu0 %vm5663_vm7, %v13572_v10  ;;  %11634 = vmatpush3.bf16.msra.mxu0 %v6704_v14  ;;  %v12209_v14 = vld [vmem:[%s14272_s10] sm:$0xff]  }
 0xf33   : > { %11939 = vmatprep.subr.msk.bf16.mxu0 %vm964_vm2, %v10323_v34 }
 0xf39   : > { %11618 = vmatmul.mubr.msk.bf16.gmra.mrb[76].mxu0 %vm5663_vm7, %v13570_v9 }
 0xf3a   : > { %11635 = vmatprep.mubr.msk.bf16.mxu0 %vm5663_vm7, %v13554_v57 }
 0xf41   : > { %11636 = vmatmul.mubr.msk.bf16.vlgmr.msra.gmra.mrb[80].mxu0 %vm5663_vm7, %v13552_v54 }
 0xf42   : > { %11639 = vmatprep.mubr.msk.bf16.mxu0 %vm5663_vm7, %v13572_v10  ;;  %11656 = vmatpush3.bf16.msra.mxu0 %v6852_v15 }
 0xf49   : > { %11640 = vmatmul.mubr.msk.bf16.gmra.mrb[84].mxu0 %vm5663_vm7, %v13570_v9 }
 0xf4a   : > { %11657 = vmatprep.mubr.msk.bf16.mxu0 %vm5663_vm7, %v13554_v57 }
 0xf51   : > { %11658 = vmatmul.mubr.msk.bf16.vlgmr.msra.gmra.mrb[88].mxu0 %vm5663_vm7, %v13552_v54 }
 0xf52   : > { %11661 = vmatprep.mubr.msk.bf16.mxu0 %vm5663_vm7, %v13572_v10 }
 0xf59   : > { %11662 = vmatmul.mubr.msk.bf16.gmra.mrb[92].mxu0 %vm5663_vm7, %v13570_v9 }
 0xfe4   : > { %v11483_v17 = vpop.f32.mrb[100].mxu1  ;;  %v11571_v18 = vpop.f32.mrb[56].mxu0 }
 0xfe5   : > { %v5713_v56 = vpop.f32.mrb[101].mxu1  ;;  %v6296_v19 = vpop.f32.mrb[57].mxu0 }
 0xfe6   : > { %v11484_v20 = vpop.f32.mrb[102].mxu1  ;;  %v11572_v21 = vpop.f32.mrb[58].mxu0 }
 0xfe7   : > { %v13637_v22 = vpack.c.bf16 %v11484_v20, %v11483_v17  ;;  %v13639_v23 = vpack.c.bf16 %v11572_v21, %v11571_v18  ;;  %v5716_v24 = vpop.f32.mrb[103].mxu1  ;;  %v6299_v25 = vpop.f32.mrb[59].mxu0 }
 0xfe8   : > { %v5748_v26 = vpack.c.bf16 %v5716_v24, %v5713_v56  ;;  %v13641_v27 = vpack.c.bf16 %v6299_v25, %v6296_v19  ;;  %v10245_v24 = vld [vmem:[%s14273_s11 + $0x4] sm:$0x3] }
 0xfec   : > { %v11487_v28 = vpop.f32.mrb[104].mxu1  ;;  %v11575_v29 = vpop.f32.mrb[60].mxu0 }
 0xfed   : > { %v5729_v30 = vpop.f32.mrb[105].mxu1  ;;  %v6312_v31 = vpop.f32.mrb[61].mxu0 }
 0xfee   : > { %v11488_v32 = vpop.f32.mrb[106].mxu1  ;;  %v11576_v33 = vpop.f32.mrb[62].mxu0 }
 0xfef   : > { %v13643_v37 = vpack.c.bf16 %v11488_v32, %v11487_v28  ;;  %v13645_v38 = vpack.c.bf16 %v11576_v33, %v11575_v29  ;;  %v5732_v39 = vpop.f32.mrb[107].mxu1  ;;  %v6315_v40 = vpop.f32.mrb[63].mxu0 }
 0xff0   : > { %v5750_v47 = vpack.c.bf16 %v5732_v39, %v5729_v30  ;;  %v13647_v41 = vpack.c.bf16 %v6315_v40, %v6312_v31  ;;  %v5964_v30 = vsel %vm964_vm2, %v10245_v24, 0 }
 0xff4   : > { %v11493_v42 = vpop.f32.mrb[108].mxu1  ;;  %v11593_v43 = vpop.f32.mrb[64].mxu0 }
 0xff5   : > { %v5791_v44 = vpop.f32.mrb[109].mxu1  ;;  %v6444_v45 = vpop.f32.mrb[65].mxu0 }
 0xff6   : > { %v11494_v46 = vpop.f32.mrb[110].mxu1  ;;  %v11594_v48 = vpop.f32.mrb[66].mxu0 }
 0xff7   : > { %v5828_v49 = vpack.c.bf16 %v11494_v46, %v11493_v42  ;;  %v13649_v50 = vpack.c.bf16 %v11594_v48, %v11593_v43  ;;  %v5794_v51 = vpop.f32.mrb[111].mxu1  ;;  %v6447_v52 = vpop.f32.mrb[67].mxu0 }
 0xff8   : > { %v5827_v53 = vpack.c.bf16 %v5794_v51, %v5791_v44  ;;  %v13651_v55 = vpack.c.bf16 %v6447_v52, %v6444_v45 }
 0xffa   : > { %11499 = vmatprep.subr.bf16.mxu1 %v5827_v53 }
 0xffb   : > { %11500 = vmatpush3.bf16.msra.mxu1 %v5827_v53 }
 0xffc   : > { %v11497_v58 = vpop.f32.mrb[112].mxu1  ;;  %11501 = vmatprep.subr.bf16.mxu1 %v5828_v49  ;;  %v11597_v59 = vpop.f32.mrb[68].mxu0 }
 0xffd   : > { %v5807_v60 = vpop.f32.mrb[113].mxu1  ;;  %v6460_v61 = vpop.f32.mrb[69].mxu0 }
 0xffe   : > { %v11498_v62 = vpop.f32.mrb[114].mxu1  ;;  %v11598_v63 = vpop.f32.mrb[70].mxu0 }
 0xfff   : > { %v5830_v0 = vpack.c.bf16 %v11498_v62, %v11497_v58  ;;  %v13653_v1 = vpack.c.bf16 %v11598_v63, %v11597_v59  ;;  %v5810_v2 = vpop.f32.mrb[115].mxu1  ;;  %11502 = vmatpush3.bf16.msra.mxu1 %v5828_v49  ;;  %v6463_v35 = vpop.f32.mrb[71].mxu0  ;;  %v12211_v59 = vld [vmem:[%s14272_s10 + $0x20] sm:$0xff]  }
0x1000   : > { %v5829_v3 = vpack.c.bf16 %v5810_v2, %v5807_v60  ;;  %v13655_v4 = vpack.c.bf16 %v6463_v35, %v6460_v61 }
0x1002   : > { %11503 = vmatprep.subr.bf16.mxu1 %v5829_v3 }
0x1003   : > { %11504 = vmatpush3.bf16.msra.mxu1 %v5829_v3 }
0x1004   : > { %11505 = vmatprep.subr.bf16.mxu1 %v5830_v0  ;;  %v11615_v5 = vpop.f32.mrb[72].mxu0 }
0x1005   : > { %v6592_v6 = vpop.f32.mrb[73].mxu0 }
0x1006   : > { %v11616_v7 = vpop.f32.mrb[74].mxu0 }
0x1007   : > { %v13660_v11 = vpack.c.bf16 %v11616_v7, %v11615_v5  ;;  %11506 = vmatpush3.bf16.msra.mxu1 %v5830_v0  ;;  %v6595_v13 = vpop.f32.mrb[75].mxu0 }
0x1008   : > { %v13665_v34 = vpack.c.bf16 %v6595_v13, %v6592_v6  ;;  %11511 = vmatprep.subr.bf16.mxu1 %v5748_v26  ;;  %v10258_v13 = vld [vmem:[%s14273_s11 + $0x6] sm:$0x3] }
0x100a   : > { %11508 = vmatmul.mubr.msk.bf16.vlgmr.msra.gmra.mrb[116].mxu1 %vm2701_vm4, %v12208_v8 }
0x100b   : > { %11512 = vmatpush3.bf16.msra.mxu1 %v5748_v26  ;;  %11519 = vmatprep.mubr.msk.bf16.mxu1 %vm2701_vm4, %v12209_v14  ;;  %v12210_v26 = vld [vmem:[%s14272_s10 + $0x8] sm:$0xff]  }
0x100c   : > { %11513 = vmatprep.subr.bf16.mxu1 %v13637_v22  ;;  %v11619_v15 = vpop.f32.mrb[76].mxu0  ;;  %v12212_v14 = vld [vmem:[%s14272_s10 + $0x28] sm:$0xff]  }
0x100d   : > { %v6608_v16 = vpop.f32.mrb[77].mxu0 }
0x100e   : > { %v11620_v17 = vpop.f32.mrb[78].mxu0 }
0x100f   : > { %v13670_v18 = vpack.c.bf16 %v11620_v17, %v11619_v15  ;;  %11514 = vmatpush3.bf16.msra.mxu1 %v13637_v22  ;;  %v6611_v56 = vpop.f32.mrb[79].mxu0  ;;  %v6112_v15 = vsel %vm964_vm2, %v10258_v13, 0 }
0x1010   : > { %v13673_v19 = vpack.c.bf16 %v6611_v56, %v6608_v16  ;;  %11515 = vmatprep.subr.bf16.mxu1 %v5750_v47  ;;  %v12213_v16 = vld [vmem:[%s14272_s10 + $0x30] sm:$0xff]  }
0x1013   : > { %11516 = vmatpush3.bf16.msra.mxu1 %v5750_v47 }
0x1014   : > { %11517 = vmatprep.subr.bf16.mxu1 %v13643_v37  ;;  %v11637_v20 = vpop.f32.mrb[80].mxu0 }
0x1015   : > { %v6740_v21 = vpop.f32.mrb[81].mxu0 }
0x1016   : > { %v11638_v25 = vpop.f32.mrb[82].mxu0 }
0x1017   : > { %v13682_v28 = vpack.c.bf16 %v11638_v25, %v11637_v20  ;;  %11518 = vmatpush3.bf16.msra.mxu1 %v13643_v37  ;;  %v6743_v22 = vpop.f32.mrb[83].mxu0 }
0x1018   : > { %v13685_v29 = vpack.c.bf16 %v6743_v22, %v6740_v21  ;;  %11933 = vmatprep.subr.msk.bf16.mxu1 %vm964_vm2, %v10245_v24 }
0x101a   : > { %11520 = vmatmul.mubr.msk.bf16.vlgmr.msra.gmra.mrb[116].mxu1 %vm2701_vm4, %v12210_v26 }
0x101b   : > { %11525 = vmatprep.mubr.msk.bf16.mxu1 %vm5663_vm7, %v13554_v57  ;;  %11524 = vmatpush3.bf16.msra.mxu1 %v5964_v30 }
0x101c   : > { %v11641_v31 = vpop.f32.mrb[84].mxu0 }
0x101d   : > { %v6756_v32 = vpop.f32.mrb[85].mxu0 }
0x101e   : > { %v11642_v33 = vpop.f32.mrb[86].mxu0 }
0x101f   : > { %v13692_v39 = vpack.c.bf16 %v11642_v33, %v11641_v31  ;;  %v6759_v40 = vpop.f32.mrb[87].mxu0  ;;  %v12214_v31 = vld [vmem:[%s14272_s10 + $0x38] sm:$0xff]   ;;  %v12216_v33 = vld [vmem:[%s14272_s10 + $0x48] sm:$0xff]  }
0x1020   : > { %v13694_v37 = vpack.c.bf16 %v6759_v40, %v6756_v32  ;;  %v12215_v32 = vld [vmem:[%s14272_s10 + $0x40] sm:$0xff]  }
0x1022   : > { %11526 = vmatmul.mubr.msk.bf16.vlgmr.msra.gmra.mrb[120].mxu1 %vm5663_vm7, %v13552_v54 }
0x1023   : > { %11529 = vmatprep.mubr.msk.bf16.mxu1 %vm5663_vm7, %v13572_v10 }
0x1024   : > { %v11659_v47 = vpop.f32.mrb[88].mxu0 }
0x1025   : > { %v6888_v42 = vpop.f32.mrb[89].mxu0 }
0x1026   : > { %v11660_v43 = vpop.f32.mrb[90].mxu0 }
0x1027   : > { %v13700_v44 = vpack.c.bf16 %v11660_v43, %v11659_v47  ;;  %v6891_v45 = vpop.f32.mrb[91].mxu0 }
0x1028   : > { %v13702_v46 = vpack.c.bf16 %v6891_v45, %v6888_v42 }
0x102a   : > { %11530 = vmatmul.mubr.msk.bf16.gmra.mrb[124].mxu1 %vm5663_vm7, %v13570_v9 }
0x102b   : > { %11541 = vmatprep.mubr.msk.bf16.mxu1 %vm2701_vm4, %v12211_v59 }
0x102c   : > { %v11663_v48 = vpop.f32.mrb[92].mxu0 }
0x102d   : > { %v6904_v49 = vpop.f32.mrb[93].mxu0 }
0x102e   : > { %v11664_v51 = vpop.f32.mrb[94].mxu0 }
0x102f   : > { %v13706_v52 = vpack.c.bf16 %v11664_v51, %v11663_v48  ;;  %v6907_v53 = vpop.f32.mrb[95].mxu0 }
0x1030   : > { %v13708_v58 = vpack.c.bf16 %v6907_v53, %v6904_v49 }
0x10f5   : > { %v11527_v60 = vpop.f32.mrb[120].mxu1 }
0x10f6   : > { %v6000_v61 = vpop.f32.mrb[121].mxu1 }
0x10f7   : > { %v11528_v62 = vpop.f32.mrb[122].mxu1 }
0x10f8   : > { %v6037_v63 = vpack.c.bf16 %v11528_v62, %v11527_v60  ;;  %v6003_v0 = vpop.f32.mrb[123].mxu1 }
0x10f9   : > { %v6036_v2 = vpack.c.bf16 %v6003_v0, %v6000_v61 }
0x10fb   : > { %11533 = vmatprep.subr.bf16.mxu1 %v6036_v2 }
0x10fc   : > { %11534 = vmatpush3.bf16.msra.mxu1 %v6036_v2  ;;  %v12228_v2 = vld [vmem:[%s14275_s13] sm:$0xff]  }
0x10fd   : > { %v11531_v35 = vpop.f32.mrb[124].mxu1  ;;  %11535 = vmatprep.subr.bf16.mxu1 %v6037_v63 }
0x10fe   : > { %v6016_v3 = vpop.f32.mrb[125].mxu1 }
0x10ff   : > { %v11532_v5 = vpop.f32.mrb[126].mxu1 }
0x1100   : > { %v6039_v6 = vpack.c.bf16 %v11532_v5, %v11531_v35  ;;  %v6019_v7 = vpop.f32.mrb[127].mxu1  ;;  %11536 = vmatpush3.bf16.msra.mxu1 %v6037_v63 }
0x1101   : > { %v6038_v8 = vpack.c.bf16 %v6019_v7, %v6016_v3  ;;  %v12229_v7 = vld [vmem:[%s14276_s14 + $0x10] sm:$0xff]  }
0x1103   : > { %11537 = vmatprep.subr.bf16.mxu1 %v6038_v8 }
0x1104   : > { %11538 = vmatpush3.bf16.msra.mxu1 %v6038_v8  ;;  %v12227_v8 = vld [vmem:[%s14275_s13 + $0x8] sm:$0xff]  }
0x1105   : > { %11539 = vmatprep.subr.bf16.mxu1 %v6039_v6 }
0x1108   : > { %11540 = vmatpush3.bf16.msra.mxu1 %v6039_v6 }
0x1109   : > { %11934 = vmatprep.subr.msk.bf16.mxu1 %vm964_vm2, %v10258_v13  ;;  %v12230_v13 = vld [vmem:[%s14276_s14 + $0x18] sm:$0xff]  }
0x110b   : > { %11542 = vmatmul.mubr.msk.bf16.vlgmr.msra.gmra.mrb[116].mxu1 %vm2701_vm4, %v12212_v14  ;;  %v12231_v14 = vld [vmem:[%s14276_s14 + $0x20] sm:$0xff]  }
0x110c   : > { %11547 = vmatprep.mubr.msk.bf16.mxu1 %vm5663_vm7, %v13554_v57  ;;  %11546 = vmatpush3.bf16.msra.mxu1 %v6112_v15  ;;  %v12225_v57 = vld [vmem:[%s14276_s14] sm:$0xff]   ;;  %v12232_v15 = vld [vmem:[%s14276_s14 + $0x28] sm:$0xff]  }
0x110d   : > { %11677 = vmatprep.subr.bf16.mxu0 %v12225_v57 }
0x110e   : > { %11678 = vmatpush3.bf16.msra.mxu0 %v12225_v57  ;;  %v12234_v57 = vld [vmem:[%s14276_s14 + $0x38] sm:$0xff]  }
0x1113   : > { %11548 = vmatmul.mubr.msk.bf16.vlgmr.msra.gmra.mrb[128].mxu1 %vm5663_vm7, %v13552_v54 }
0x1114   : > { %11551 = vmatprep.mubr.msk.bf16.mxu1 %vm5663_vm7, %v13572_v10 }
0x111b   : > { %11552 = vmatmul.mubr.msk.bf16.gmra.mrb[132].mxu1 %vm5663_vm7, %v13570_v9 }
0x111c   : > { %11563 = vmatprep.mubr.msk.bf16.mxu1 %vm2701_vm4, %v12213_v16  ;;  %v12233_v16 = vld [vmem:[%s14276_s14 + $0x30] sm:$0xff]  }
0x11e6   : > { %v11549_v17 = vpop.f32.mrb[128].mxu1 }
0x11e7   : > { %v6148_v54 = vpop.f32.mrb[129].mxu1 }
0x11e8   : > { %v11550_v56 = vpop.f32.mrb[130].mxu1 }
0x11e9   : > { %v6185_v20 = vpack.c.bf16 %v11550_v56, %v11549_v17  ;;  %v6151_v10 = vpop.f32.mrb[131].mxu1  ;;  %v12235_v17 = vld [vmem:[%s14276_s14 + $0x40] sm:$0xff]  }
0x11ea   : > { %v6184_v21 = vpack.c.bf16 %v6151_v10, %v6148_v54 }
0x11ec   : > { %11555 = vmatprep.subr.bf16.mxu1 %v6184_v21 }
0x11ed   : > { %11556 = vmatpush3.bf16.msra.mxu1 %v6184_v21 }
0x11ee   : > { %v11553_v9 = vpop.f32.mrb[132].mxu1  ;;  %11557 = vmatprep.subr.bf16.mxu1 %v6185_v20 }
0x11ef   : > { %v6164_v24 = vpop.f32.mrb[133].mxu1 }
0x11f0   : > { %v11554_v25 = vpop.f32.mrb[134].mxu1 }
0x11f1   : > { %v6187_v26 = vpack.c.bf16 %v11554_v25, %v11553_v9  ;;  %v6167_v22 = vpop.f32.mrb[135].mxu1  ;;  %11558 = vmatpush3.bf16.msra.mxu1 %v6185_v20 }
0x11f2   : > { %v6186_v30 = vpack.c.bf16 %v6167_v22, %v6164_v24 }
0x11f4   : > { %11559 = vmatprep.subr.bf16.mxu1 %v6186_v30 }
0x11f5   : > { %11560 = vmatpush3.bf16.msra.mxu1 %v6186_v30 }
0x11f6   : > { %11561 = vmatprep.subr.bf16.mxu1 %v6187_v26 }
0x11f9   : > { %11562 = vmatpush3.bf16.msra.mxu1 %v6187_v26 }
0x11fa   : > { %11577 = vmatprep.subr.bf16.mxu1 %v13641_v27 }
0x11fc   : > { %11564 = vmatmul.mubr.msk.bf16.vlgmr.msra.gmra.mrb[116].mxu1 %vm2701_vm4, %v12214_v31 }
0x11fd   : > { %11578 = vmatpush3.bf16.msra.mxu1 %v13641_v27  ;;  %11585 = vmatprep.mubr.msk.bf16.mxu1 %vm2701_vm4, %v12215_v32  ;;  %v12217_v27 = vld [vmem:[%s14272_s10 + $0x50] sm:$0xff]  }
0x11fe   : > { %11579 = vmatprep.subr.bf16.mxu1 %v13639_v23 }
0x1201   : > { %11580 = vmatpush3.bf16.msra.mxu1 %v13639_v23  ;;  %v12218_v23 = vld [vmem:[%s14272_s10 + $0x58] sm:$0xff]  }
0x1202   : > { %11581 = vmatprep.subr.bf16.mxu1 %v13647_v41 }
0x1205   : > { %11582 = vmatpush3.bf16.msra.mxu1 %v13647_v41  ;;  %v12220_v41 = vld [vmem:[%s14272_s10 + $0x68] sm:$0xff]  }
0x1206   : > { %11583 = vmatprep.subr.bf16.mxu1 %v13645_v38 }
0x1209   : > { %11584 = vmatpush3.bf16.msra.mxu1 %v13645_v38  ;;  %v12219_v38 = vld [vmem:[%s14272_s10 + $0x60] sm:$0xff]  }
0x120a   : > { %11599 = vmatprep.subr.bf16.mxu1 %v13651_v55 }
0x120c   : > { %11586 = vmatmul.mubr.msk.bf16.vlgmr.msra.gmra.mrb[116].mxu1 %vm2701_vm4, %v12216_v33 }
0x120d   : > { %11600 = vmatpush3.bf16.msra.mxu1 %v13651_v55  ;;  %11607 = vmatprep.mubr.msk.bf16.mxu1 %vm2701_vm4, %v12217_v27  ;;  %v12222_v55 = vld [vmem:[%s14272_s10 + $0x78] sm:$0xff]  }
0x120e   : > { %11601 = vmatprep.subr.bf16.mxu1 %v13649_v50 }
0x1211   : > { %11602 = vmatpush3.bf16.msra.mxu1 %v13649_v50  ;;  %v12221_v50 = vld [vmem:[%s14272_s10 + $0x70] sm:$0xff]  }
0x1212   : > { %11603 = vmatprep.subr.bf16.mxu1 %v13655_v4 }
0x1215   : > { %11604 = vmatpush3.bf16.msra.mxu1 %v13655_v4  ;;  %v12224_v4 = vld [vmem:[%s14272_s10 + $0x88] sm:$0xff]  }
0x1216   : > { %11605 = vmatprep.subr.bf16.mxu1 %v13653_v1 }
0x1219   : > { %11606 = vmatpush3.bf16.msra.mxu1 %v13653_v1  ;;  %v12223_v1 = vld [vmem:[%s14272_s10 + $0x80] sm:$0xff]  }
0x121a   : > { %11621 = vmatprep.subr.bf16.mxu1 %v13665_v34 }
0x121c   : > { %11608 = vmatmul.mubr.msk.bf16.vlgmr.msra.gmra.mrb[116].mxu1 %vm2701_vm4, %v12218_v23 }
0x121d   : > { %11622 = vmatpush3.bf16.msra.mxu1 %v13665_v34  ;;  %11629 = vmatprep.mubr.msk.bf16.mxu1 %vm2701_vm4, %v12219_v38  ;;  %v7004_v34 = vpop.permute.xlu0 %7003 }
0x121e   : > { %11623 = vmatprep.subr.bf16.mxu1 %v13660_v11 }
0x1221   : > { %11624 = vmatpush3.bf16.msra.mxu1 %v13660_v11  ;;  %v12226_v11 = vld [vmem:[%s14276_s14 + $0x8] sm:$0xff]  }
0x1222   : > { %11625 = vmatprep.subr.bf16.mxu1 %v13673_v19  ;;  %11683 = vmatprep.subr.bf16.mxu0 %v12226_v11 }
0x1225   : > { %11626 = vmatpush3.bf16.msra.mxu1 %v13673_v19  ;;  %v7014_v19 = vpop.permute.xlu0 %7013 }
0x1226   : > { %11627 = vmatprep.subr.bf16.mxu1 %v13670_v18 }
0x1229   : > { %11628 = vmatpush3.bf16.msra.mxu1 %v13670_v18  ;;  %v7009_v18 = vpop.permute.xlu1 %7008 }
0x122a   : > { %11643 = vmatprep.subr.bf16.mxu1 %v13685_v29 }
0x122c   : > { %11630 = vmatmul.mubr.msk.bf16.vlgmr.msra.gmra.mrb[116].mxu1 %vm2701_vm4, %v12220_v41 }
0x122d   : > { %11644 = vmatpush3.bf16.msra.mxu1 %v13685_v29  ;;  %11651 = vmatprep.mubr.msk.bf16.mxu1 %vm2701_vm4, %v12221_v50  ;;  %v7019_v40 = vpop.permute.xlu1 %7018  ;;  %v12236_v50 = vld [vmem:[%s14275_s13 + $0x10] sm:$0xff]  }
0x122e   : > { %11645 = vmatprep.subr.bf16.mxu1 %v13682_v28 }
0x1231   : > { %11646 = vmatpush3.bf16.msra.mxu1 %v13682_v28 }
0x1232   : > { %11647 = vmatprep.subr.bf16.mxu1 %v13694_v37 }
0x1235   : > { %11648 = vmatpush3.bf16.msra.mxu1 %v13694_v37 }
0x1236   : > { %11649 = vmatprep.subr.bf16.mxu1 %v13692_v39 }
0x1239   : > { %11650 = vmatpush3.bf16.msra.mxu1 %v13692_v39 }
0x123a   : > { %11665 = vmatprep.subr.bf16.mxu1 %v13702_v46 }
0x123c   : > { %11652 = vmatmul.mubr.msk.bf16.vlgmr.msra.gmra.mrb[116].mxu1 %vm2701_vm4, %v12222_v55 }
0x123d   : > { %11666 = vmatpush3.bf16.msra.mxu1 %v13702_v46  ;;  %11673 = vmatprep.mubr.msk.bf16.mxu1 %vm2701_vm4, %v12223_v1 }
0x123e   : > { %11667 = vmatprep.subr.bf16.mxu1 %v13700_v44 }
0x1241   : > { %11668 = vmatpush3.bf16.msra.mxu1 %v13700_v44 }
0x1242   : > { %11669 = vmatprep.subr.bf16.mxu1 %v13708_v58 }
0x1245   : > { %11670 = vmatpush3.bf16.msra.mxu1 %v13708_v58 }
0x1246   : > { %11671 = vmatprep.subr.bf16.mxu1 %v13706_v52 }
0x1249   : > { %11672 = vmatpush3.bf16.msra.mxu1 %v13706_v52 }
0x124a   : > { %11697 = vmatprep.subr.bf16.mxu1 %v12363_v36 }
0x124c   : > { %11674 = vmatmul.mubr.msk.bf16.vlgmr.msra.gmra.mrb[116].mxu1 %vm2701_vm4, %v12224_v4 }
0x124d   : > { %11701 = vmatprep.mubr.msk.bf16.mxu1 %vm12364_vm0, %v12363_v36 }
0x131f   : > { %v11675_v28 = vpop.f32.mrb[116].mxu1 }
0x1320   : > { %v7023_v29 = vadd.f32 %v11675_v28, %v7014_v19  ;;  %v6978_v39 = vpop.f32.mrb[117].mxu1  ;;  %v12237_v19 = vld [vmem:[%s14275_s13 + $0x18] sm:$0xff]  }
0x1321   : > { %v7021_v37 = vadd.f32 %v7004_v34, %v6978_v39  ;;  %v11676_v47 = vpop.f32.mrb[118].mxu1 }
0x1322   : > { %v7024_v42 = vadd.f32 %v11676_v47, %v7019_v40  ;;  %v6981_v43 = vpop.f32.mrb[119].mxu1  ;;  %v7027_v45 = vmax.f32 %v7023_v29, 0.0 }
0x1323   : > { %v7022_v44 = vadd.f32 %v7009_v18, %v6981_v43  ;;  %v7025_v48 = vmax.f32 %v7021_v37, 0.0 }
0x1324   : > { %v7028_v46 = vmax.f32 %v7024_v42, 0.0  ;;  %v12238_v42 = vld [vmem:[%s14275_s13 + $0x20] sm:$0xff]  }
0x1325   : > { %v7026_v49 = vmax.f32 %v7022_v44, 0.0 }
0x1326   : > { %v13828_v51 = vpack.c.bf16 %v7028_v46, %v7027_v45 }
0x1327   : > { %v13830_v52 = vpack.c.bf16 %v7026_v49, %v7025_v48 }
0x1329   : > { %11679 = vmatprep.mubr.msk.bf16.mxu0 %vm2841_vm5, %v13830_v52 }
0x132a   : > { %11680 = vmatmul.mubr.msk.bf16.vlgmr.msra.gmra.mrb[96].mxu0 %vm2841_vm5, %v13828_v51 }
0x132b   : > { %11685 = vmatprep.mubr.msk.bf16.mxu0 %vm2841_vm5, %v13830_v52  ;;  %11684 = vmatpush3.bf16.msra.mxu0 %v12226_v11 }
0x132c   : > { %11689 = vmatprep.subr.bf16.mxu0 %v12363_v36 }
0x1332   : > { %11686 = vmatmul.mubr.msk.bf16.vlgmr.msra.gmra.mrb[100].mxu0 %vm2841_vm5, %v13828_v51 }
0x1333   : > { %11693 = vmatprep.mubr.msk.bf16.mxu0 %vm12364_vm0, %v12363_v36 }
0x13fd   : > { %v11681_v53 = vpop.f32.mrb[96].mxu0 }
0x13fe   : > { %v7079_v58 = vpop.f32.mrb[97].mxu0 }
0x13ff   : > { %v11682_v59 = vpop.f32.mrb[98].mxu0 }
0x1400   : > { %v7097_v60 = vpack.c.bf16 %v11682_v59, %v11681_v53  ;;  %v7082_v61 = vpop.f32.mrb[99].mxu0 }
0x1401   : > { %v7096_v62 = vpack.c.bf16 %v7082_v61, %v7079_v58 }
0x1403   : > { %11698 = vmatpush3.bf16.msra.mxu1 %v7096_v62  ;;  %v12240_v62 = vld [vmem:[%s14275_s13 + $0x30] sm:$0xff]  }
0x1404   : > { %11699 = vmatprep.subr.bf16.mxu1 %v12363_v36 }
0x1405   : > { %v11687_v63 = vpop.f32.mrb[100].mxu0 }
0x1406   : > { %v7141_v0 = vpop.f32.mrb[101].mxu0 }
0x1407   : > { %v11688_v35 = vpop.f32.mrb[102].mxu0  ;;  %11700 = vmatpush3.bf16.msra.mxu1 %v7097_v60 }
0x1408   : > { %v7160_v3 = vpack.c.bf16 %v11688_v35, %v11687_v63  ;;  %v7144_v5 = vpop.f32.mrb[103].mxu0  ;;  %11711 = vmatprep.subr.bf16.mxu1 %v12363_v36 }
0x1409   : > { %v7159_v6 = vpack.c.bf16 %v7144_v5, %v7141_v0 }
0x140a   : > { %11702 = vmatmul.mubr.msk.bf16.vlgmr.msra.gmra.mrb[136].mxu1 %vm4201_vm6, %v12228_v2 }
0x140b   : > { %11690 = vmatpush3.bf16.msra.mxu0 %v7159_v6  ;;  %11715 = vmatprep.mubr.msk.bf16.mxu1 %vm12364_vm0, %v12363_v36  ;;  %v12241_v6 = vld [vmem:[%s14275_s13 + $0x38] sm:$0xff]  }
0x140c   : > { %11691 = vmatprep.subr.bf16.mxu0 %v12363_v36 }
0x140f   : > { %11692 = vmatpush3.bf16.msra.mxu0 %v7160_v3 }
0x1410   : > { %11705 = vmatprep.subr.bf16.mxu0 %v12229_v7 }
0x1412   : > { %11694 = vmatmul.mubr.msk.bf16.vlgmr.msra.gmra.mrb[104].mxu0 %vm4201_vm6, %v12227_v8 }
0x1413   : > { %11707 = vmatprep.mubr.msk.bf16.mxu0 %vm2841_vm5, %v13830_v52  ;;  %11706 = vmatpush3.bf16.msra.mxu0 %v12229_v7 }
0x1414   : > { %11719 = vmatprep.subr.bf16.mxu0 %v12230_v13 }
0x141a   : > { %11708 = vmatmul.mubr.msk.bf16.vlgmr.msra.gmra.mrb[108].mxu0 %vm2841_vm5, %v13828_v51 }
0x141b   : > { %11721 = vmatprep.mubr.msk.bf16.mxu0 %vm2841_vm5, %v13830_v52  ;;  %11720 = vmatpush3.bf16.msra.mxu0 %v12230_v13 }
0x141c   : > { %11733 = vmatprep.subr.bf16.mxu0 %v12231_v14 }
0x1422   : > { %11722 = vmatmul.mubr.msk.bf16.vlgmr.msra.gmra.mrb[112].mxu0 %vm2841_vm5, %v13828_v51 }
0x1423   : > { %11735 = vmatprep.mubr.msk.bf16.mxu0 %vm2841_vm5, %v13830_v52  ;;  %11734 = vmatpush3.bf16.msra.mxu0 %v12231_v14 }
0x1424   : > { %11747 = vmatprep.subr.bf16.mxu0 %v12232_v15 }
0x142a   : > { %11736 = vmatmul.mubr.msk.bf16.vlgmr.msra.gmra.mrb[116].mxu0 %vm2841_vm5, %v13828_v51 }
0x142b   : > { %11749 = vmatprep.mubr.msk.bf16.mxu0 %vm2841_vm5, %v13830_v52  ;;  %11748 = vmatpush3.bf16.msra.mxu0 %v12232_v15  ;;  %v12242_v15 = vld [vmem:[%s14275_s13 + $0x40] sm:$0xff]  }
0x142c   : > { %11761 = vmatprep.subr.bf16.mxu0 %v12233_v16 }
0x1432   : > { %11750 = vmatmul.mubr.msk.bf16.vlgmr.msra.gmra.mrb[120].mxu0 %vm2841_vm5, %v13828_v51 }
0x1433   : > { %11763 = vmatprep.mubr.msk.bf16.mxu0 %vm2841_vm5, %v13830_v52  ;;  %11762 = vmatpush3.bf16.msra.mxu0 %v12233_v16  ;;  %v12245_v16 = vld [vmem:[%s14279_s17 + $0x4] ss:$8 sps:$4 sm:$0xff]  }
0x1434   : > { %11775 = vmatprep.subr.bf16.mxu0 %v12234_v57 }
0x143a   : > { %11764 = vmatmul.mubr.msk.bf16.vlgmr.msra.gmra.mrb[124].mxu0 %vm2841_vm5, %v13828_v51 }
0x143b   : > { %11777 = vmatprep.mubr.msk.bf16.mxu0 %vm2841_vm5, %v13830_v52  ;;  %11776 = vmatpush3.bf16.msra.mxu0 %v12234_v57  ;;  %v12248_v57 = vld [vmem:[%s14279_s17 + $0x44] ss:$8 sps:$4 sm:$0xff]  }
0x143c   : > { %11789 = vmatprep.subr.bf16.mxu0 %v12235_v17 }
0x1442   : > { %11778 = vmatmul.mubr.msk.bf16.vlgmr.msra.gmra.mrb[128].mxu0 %vm2841_vm5, %v13828_v51 }
0x1443   : > { %11791 = vmatprep.mubr.msk.bf16.mxu0 %vm2841_vm5, %v13830_v52  ;;  %11790 = vmatpush3.bf16.msra.mxu0 %v12235_v17  ;;  %v12246_v17 = vld [vmem:[%s14279_s17 + $0x40] ss:$8 sps:$4 sm:$0xff]  }
0x1444   : > { %8125 = vmatprep.subr.bf16.mxu0 %v12245_v16 }
0x144a   : > { %11792 = vmatmul.mubr.msk.bf16.vlgmr.msra.gmra.mrb[132].mxu0 %vm2841_vm5, %v13828_v51  ;;  %v12239_v51 = vld [vmem:[%s14275_s13 + $0x28] sm:$0xff]  }
0x144b   : > { %8157 = vmatprep.mubr.bf16.mxu0 %v12366_v12 }
0x14dd   : > { %v7252_v54 = vpop.f32.mrb[136].mxu1 }
0x14de   : > { %v11703_v56 = vpop.f32.mrb[137].mxu1 }
0x14df   : > { %v7255_v20 = vpop.f32.mrb[138].mxu1  ;;  %v12254_v56 = vld [vmem:[%s14279_s17 + $0x54] ss:$8 sps:$4 sm:$0xff]  }
0x14e0   : > { %v11704_v10 = vpop.f32.mrb[139].mxu1 }
0x14e1   : > { %v12252_v10 = vld [vmem:[%s14279_s17 + $0x50] ss:$8 sps:$4 sm:$0xff]  }
0x14e5   : > { %v7203_v21 = vpop.f32.mrb[104].mxu0 }
0x14e6   : > { %v13906_v9 = vadd.f32 %v7252_v54, %v7203_v21  ;;  %v11695_v24 = vpop.f32.mrb[105].mxu0  ;;  %v12251_v54 = vld [vmem:[%s14279_s17 + $0x14] ss:$8 sps:$4 sm:$0xff]   ;;  %v12257_v21 = vld [vmem:[%s14279_s17 + $0x24] ss:$8 sps:$4 sm:$0xff]  }
0x14e7   : > { %v7206_v25 = vpop.f32.mrb[106].mxu0  ;;  %v12260_v24 = vld [vmem:[%s14279_s17 + $0x64] ss:$8 sps:$4 sm:$0xff]  }
0x14e8   : > { %v13908_v26 = vadd.f32 %v7255_v20, %v7206_v25  ;;  %v11696_v22 = vpop.f32.mrb[107].mxu0  ;;  %v12249_v20 = vld [vmem:[%s14279_s17 + $0x10] ss:$8 sps:$4 sm:$0xff]   ;;  %v12255_v25 = vld [vmem:[%s14279_s17 + $0x20] ss:$8 sps:$4 sm:$0xff]  }
0x14e9   : > { %v12258_v22 = vld [vmem:[%s14279_s17 + $0x60] ss:$8 sps:$4 sm:$0xff]  }
0x14ed   : > { %v11709_v30 = vpop.f32.mrb[108].mxu0 }
0x14ee   : > { %v7302_v31 = vpop.f32.mrb[109].mxu0 }
0x14ef   : > { %v11710_v32 = vpop.f32.mrb[110].mxu0 }
0x14f0   : > { %v7321_v33 = vpack.c.bf16 %v11710_v32, %v11709_v30  ;;  %v7305_v27 = vpop.f32.mrb[111].mxu0  ;;  %v12263_v30 = vld [vmem:[%s14279_s17 + $0x34] ss:$8 sps:$4 sm:$0xff]   ;;  %v12261_v32 = vld [vmem:[%s14279_s17 + $0x30] ss:$8 sps:$4 sm:$0xff]  }
0x14f1   : > { %v7320_v23 = vpack.c.bf16 %v7305_v27, %v7302_v31  ;;  %v12266_v31 = vld [vmem:[%s14279_s17 + $0x74] ss:$8 sps:$4 sm:$0xff]  }
0x14f3   : > { %11712 = vmatpush3.bf16.msra.mxu1 %v7320_v23 }
0x14f4   : > { %11713 = vmatprep.subr.bf16.mxu1 %v12363_v36 }
0x14f5   : > { %v11723_v38 = vpop.f32.mrb[112].mxu0 }
0x14f6   : > { %v7416_v41 = vpop.f32.mrb[113].mxu0 }
0x14f7   : > { %11714 = vmatpush3.bf16.msra.mxu1 %v7321_v33  ;;  %v11724_v55 = vpop.f32.mrb[114].mxu0  ;;  %v12264_v33 = vld [vmem:[%s14279_s17 + $0x70] ss:$8 sps:$4 sm:$0xff]  }
0x14f8   : > { %v7435_v1 = vpack.c.bf16 %v11724_v55, %v11723_v38  ;;  %v7419_v4 = vpop.f32.mrb[115].mxu0  ;;  %11725 = vmatprep.subr.bf16.mxu1 %v12363_v36 }
0x14f9   : > { %v7434_v11 = vpack.c.bf16 %v7419_v4, %v7416_v41 }
0x14fa   : > { %11716 = vmatmul.mubr.msk.bf16.vlgmr.msra.gmra.mrb[140].mxu1 %vm4201_vm6, %v12236_v50 }
0x14fb   : > { %11726 = vmatpush3.bf16.msra.mxu1 %v7434_v11  ;;  %11729 = vmatprep.mubr.msk.bf16.mxu1 %vm12364_vm0, %v12363_v36 }
0x14fc   : > { %11727 = vmatprep.subr.bf16.mxu1 %v12363_v36 }
0x14fd   : > { %v11737_v34 = vpop.f32.mrb[116].mxu0 }
0x14fe   : > { %v7530_v18 = vpop.f32.mrb[117].mxu0 }
0x14ff   : > { %11728 = vmatpush3.bf16.msra.mxu1 %v7435_v1  ;;  %v11738_v28 = vpop.f32.mrb[118].mxu0 }
0x1500   : > { %v7549_v29 = vpack.c.bf16 %v11738_v28, %v11737_v34  ;;  %v7533_v39 = vpop.f32.mrb[119].mxu0  ;;  %11739 = vmatprep.subr.bf16.mxu1 %v12363_v36 }
0x1501   : > { %v7548_v40 = vpack.c.bf16 %v7533_v39, %v7530_v18 }
0x1502   : > { %11730 = vmatmul.mubr.msk.bf16.vlgmr.msra.gmra.mrb[144].mxu1 %vm4201_vm6, %v12237_v19 }
0x1503   : > { %11740 = vmatpush3.bf16.msra.mxu1 %v7548_v40  ;;  %11743 = vmatprep.mubr.msk.bf16.mxu1 %vm12364_vm0, %v12363_v36 }
0x1504   : > { %11741 = vmatprep.subr.bf16.mxu1 %v12363_v36 }
0x1505   : > { %v11751_v37 = vpop.f32.mrb[120].mxu0 }
0x1506   : > { %v7644_v47 = vpop.f32.mrb[121].mxu0 }
0x1507   : > { %11742 = vmatpush3.bf16.msra.mxu1 %v7549_v29  ;;  %v11752_v43 = vpop.f32.mrb[122].mxu0 }
0x1508   : > { %v7663_v44 = vpack.c.bf16 %v11752_v43, %v11751_v37  ;;  %v7647_v45 = vpop.f32.mrb[123].mxu0  ;;  %11753 = vmatprep.subr.bf16.mxu1 %v12363_v36 }
0x1509   : > { %v7662_v46 = vpack.c.bf16 %v7647_v45, %v7644_v47 }
0x150a   : > { %11744 = vmatmul.mubr.msk.bf16.vlgmr.msra.gmra.mrb[148].mxu1 %vm4201_vm6, %v12238_v42 }
0x150b   : > { %11754 = vmatpush3.bf16.msra.mxu1 %v7662_v46  ;;  %11757 = vmatprep.mubr.msk.bf16.mxu1 %vm12364_vm0, %v12363_v36 }
0x150c   : > { %11755 = vmatprep.subr.bf16.mxu1 %v12363_v36 }
0x150d   : > { %v11765_v48 = vpop.f32.mrb[124].mxu0 }
0x150e   : > { %v7758_v49 = vpop.f32.mrb[125].mxu0 }
0x150f   : > { %11756 = vmatpush3.bf16.msra.mxu1 %v7663_v44  ;;  %v11766_v52 = vpop.f32.mrb[126].mxu0 }
0x1510   : > { %v7777_v53 = vpack.c.bf16 %v11766_v52, %v11765_v48  ;;  %v7761_v58 = vpop.f32.mrb[127].mxu0  ;;  %11767 = vmatprep.subr.bf16.mxu1 %v12363_v36 }
0x1511   : > { %v7776_v59 = vpack.c.bf16 %v7761_v58, %v7758_v49 }
0x1512   : > { %11758 = vmatmul.mubr.msk.bf16.vlgmr.msra.gmra.mrb[152].mxu1 %vm4201_vm6, %v12239_v51 }
0x1513   : > { %11768 = vmatpush3.bf16.msra.mxu1 %v7776_v59  ;;  %11771 = vmatprep.mubr.msk.bf16.mxu1 %vm12364_vm0, %v12363_v36 }
0x1514   : > { %11769 = vmatprep.subr.bf16.mxu1 %v12363_v36 }
0x1515   : > { %v11779_v60 = vpop.f32.mrb[128].mxu0 }
0x1516   : > { %v7872_v61 = vpop.f32.mrb[129].mxu0 }
0x1517   : > { %11770 = vmatpush3.bf16.msra.mxu1 %v7777_v53  ;;  %v11780_v63 = vpop.f32.mrb[130].mxu0 }
0x1518   : > { %v7891_v0 = vpack.c.bf16 %v11780_v63, %v11779_v60  ;;  %v7875_v2 = vpop.f32.mrb[131].mxu0  ;;  %11781 = vmatprep.subr.bf16.mxu1 %v12363_v36 }
0x1519   : > { %v7890_v35 = vpack.c.bf16 %v7875_v2, %v7872_v61 }
0x151a   : > { %11772 = vmatmul.mubr.msk.bf16.vlgmr.msra.gmra.mrb[156].mxu1 %vm4201_vm6, %v12240_v62 }
0x151b   : > { %11782 = vmatpush3.bf16.msra.mxu1 %v7890_v35  ;;  %11785 = vmatprep.mubr.msk.bf16.mxu1 %vm12364_vm0, %v12363_v36 }
0x151c   : > { %11783 = vmatprep.subr.bf16.mxu1 %v12363_v36 }
0x151d   : > { %v11793_v3 = vpop.f32.mrb[132].mxu0 }
0x151e   : > { %v7986_v5 = vpop.f32.mrb[133].mxu0 }
0x151f   : > { %11784 = vmatpush3.bf16.msra.mxu1 %v7891_v0  ;;  %v11794_v7 = vpop.f32.mrb[134].mxu0 }
0x1520   : > { %v8005_v8 = vpack.c.bf16 %v11794_v7, %v11793_v3  ;;  %v7989_v13 = vpop.f32.mrb[135].mxu0  ;;  %11795 = vmatprep.subr.bf16.mxu1 %v12363_v36  ;;  %v8062_v3 = vpop.permute.xlu0 %8061 }
0x1521   : > { %v8004_v14 = vpack.c.bf16 %v7989_v13, %v7986_v5  ;;  %v8067_v13 = vpop.permute.xlu1 %8066 }
0x1522   : > { %11786 = vmatmul.mubr.msk.bf16.vlgmr.msra.gmra.mrb[160].mxu1 %vm4201_vm6, %v12241_v6 }
0x1523   : > { %11796 = vmatpush3.bf16.msra.mxu1 %v8004_v14  ;;  %11799 = vmatprep.mubr.msk.bf16.mxu1 %vm12364_vm0, %v12363_v36 }
0x1524   : > { %11797 = vmatprep.subr.bf16.mxu1 %v12363_v36  ;;  %v12243_v36 = vld [vmem:[%s14279_s17] ss:$8 sps:$4 sm:$0xff]  }
0x1525   : > { %8126 = vmatpush1.bf16.msra.mxu0 %v12243_v36 }
0x1526   : > { %8127 = vmatprep.subr.bf16.mxu0 %v12251_v54 }
0x1527   : > { %11798 = vmatpush3.bf16.msra.mxu1 %v8005_v8 }
0x1528   : > { %8220 = vmatprep.subr.bf16.mxu1 %v12248_v57 }
0x1529   : > { %8128 = vmatpush1.bf16.msra.mxu0 %v12249_v20 }
0x152a   : > { %11800 = vmatmul.mubr.msk.bf16.vlgmr.msra.gmra.mrb[164].mxu1 %vm4201_vm6, %v12242_v15  ;;  %8129 = vmatprep.subr.bf16.mxu0 %v12257_v21 }
0x152b   : > { %8252 = vmatprep.mubr.bf16.mxu1 %v12366_v12  ;;  %8221 = vmatpush1.bf16.msra.mxu1 %v12246_v17 }
0x152c   : > { %8222 = vmatprep.subr.bf16.mxu1 %v12254_v56 }
0x152d   : > { %8130 = vmatpush1.bf16.msra.mxu0 %v12255_v25 }
0x152e   : > { %8131 = vmatprep.subr.bf16.mxu0 %v12263_v30 }
0x152f   : > { %8223 = vmatpush1.bf16.msra.mxu1 %v12252_v10 }
0x1530   : > { %8224 = vmatprep.subr.bf16.mxu1 %v12260_v24 }
0x1531   : > { %8132 = vmatpush1.bf16.msra.mxu0 %v12261_v32  ;;  %v12269_v32 = vld [vmem:[%s14279_s17 + $0x84] ss:$8 sps:$4 sm:$0xff]  }
0x1533   : > { %8225 = vmatpush1.bf16.msra.mxu1 %v12258_v22 }
0x1534   : > { %8226 = vmatprep.subr.bf16.mxu1 %v12266_v31 }
0x1537   : > { %8227 = vmatpush1.bf16.msra.mxu1 %v12264_v33  ;;  %v10439_v33 = vld [vmem:[%s14278_s16 + $0x2] sm:$0x3] }
0x15cd   : > { %v7364_v27 = vpop.f32.mrb[140].mxu1 }
0x15ce   : > { %v7371_v23 = vadd.f32 %v7364_v27, %v13906_v9  ;;  %v11717_v38 = vpop.f32.mrb[141].mxu1  ;;  %v8168_v27 = vld [vmem:[%s14278_s16] sm:$0x3] }
0x15cf   : > { %v7367_v41 = vpop.f32.mrb[142].mxu1  ;;  %v12272_v38 = vld [vmem:[%s14279_s17 + $0x94] ss:$8 sps:$4 sm:$0xff]  }
0x15d0   : > { %v7372_v50 = vadd.f32 %v7367_v41, %v13908_v26  ;;  %v11718_v55 = vpop.f32.mrb[143].mxu1  ;;  %v12270_v41 = vld [vmem:[%s14279_s17 + $0x90] ss:$8 sps:$4 sm:$0xff]  }
0x15d1   : > { %v12273_v55 = vld [vmem:[%s14279_s17 + $0xa0] ss:$8 sps:$4 sm:$0xff]  }
0x15d5   : > { %v7478_v1 = vpop.f32.mrb[144].mxu1 }
0x15d6   : > { %v7485_v4 = vadd.f32 %v7478_v1, %v7371_v23  ;;  %v11731_v11 = vpop.f32.mrb[145].mxu1  ;;  %v12267_v23 = vld [vmem:[%s14279_s17 + $0x80] ss:$8 sps:$4 sm:$0xff]   ;;  %v12278_v1 = vld [vmem:[%s14279_s17 + $0xb4] ss:$8 sps:$4 sm:$0xff]  }
0x15d7   : > { %v7481_v34 = vpop.f32.mrb[146].mxu1 }
0x15d8   : > { %v7486_v18 = vadd.f32 %v7481_v34, %v7372_v50  ;;  %v11732_v19 = vpop.f32.mrb[147].mxu1  ;;  %v12275_v50 = vld [vmem:[%s14279_s17 + $0xa4] ss:$8 sps:$4 sm:$0xff]  }
0x15dd   : > { %v7592_v28 = vpop.f32.mrb[148].mxu1 }
0x15de   : > { %v7599_v29 = vadd.f32 %v7592_v28, %v7485_v4  ;;  %v11745_v39 = vpop.f32.mrb[149].mxu1  ;;  %v12276_v4 = vld [vmem:[%s14279_s17 + $0xb0] ss:$8 sps:$4 sm:$0xff]  }
0x15df   : > { %v7595_v40 = vpop.f32.mrb[150].mxu1 }
0x15e0   : > { %v7600_v37 = vadd.f32 %v7595_v40, %v7486_v18  ;;  %v11746_v47 = vpop.f32.mrb[151].mxu1 }
0x15e5   : > { %v7706_v42 = vpop.f32.mrb[152].mxu1 }
0x15e6   : > { %v7713_v43 = vadd.f32 %v7706_v42, %v7599_v29  ;;  %v11759_v9 = vpop.f32.mrb[153].mxu1 }
0x15e7   : > { %v7709_v44 = vpop.f32.mrb[154].mxu1 }
0x15e8   : > { %v7714_v45 = vadd.f32 %v7709_v44, %v7600_v37  ;;  %v11760_v46 = vpop.f32.mrb[155].mxu1 }
0x15ed   : > { %v7820_v26 = vpop.f32.mrb[156].mxu1 }
0x15ee   : > { %v7827_v48 = vadd.f32 %v7820_v26, %v7713_v43  ;;  %v11773_v49 = vpop.f32.mrb[157].mxu1  ;;  %v12281_v26 = vld [vmem:[%s14279_s17 + $0xc4] ss:$8 sps:$4 sm:$0xff]  }
0x15ef   : > { %v7823_v51 = vpop.f32.mrb[158].mxu1  ;;  %v12279_v49 = vld [vmem:[%s14279_s17 + $0xc0] ss:$8 sps:$4 sm:$0xff]  }
0x15f0   : > { %v7828_v52 = vadd.f32 %v7823_v51, %v7714_v45  ;;  %v11774_v53 = vpop.f32.mrb[159].mxu1  ;;  %v12284_v51 = vld [vmem:[%s14279_s17 + $0xd4] ss:$8 sps:$4 sm:$0xff]  }
0x15f1   : > { %v12287_v53 = vld [vmem:[%s14279_s17 + $0xe4] ss:$8 sps:$4 sm:$0xff]  }
0x15f5   : > { %v7934_v58 = vpop.f32.mrb[160].mxu1 }
0x15f6   : > { %v7941_v59 = vadd.f32 %v7934_v58, %v7827_v48  ;;  %v11787_v60 = vpop.f32.mrb[161].mxu1  ;;  %v10459_v48 = vld [vmem:[%s14278_s16 + $0x4] sm:$0x3]  ;;  %v12285_v58 = vld [vmem:[%s14279_s17 + $0xe0] ss:$8 sps:$4 sm:$0xff]  }
0x15f7   : > { %v7937_v61 = vpop.f32.mrb[162].mxu1  ;;  %v12288_v60 = vld [vmem:[%s14279_s17 + $0xf0] ss:$8 sps:$4 sm:$0xff]  }
0x15f8   : > { %v7942_v62 = vadd.f32 %v7937_v61, %v7828_v52  ;;  %v11788_v63 = vpop.f32.mrb[163].mxu1  ;;  %v12282_v52 = vld [vmem:[%s14279_s17 + $0xd0] ss:$8 sps:$4 sm:$0xff]  }
0x15fd   : > { %v8048_v0 = vpop.f32.mrb[164].mxu1 }
0x15fe   : > { %v8055_v2 = vadd.f32 %v8048_v0, %v7941_v59  ;;  %v11801_v35 = vpop.f32.mrb[165].mxu1  ;;  %v12290_v59 = vld [vmem:[%s14279_s17 + $0xf4] ss:$8 sps:$4 sm:$0xff]  }
0x15ff   : > { %v8051_v5 = vpop.f32.mrb[166].mxu1 }
0x1600   : > { %v8069_v6 = vadd.f32 %v8062_v3, %v8055_v2  ;;  %v8056_v7 = vadd.f32 %v8051_v5, %v7942_v62  ;;  %v11802_v8 = vpop.f32.mrb[167].mxu1 }
0x1602   : > { %v8070_v14 = vadd.f32 %v8067_v13, %v8056_v7  ;;  %v8071_v15 = vmax.f32 %v8069_v6, 0.0 }
0x1604   : > { %v8072_v16 = vmax.f32 %v8070_v14, 0.0  ;;  %v12293_v14 = vld [vmem:[%s14279_s17 + $0x104] ss:$8 sps:$4 sm:$0xff]  }
0x1606   : > { %v14014_v57 = vpack.c.bf16 %v8072_v16, %v8071_v15  ;;  %v10478_v15 = vld [vmem:[%s14278_s16 + $0x6] sm:$0x3]  ;;  %v12291_v16 = vld [vmem:[%s14279_s17 + $0x100] ss:$8 sps:$4 sm:$0xff]  }
0x1608   : > { %10421 = vmatmul.mubr.msk.bf16.vlgmr.msra.gmra.mrb[136].mxu0 %vm2701_vm4, %v14014_v57  ;;  %10438 = vmatmul.mubr.msk.bf16.vlgmr.msra.gmra.mrb[168].mxu1 %vm2701_vm4, %v14014_v57 }
0x1609   : > { %8302 = vmatprep.mubr.bf16.mxu0 %v12366_v12  ;;  %8346 = vmatprep.mubr.bf16.mxu1 %v12366_v12 }
0x16db   : > { %v8159_v36 = vpop.f32.mrb[136].mxu0  ;;  %v8254_v17 = vpop.f32.mrb[168].mxu1 }
0x16dc   : > { %v8161_v54 = vpop.f32.mrb[137].mxu0  ;;  %v8256_v56 = vpop.f32.mrb[169].mxu1 }
0x16dd   : > { %v8163_v20 = vpop.f32.mrb[138].mxu0  ;;  %v8258_v10 = vpop.f32.mrb[170].mxu1 }
0x16de   : > { %v8169_v21 = vpack.c.bf16 %v8163_v20, %v8159_v36  ;;  %v8265_v24 = vpack.c.bf16 %v8258_v10, %v8254_v17  ;;  %v8165_v25 = vpop.f32.mrb[139].mxu0  ;;  %v8260_v22 = vpop.f32.mrb[171].mxu1  ;;  %v12296_v36 = vld [vmem:[%s14279_s17 + $0x114] ss:$8 sps:$4 sm:$0xff]   ;;  %v12294_v17 = vld [vmem:[%s14279_s17 + $0x110] ss:$8 sps:$4 sm:$0xff]  }
0x16df   : > { %v8170_v30 = vpack.c.bf16 %v8165_v25, %v8161_v54  ;;  %v8266_v31 = vpack.c.bf16 %v8260_v22, %v8256_v56  ;;  %v12299_v54 = vld [vmem:[%s14279_s17 + $0x124] ss:$8 sps:$4 sm:$0xff]   ;;  %v12297_v56 = vld [vmem:[%s14279_s17 + $0x120] ss:$8 sps:$4 sm:$0xff]   ;;  %v12302_v20 = vld [vmem:[%s14279_s17 + $0x134] ss:$8 sps:$4 sm:$0xff]  }
0x16e0   : > { %v12300_v10 = vld [vmem:[%s14279_s17 + $0x130] ss:$8 sps:$4 sm:$0xff]  }
0x16e1   : > { %8270 = vmatprep.subr.bf16.mxu0 %v8266_v31  ;;  %8314 = vmatprep.subr.bf16.mxu1 %v8170_v30 }
0x16e2   : > { %8271 = vmatpush1.bf16.msra.mxu0 %v8265_v24  ;;  %8315 = vmatpush1.bf16.msra.mxu1 %v8169_v21 }
0x16e3   : > { %8404 = vmatprep.subr.bf16.mxu0 %v12269_v32 }
0x16e5   : > { %10440 = vmatmul.mubr.msk.bf16.vlgmr.msra.gmra.mrb[140].mxu0 %vm2841_vm5, %v10439_v33  ;;  %10441 = vmatmul.mubr.msk.bf16.vlgmr.msra.gmra.mrb[172].mxu1 %vm2841_vm5, %v8168_v27 }
0x16e6   : > { %8405 = vmatpush1.bf16.msra.mxu0 %v12267_v23  ;;  %8436 = vmatprep.mubr.bf16.mxu0 %v12366_v12 }
0x16e7   : > { %8406 = vmatprep.subr.bf16.mxu0 %v12272_v38  ;;  %8486 = vmatprep.mubr.bf16.mxu1 %v12366_v12 }
0x16ea   : > { %8407 = vmatpush1.bf16.msra.mxu0 %v12270_v41 }
0x16eb   : > { %8408 = vmatprep.subr.bf16.mxu0 %v12275_v50  ;;  %v12305_v50 = vld [vmem:[%s14279_s17 + $0x144] ss:$8 sps:$4 sm:$0xff]  }
0x16ee   : > { %8409 = vmatpush1.bf16.msra.mxu0 %v12273_v55  ;;  %v10497_v55 = vld [vmem:[%s14278_s16 + $0x8] sm:$0x3] }
0x16ef   : > { %8410 = vmatprep.subr.bf16.mxu0 %v12278_v1  ;;  %v12303_v1 = vld [vmem:[%s14279_s17 + $0x140] ss:$8 sps:$4 sm:$0xff]  }
0x16f2   : > { %8411 = vmatpush1.bf16.msra.mxu0 %v12276_v4  ;;  %v12308_v4 = vld [vmem:[%s14279_s17 + $0x154] ss:$8 sps:$4 sm:$0xff]  }
0x16f5   : > { %10458 = vmatmul.mubr.msk.bf16.vlgmr.msra.gmra.mrb[144].mxu0 %vm2701_vm4, %v14014_v57 }
0x16f6   : > { %8628 = vmatprep.mubr.bf16.mxu0 %v12366_v12 }
0x17b8   : > { %v8304_v11 = vpop.f32.mrb[140].mxu0  ;;  %v8348_v34 = vpop.f32.mrb[172].mxu1 }
0x17b9   : > { %v8349_v18 = vadd.f32 %v8348_v34, %v8304_v11  ;;  %v8306_v19 = vpop.f32.mrb[141].mxu0  ;;  %v8350_v28 = vpop.f32.mrb[173].mxu1  ;;  %v12306_v11 = vld [vmem:[%s14279_s17 + $0x150] ss:$8 sps:$4 sm:$0xff]   ;;  %v12311_v34 = vld [vmem:[%s14279_s17 + $0x164] ss:$8 sps:$4 sm:$0xff]  }
0x17ba   : > { %v8351_v29 = vadd.f32 %v8350_v28, %v8306_v19  ;;  %v8308_v39 = vpop.f32.mrb[142].mxu0  ;;  %v8352_v40 = vpop.f32.mrb[174].mxu1  ;;  %v12314_v19 = vld [vmem:[%s14279_s17 + $0x174] ss:$8 sps:$4 sm:$0xff]   ;;  %v12312_v28 = vld [vmem:[%s14279_s17 + $0x170] ss:$8 sps:$4 sm:$0xff]  }
0x17bb   : > { %v8309_v37 = vpop.f32.mrb[143].mxu0  ;;  %v8353_v47 = vpop.f32.mrb[175].mxu1 }
0x17c8   : > { %v8438_v42 = vpop.f32.mrb[144].mxu0 }
0x17c9   : > { %v8440_v43 = vpop.f32.mrb[145].mxu0 }
0x17ca   : > { %v8442_v9 = vpop.f32.mrb[146].mxu0 }
0x17cb   : > { %v8449_v44 = vpack.c.bf16 %v8442_v9, %v8438_v42  ;;  %v8444_v45 = vpop.f32.mrb[147].mxu0 }
0x17cc   : > { %v8450_v46 = vpack.c.bf16 %v8444_v45, %v8440_v43 }
0x17ce   : > { %8454 = vmatprep.subr.bf16.mxu1 %v8450_v46 }
0x17cf   : > { %8455 = vmatpush1.bf16.msra.mxu1 %v8449_v44 }
0x17d0   : > { %8546 = vmatprep.subr.bf16.mxu1 %v12281_v26 }
0x17d2   : > { %10460 = vmatmul.mubr.msk.bf16.vlgmr.msra.gmra.mrb[176].mxu1 %vm2841_vm5, %v10459_v48  ;;  %v12317_v48 = vld [vmem:[%s14279_s17 + $0x184] ss:$8 sps:$4 sm:$0xff]  }
0x17d3   : > { %8547 = vmatpush1.bf16.msra.mxu1 %v12279_v49  ;;  %8578 = vmatprep.mubr.bf16.mxu1 %v12366_v12  ;;  %v10516_v49 = vld [vmem:[%s14278_s16 + $0xa] sm:$0x3] }
0x17d4   : > { %8548 = vmatprep.subr.bf16.mxu1 %v12284_v51  ;;  %v12315_v51 = vld [vmem:[%s14279_s17 + $0x180] ss:$8 sps:$4 sm:$0xff]  }
0x17d7   : > { %8549 = vmatpush1.bf16.msra.mxu1 %v12282_v52  ;;  %v12320_v52 = vld [vmem:[%s14279_s17 + $0x194] ss:$8 sps:$4 sm:$0xff]  }
0x17d8   : > { %8550 = vmatprep.subr.bf16.mxu1 %v12287_v53  ;;  %v12318_v53 = vld [vmem:[%s14279_s17 + $0x190] ss:$8 sps:$4 sm:$0xff]  }
0x17db   : > { %8551 = vmatpush1.bf16.msra.mxu1 %v12285_v58  ;;  %v12323_v58 = vld [vmem:[%s14279_s17 + $0x1a4] ss:$8 sps:$4 sm:$0xff]  }
0x17dc   : > { %8552 = vmatprep.subr.bf16.mxu1 %v12290_v59  ;;  %v12321_v59 = vld [vmem:[%s14279_s17 + $0x1a0] ss:$8 sps:$4 sm:$0xff]  }
0x17df   : > { %8553 = vmatpush1.bf16.msra.mxu1 %v12288_v60  ;;  %v12326_v60 = vld [vmem:[%s14279_s17 + $0x1b4] ss:$8 sps:$4 sm:$0xff]  }
0x17e2   : > { %10477 = vmatmul.mubr.msk.bf16.vlgmr.msra.gmra.mrb[180].mxu1 %vm2701_vm4, %v14014_v57 }
0x17e3   : > { %8770 = vmatprep.mubr.bf16.mxu1 %v12366_v12 }
0x18a5   : > { %v8488_v61 = vpop.f32.mrb[176].mxu1 }
0x18a6   : > { %v8495_v62 = vadd.f32 %v8488_v61, %v8349_v18  ;;  %v8490_v63 = vpop.f32.mrb[177].mxu1  ;;  %v12309_v18 = vld [vmem:[%s14279_s17 + $0x160] ss:$8 sps:$4 sm:$0xff]   ;;  %v12324_v61 = vld [vmem:[%s14279_s17 + $0x1b0] ss:$8 sps:$4 sm:$0xff]  }
0x18a7   : > { %v8496_v0 = vadd.f32 %v8490_v63, %v8351_v29  ;;  %v8492_v2 = vpop.f32.mrb[178].mxu1 }
0x18a8   : > { %v8493_v35 = vpop.f32.mrb[179].mxu1 }
0x18b5   : > { %v8580_v3 = vpop.f32.mrb[180].mxu1 }
0x18b6   : > { %v8582_v5 = vpop.f32.mrb[181].mxu1 }
0x18b7   : > { %v8584_v6 = vpop.f32.mrb[182].mxu1 }
0x18b8   : > { %v8591_v7 = vpack.c.bf16 %v8584_v6, %v8580_v3  ;;  %v8586_v8 = vpop.f32.mrb[183].mxu1 }
0x18b9   : > { %v8592_v13 = vpack.c.bf16 %v8586_v8, %v8582_v5 }
0x18bb   : > { %8596 = vmatprep.subr.bf16.mxu0 %v8592_v13 }
0x18bc   : > { %8597 = vmatpush1.bf16.msra.mxu0 %v8591_v7 }
0x18bd   : > { %8688 = vmatprep.subr.bf16.mxu0 %v12293_v14 }
0x18bf   : > { %10479 = vmatmul.mubr.msk.bf16.vlgmr.msra.gmra.mrb[148].mxu0 %vm2841_vm5, %v10478_v15  ;;  %v12329_v15 = vld [vmem:[%s14279_s17 + $0x1c4] ss:$8 sps:$4 sm:$0xff]  }
0x18c0   : > { %8689 = vmatpush1.bf16.msra.mxu0 %v12291_v16  ;;  %8720 = vmatprep.mubr.bf16.mxu0 %v12366_v12  ;;  %v10535_v16 = vld [vmem:[%s14278_s16 + $0xc] sm:$0x3] }
0x18c1   : > { %8690 = vmatprep.subr.bf16.mxu0 %v12296_v36  ;;  %v12327_v36 = vld [vmem:[%s14279_s17 + $0x1c0] ss:$8 sps:$4 sm:$0xff]  }
0x18c4   : > { %8691 = vmatpush1.bf16.msra.mxu0 %v12294_v17  ;;  %v12332_v17 = vld [vmem:[%s14279_s17 + $0x1d4] ss:$8 sps:$4 sm:$0xff]  }
0x18c5   : > { %8692 = vmatprep.subr.bf16.mxu0 %v12299_v54  ;;  %v12330_v54 = vld [vmem:[%s14279_s17 + $0x1d0] ss:$8 sps:$4 sm:$0xff]  }
0x18c8   : > { %8693 = vmatpush1.bf16.msra.mxu0 %v12297_v56  ;;  %v12335_v56 = vld [vmem:[%s14279_s17 + $0x1e4] ss:$8 sps:$4 sm:$0xff]  }
0x18c9   : > { %8694 = vmatprep.subr.bf16.mxu0 %v12302_v20  ;;  %v12333_v20 = vld [vmem:[%s14279_s17 + $0x1e0] ss:$8 sps:$4 sm:$0xff]  }
0x18cc   : > { %8695 = vmatpush1.bf16.msra.mxu0 %v12300_v10  ;;  %v12338_v10 = vld [vmem:[%s14279_s17 + $0x1f4] ss:$8 sps:$4 sm:$0xff]  }
0x18cf   : > { %10496 = vmatmul.mubr.msk.bf16.vlgmr.msra.gmra.mrb[152].mxu0 %vm2701_vm4, %v14014_v57 }
0x18d0   : > { %8912 = vmatprep.mubr.bf16.mxu0 %v12366_v12 }
0x1992   : > { %v8630_v21 = vpop.f32.mrb[148].mxu0 }
0x1993   : > { %v8637_v24 = vadd.f32 %v8630_v21, %v8495_v62  ;;  %v8632_v25 = vpop.f32.mrb[149].mxu0  ;;  %v12336_v21 = vld [vmem:[%s14279_s17 + $0x1f0] ss:$8 sps:$4 sm:$0xff]  }
0x1994   : > { %v8638_v22 = vadd.f32 %v8632_v25, %v8496_v0  ;;  %v8634_v30 = vpop.f32.mrb[150].mxu0 }
0x1995   : > { %v8635_v31 = vpop.f32.mrb[151].mxu0 }
0x19a2   : > { %v8722_v32 = vpop.f32.mrb[152].mxu0 }
0x19a3   : > { %v8724_v33 = vpop.f32.mrb[153].mxu0 }
0x19a4   : > { %v8726_v27 = vpop.f32.mrb[154].mxu0 }
0x19a5   : > { %v8733_v23 = vpack.c.bf16 %v8726_v27, %v8722_v32  ;;  %v8728_v38 = vpop.f32.mrb[155].mxu0 }
0x19a6   : > { %v8734_v41 = vpack.c.bf16 %v8728_v38, %v8724_v33 }
0x19a8   : > { %8738 = vmatprep.subr.bf16.mxu1 %v8734_v41 }
0x19a9   : > { %8739 = vmatpush1.bf16.msra.mxu1 %v8733_v23 }
0x19aa   : > { %8830 = vmatprep.subr.bf16.mxu1 %v12305_v50 }
0x19ac   : > { %10498 = vmatmul.mubr.msk.bf16.vlgmr.msra.gmra.mrb[184].mxu1 %vm2841_vm5, %v10497_v55  ;;  %v12341_v55 = vld [vmem:[%s14279_s17 + $0x204] ss:$8 sps:$4 sm:$0xff]  }
0x19ad   : > { %8831 = vmatpush1.bf16.msra.mxu1 %v12303_v1  ;;  %8862 = vmatprep.mubr.bf16.mxu1 %v12366_v12  ;;  %v10554_v1 = vld [vmem:[%s14278_s16 + $0xe] sm:$0x3] }
0x19ae   : > { %8832 = vmatprep.subr.bf16.mxu1 %v12308_v4  ;;  %v12339_v4 = vld [vmem:[%s14279_s17 + $0x200] ss:$8 sps:$4 sm:$0xff]  }
0x19b1   : > { %8833 = vmatpush1.bf16.msra.mxu1 %v12306_v11  ;;  %v12344_v11 = vld [vmem:[%s14279_s17 + $0x214] ss:$8 sps:$4 sm:$0xff]  }
0x19b2   : > { %8834 = vmatprep.subr.bf16.mxu1 %v12311_v34  ;;  %v12342_v34 = vld [vmem:[%s14279_s17 + $0x210] ss:$8 sps:$4 sm:$0xff]  }
0x19b5   : > { %8835 = vmatpush1.bf16.msra.mxu1 %v12309_v18  ;;  %v12347_v18 = vld [vmem:[%s14279_s17 + $0x224] ss:$8 sps:$4 sm:$0xff]  }
0x19b6   : > { %8836 = vmatprep.subr.bf16.mxu1 %v12314_v19  ;;  %v12345_v19 = vld [vmem:[%s14279_s17 + $0x220] ss:$8 sps:$4 sm:$0xff]  }
0x19b9   : > { %8837 = vmatpush1.bf16.msra.mxu1 %v12312_v28  ;;  %v12350_v28 = vld [vmem:[%s14279_s17 + $0x234] ss:$8 sps:$4 sm:$0xff]  }
0x19bc   : > { %10515 = vmatmul.mubr.msk.bf16.vlgmr.msra.gmra.mrb[188].mxu1 %vm2701_vm4, %v14014_v57 }
0x19bd   : > { %9054 = vmatprep.mubr.bf16.mxu1 %v12366_v12 }
0x1a7f   : > { %v8772_v29 = vpop.f32.mrb[184].mxu1 }
0x1a80   : > { %v8779_v39 = vadd.f32 %v8772_v29, %v8637_v24  ;;  %v8774_v40 = vpop.f32.mrb[185].mxu1 }
0x1a81   : > { %v8780_v37 = vadd.f32 %v8774_v40, %v8638_v22  ;;  %v8776_v47 = vpop.f32.mrb[186].mxu1 }
0x1a82   : > { %v8777_v42 = vpop.f32.mrb[187].mxu1 }
0x1a8f   : > { %v8864_v43 = vpop.f32.mrb[188].mxu1 }
0x1a90   : > { %v8866_v9 = vpop.f32.mrb[189].mxu1 }
0x1a91   : > { %v8868_v44 = vpop.f32.mrb[190].mxu1 }
0x1a92   : > { %v8875_v45 = vpack.c.bf16 %v8868_v44, %v8864_v43  ;;  %v8870_v46 = vpop.f32.mrb[191].mxu1 }
0x1a93   : > { %v8876_v26 = vpack.c.bf16 %v8870_v46, %v8866_v9 }
0x1a95   : > { %8880 = vmatprep.subr.bf16.mxu0 %v8876_v26 }
0x1a96   : > { %8881 = vmatpush1.bf16.msra.mxu0 %v8875_v45 }
0x1a97   : > { %8972 = vmatprep.subr.bf16.mxu0 %v12317_v48  ;;  %v10573_v48 = vld [vmem:[%s14278_s16 + $0x10] sm:$0x3] }
0x1a99   : > { %10517 = vmatmul.mubr.msk.bf16.vlgmr.msra.gmra.mrb[156].mxu0 %vm2841_vm5, %v10516_v49 }
0x1a9a   : > { %8973 = vmatpush1.bf16.msra.mxu0 %v12315_v51  ;;  %9004 = vmatprep.mubr.bf16.mxu0 %v12366_v12 }
0x1a9b   : > { %8974 = vmatprep.subr.bf16.mxu0 %v12320_v52  ;;  %v9353_v52 = vpop.permute.xlu0 %9352 }
0x1a9e   : > { %8975 = vmatpush1.bf16.msra.mxu0 %v12318_v53 }
0x1a9f   : > { %8976 = vmatprep.subr.bf16.mxu0 %v12323_v58 }
0x1aa2   : > { %8977 = vmatpush1.bf16.msra.mxu0 %v12321_v59 }
0x1aa3   : > { %8978 = vmatprep.subr.bf16.mxu0 %v12326_v60 }
0x1aa6   : > { %8979 = vmatpush1.bf16.msra.mxu0 %v12324_v61 }
0x1aa9   : > { %10534 = vmatmul.mubr.msk.bf16.vlgmr.msra.gmra.mrb[160].mxu0 %vm2701_vm4, %v14014_v57 }
0x1aaa   : > { %9196 = vmatprep.mubr.bf16.mxu0 %v12366_v12 }
0x1b6c   : > { %v8914_v62 = vpop.f32.mrb[156].mxu0 }
0x1b6d   : > { %v8921_v63 = vadd.f32 %v8914_v62, %v8779_v39  ;;  %v8916_v0 = vpop.f32.mrb[157].mxu0 }
0x1b6e   : > { %v8922_v2 = vadd.f32 %v8916_v0, %v8780_v37  ;;  %v8918_v35 = vpop.f32.mrb[158].mxu0 }
0x1b6f   : > { %v8919_v3 = vpop.f32.mrb[159].mxu0 }
0x1b7c   : > { %v9006_v5 = vpop.f32.mrb[160].mxu0 }
0x1b7d   : > { %v9008_v6 = vpop.f32.mrb[161].mxu0 }
0x1b7e   : > { %v9010_v7 = vpop.f32.mrb[162].mxu0 }
0x1b7f   : > { %v9017_v8 = vpack.c.bf16 %v9010_v7, %v9006_v5  ;;  %v9012_v13 = vpop.f32.mrb[163].mxu0 }
0x1b80   : > { %v9018_v14 = vpack.c.bf16 %v9012_v13, %v9008_v6 }
0x1b82   : > { %9022 = vmatprep.subr.bf16.mxu1 %v9018_v14 }
0x1b83   : > { %9023 = vmatpush1.bf16.msra.mxu1 %v9017_v8 }
0x1b84   : > { %9114 = vmatprep.subr.bf16.mxu1 %v12329_v15 }
0x1b86   : > { %10536 = vmatmul.mubr.msk.bf16.vlgmr.msra.gmra.mrb[192].mxu1 %vm2841_vm5, %v10535_v16 }
0x1b87   : > { %9115 = vmatpush1.bf16.msra.mxu1 %v12327_v36  ;;  %9146 = vmatprep.mubr.bf16.mxu1 %v12366_v12 }
0x1b88   : > { %9116 = vmatprep.subr.bf16.mxu1 %v12332_v17 }
0x1b8b   : > { %9117 = vmatpush1.bf16.msra.mxu1 %v12330_v54 }
0x1b8c   : > { %9118 = vmatprep.subr.bf16.mxu1 %v12335_v56 }
0x1b8f   : > { %9119 = vmatpush1.bf16.msra.mxu1 %v12333_v20 }
0x1b90   : > { %9120 = vmatprep.subr.bf16.mxu1 %v12338_v10 }
0x1b93   : > { %9121 = vmatpush1.bf16.msra.mxu1 %v12336_v21 }
0x1b96   : > { %10553 = vmatmul.mubr.msk.bf16.vlgmr.msra.gmra.mrb[196].mxu1 %vm2701_vm4, %v14014_v57 }
0x1b97   : > { %9338 = vmatprep.mubr.bf16.mxu1 %v12366_v12 }
0x1c59   : > { %v9056_v24 = vpop.f32.mrb[192].mxu1 }
0x1c5a   : > { %v9063_v25 = vadd.f32 %v9056_v24, %v8921_v63  ;;  %v9058_v22 = vpop.f32.mrb[193].mxu1 }
0x1c5b   : > { %v9064_v30 = vadd.f32 %v9058_v22, %v8922_v2  ;;  %v9060_v31 = vpop.f32.mrb[194].mxu1 }
0x1c5c   : > { %v9061_v32 = vpop.f32.mrb[195].mxu1 }
0x1c69   : > { %v9148_v33 = vpop.f32.mrb[196].mxu1 }
0x1c6a   : > { %v9150_v27 = vpop.f32.mrb[197].mxu1 }
0x1c6b   : > { %v9152_v23 = vpop.f32.mrb[198].mxu1 }
0x1c6c   : > { %v9159_v38 = vpack.c.bf16 %v9152_v23, %v9148_v33  ;;  %v9154_v41 = vpop.f32.mrb[199].mxu1 }
0x1c6d   : > { %v9160_v50 = vpack.c.bf16 %v9154_v41, %v9150_v27 }
0x1c6f   : > { %9164 = vmatprep.subr.bf16.mxu0 %v9160_v50 }
0x1c70   : > { %9165 = vmatpush1.bf16.msra.mxu0 %v9159_v38 }
0x1c71   : > { %9256 = vmatprep.subr.bf16.mxu0 %v12341_v55 }
0x1c73   : > { %10555 = vmatmul.mubr.msk.bf16.vlgmr.msra.gmra.mrb[164].mxu0 %vm2841_vm5, %v10554_v1 }
0x1c74   : > { %9257 = vmatpush1.bf16.msra.mxu0 %v12339_v4  ;;  %9288 = vmatprep.mubr.bf16.mxu0 %v12366_v12  ;;  %v12348_v12 = vld [vmem:[%s14279_s17 + $0x230] ss:$8 sps:$4 sm:$0xff]  }
0x1c75   : > { %9258 = vmatprep.subr.bf16.mxu0 %v12344_v11 }
0x1c78   : > { %9259 = vmatpush1.bf16.msra.mxu0 %v12342_v34 }
0x1c79   : > { %9260 = vmatprep.subr.bf16.mxu0 %v12347_v18 }
0x1c7c   : > { %9261 = vmatpush1.bf16.msra.mxu0 %v12345_v19 }
0x1c7d   : > { %9262 = vmatprep.subr.bf16.mxu0 %v12350_v28 }
0x1c80   : > { %9263 = vmatpush1.bf16.msra.mxu0 %v12348_v12 }
0x1c83   : > { %10572 = vmatmul.mubr.msk.bf16.vlgmr.msra.gmra.mrb[168].mxu0 %vm2701_vm4, %v14014_v57 }
0x1d46   : > { %v9198_v29 = vpop.f32.mrb[164].mxu0 }
0x1d47   : > { %v9205_v39 = vadd.f32 %v9198_v29, %v9063_v25  ;;  %v9200_v40 = vpop.f32.mrb[165].mxu0 }
0x1d48   : > { %v9206_v37 = vadd.f32 %v9200_v40, %v9064_v30  ;;  %v9202_v47 = vpop.f32.mrb[166].mxu0 }
0x1d49   : > { %v9203_v42 = vpop.f32.mrb[167].mxu0 }
0x1d56   : > { %v9290_v43 = vpop.f32.mrb[168].mxu0 }
0x1d57   : > { %v9292_v9 = vpop.f32.mrb[169].mxu0 }
0x1d58   : > { %v9294_v44 = vpop.f32.mrb[170].mxu0 }
0x1d59   : > { %v9301_v45 = vpack.c.bf16 %v9294_v44, %v9290_v43  ;;  %v9296_v46 = vpop.f32.mrb[171].mxu0 }
0x1d5a   : > { %v9302_v26 = vpack.c.bf16 %v9296_v46, %v9292_v9 }
0x1d5c   : > { %9306 = vmatprep.subr.bf16.mxu1 %v9302_v26 }
0x1d5d   : > { %9307 = vmatpush1.bf16.msra.mxu1 %v9301_v45 }
0x1d60   : > { %10574 = vmatmul.mubr.msk.bf16.vlgmr.msra.gmra.mrb[200].mxu1 %vm2841_vm5, %v10573_v48 }
0x1e33   : > { %v9340_v57 = vpop.f32.mrb[200].mxu1 }
0x1e34   : > { %v9347_v49 = vadd.f32 %v9340_v57, %v9205_v39  ;;  %v9342_v51 = vpop.f32.mrb[201].mxu1 }
0x1e35   : > { %v9348_v53 = vadd.f32 %v9342_v51, %v9206_v37  ;;  %v9344_v58 = vpop.f32.mrb[202].mxu1 }
0x1e36   : > { %v9355_v59 = vadd.f32 %v9353_v52, %v9347_v49  ;;  %v9345_v60 = vpop.f32.mrb[203].mxu1 }
0x1e37   : > { %v9356_v61 = vadd.f32 %v9353_v52, %v9348_v53 }
0x1e38   : > { %v9357_v62 = vmul.f32 0.5, %v9355_v59 }
0x1e39   : > { %v9358_v63 = vmul.f32 0.5, %v9356_v61 }
0x1e3a   : > { %12351 = vtanh.f32 %v9357_v62 }
0x1e3b   : > { %12353 = vtanh.f32 %v9358_v63 }
0x1e44   : > { %v12352_v0 = vpop.eup %12351 }
0x1e45   : > { %v12354_v2 = vpop.eup %12353  ;;  %v9361_v35 = vmul.f32 0.5, %v12352_v0 }
0x1e46   : > { %v9362_v3 = vmul.f32 0.5, %v12354_v2 }
0x1e47   : > { %v9363_v5 = vadd.f32 0.5, %v9361_v35 }
0x1e48   : > { %v9364_v6 = vadd.f32 0.5, %v9362_v3 }
0x1e4a   : > { %v9367_v7 = vcombine.low %v9363_v5, %v9364_v6 }
0x1e4c   : > { %9369 = vst [vmem:[%s602_s2] sm:$0x77] %v9367_v7 }
0x1e4d PF: > { %s14296_s23 = sld [smem:[#allocation2_spill]] }
0x1e53   : > { %s29_s0 = sadd.s32 1, %s14296_s23  }
0x1e54   : > { %p26_p4 = scmp.ge.s32.totalorder %s29_s0, 4  }
0x1e56   :  { %28 = sbr.rel (!%p26_p4) target bundleno = 5 (0x5), region = 222 }

</bundles_post_ra>
